<compile_context>
chip_gen: v7x
topology: tpu7x:2x2x1
jax: 0.10.0
libtpu: 0.0.40
codegen_flags: <defaults>
</compile_context>

<pallas_src>
import jax
import jax.numpy as jnp
from jax import lax
from jax.experimental import pallas as pl
from jax.experimental.pallas import tpu as pltpu

F32 = jnp.float32
BF16 = jnp.bfloat16


def _sigmoid(z):
    # exp on the EUP; divide via the approx EUP reciprocal (separate VLIW slot).
    return pl.reciprocal(1.0 + jnp.exp(-z), approx=True)


def _align8(v):
    return ((v + 7) // 8) * 8


def gcn_forward(x, edge_index, edge_w, waypoints, conv_params, gamma, beta, w1, b1, w2, b2):
    """Fully fused GCN forward (single grid-less pallas_call).

    conv_params: 4 tuples (wrel (prev,s), brel (1,s), wroot (prev,s)).
    w1: (2*core, hidden) edge_fc1 weight ([row feats; col feats]); w2: (hidden, 100)."""
    n, f_in = x.shape
    nb = int(waypoints.shape[0])
    pp = nb * nb
    sizes = [int(w.shape[1]) for (w, _, _) in conv_params]
    core = sizes[-1]
    hidden = int(w1.shape[1])
    n2 = int(w2.shape[1])            # 100
    OUTP = 128                       # lane-padded edge_fc2 width

    # ---------------- host-side constant prep (constant-folded under jit) ----------------
    src = edge_index[0].astype(jnp.int32)
    dst = edge_index[1].astype(jnp.int32)
    # dense weighted adjacency A[dst, src] += w   (GraphConv aggregates sum_j w_ji x_j)
    adj = jnp.zeros((n, n), F32).at[dst, src].add(edge_w.astype(F32))
    # waypoint gather as a one-hot matrix
    sel_mask = (waypoints.astype(jnp.int32)[:, None] == jnp.arange(n)[None, :]).astype(F32)
    # pairwise-expansion selectors: pair row p = i*nb + j
    pidx = jnp.arange(pp)
    e_row = (pidx[:, None] // nb == jnp.arange(nb)[None, :]).astype(F32)   # 1 at col p//nb
    e_col = (pidx[:, None] % nb == jnp.arange(nb)[None, :]).astype(F32)    # 1 at col p%nb
    e_colT = e_col.T                                                       # (nb, pp)
    # edge_fc2 lane padding: zero weight cols, -1e30 bias so padded lanes never win the max
    w2p = jnp.concatenate([w2, jnp.zeros((hidden, OUTP - n2), w2.dtype)], axis=1)
    b2p = jnp.concatenate([jnp.reshape(b2, (1, n2)).astype(F32),
                           jnp.full((1, OUTP - n2), -1e30, F32)], axis=1)

    # ---- ONE (R,128) f32 slab for every small operand (single prologue DMA descriptor) ----
    off = {}
    r = 0

    def claim(name, nrows):
        nonlocal r
        r = _align8(r)                # 8-aligned section starts -> aligned sublane loads
        off[name] = r
        r += nrows

    claim('adj', n)
    claim('sel', nb)
    claim('erow', pp)
    claim('ecol', pp)
    claim('ecolT', nb)
    claim('bias', 7)                  # brel0..3, gamma, beta, b2(padded)
    wrows = []
    prev = f_in
    for k, s in enumerate(sizes):
        claim(f'w{k}', 2 * prev)
        wrows.append((off[f'w{k}'], 2 * prev, s))
        prev = s
    slab_rows = _align8(r)

    slab = jnp.zeros((slab_rows, 128), F32)

    def put(sl, row, arr):
        arr = jnp.asarray(arr, F32)
        return sl.at[row:row + arr.shape[0], 0:arr.shape[1]].set(arr)

    slab = put(slab, off['adj'], adj)
    slab = put(slab, off['sel'], sel_mask)
    slab = put(slab, off['erow'], e_row)
    slab = put(slab, off['ecol'], e_col)
    slab = put(slab, off['ecolT'], e_colT)
    for k, (_, brel, _) in enumerate(conv_params):
        slab = put(slab, off['bias'] + k, jnp.reshape(brel, (1, -1)))
    slab = put(slab, off['bias'] + 4, jnp.reshape(gamma, (1, -1)))
    slab = put(slab, off['bias'] + 5, jnp.reshape(beta, (1, -1)))
    slab = put(slab, off['bias'] + 6, b2p)
    for k, (wrel, _, wroot) in enumerate(conv_params):
        slab = put(slab, wrows[k][0], jnp.concatenate([wrel, wroot], axis=0))  # [Wrel;Wroot]

    # ---- big edge-MLP weights: bf16, left in HBM, DMA'd asynchronously inside the kernel ----
    w1rc = jnp.concatenate([w1[:core], w1[core:]], axis=1).astype(BF16)   # (core, 2*hidden)
    w2b = w2p.astype(BF16)                                                # (hidden, 128)
    b1f = jnp.reshape(b1, (1, hidden)).astype(F32)

    layer_info = tuple((wrows[k][0], wrows[k][1], sizes[k], off['bias'] + k)
                       for k in range(len(sizes)))

    def kernel(x_ref, slab_ref, b1_ref, w1_hbm, w2_hbm, o_ref, w1_vmem, w2_vmem, dma_sem):
        # -- kick off the big-weight DMAs; GraphConv / BN / gather phases hide them --
        cp1 = pltpu.make_async_copy(w1_hbm, w1_vmem, dma_sem.at[0])
        cp2 = pltpu.make_async_copy(w2_hbm, w2_vmem, dma_sem.at[1])
        cp1.start()
        cp2.start()

        adj_bf = slab_ref[off['adj']:off['adj'] + n, 0:n].astype(BF16)    # hoisted once

        # -- 4x GraphConv, lin_rel/lin_root fused: sigmoid([A@x || x] @ [Wrel;Wroot] + b) --
        xx = x_ref[...]
        for (wr, twoprev, s_k, brow) in layer_info:
            agg = jnp.dot(adj_bf, xx.astype(BF16), preferred_element_type=F32)
            lhs = jnp.concatenate([agg, xx], axis=-1).astype(BF16)        # (n, 2*prev)
            wcat = slab_ref[wr:wr + twoprev, 0:s_k].astype(BF16)
            brel = slab_ref[brow:brow + 1, 0:s_k]
            xx = _sigmoid(jnp.dot(lhs, wcat, preferred_element_type=F32) + brel)

        # -- BatchNorm1d with batch statistics (track_running_stats=False), eps=1e-5 --
        mean = jnp.mean(xx, axis=0, keepdims=True)
        var = jnp.mean((xx - mean) * (xx - mean), axis=0, keepdims=True)
        gam = slab_ref[off['bias'] + 4:off['bias'] + 5, 0:core]
        bet = slab_ref[off['bias'] + 5:off['bias'] + 6, 0:core]
        xx = (xx - mean) * lax.rsqrt(var + 1e-5) * gam + bet

        # -- waypoint gather sel[i] = x[wp[i]] as a one-hot matmul --
        selm = slab_ref[off['sel']:off['sel'] + nb, 0:n].astype(BF16)
        sel = jnp.dot(selm, xx.astype(BF16), preferred_element_type=F32)  # (nb, core)

        # -- edge_fc1 factorized through the [row || col] concat: ONE wide bf16 matmul --
        cp1.wait()                                                         # w1rc now in VMEM
        hrc = jnp.dot(sel.astype(BF16), w1_vmem[...],
                      preferred_element_type=F32)                         # (nb, 2*hidden)
        hr = hrc[:, :hidden].astype(BF16)                                 # row (i) term
        hc = hrc[:, hidden:].astype(BF16)                                 # col (j) term

        # -- pairwise expansion h[i*nb+j] = sigmoid(hr[i] + hc[j] + b1) via 0/1 selectors --
        erow_bf = slab_ref[off['erow']:off['erow'] + pp, 0:nb].astype(BF16)
        ecol_bf = slab_ref[off['ecol']:off['ecol'] + pp, 0:nb].astype(BF16)
        h = _sigmoid(jnp.dot(erow_bf, hr, preferred_element_type=F32)
                     + jnp.dot(ecol_bf, hc, preferred_element_type=F32)
                     + b1_ref[...])                                       # (pp, hidden)
        # TODO(synk): nn.Dropout(p=0.2) is stochastic in training; identity here (eval mode).

        # -- edge_fc2 -> MaxPool1d(100) -> sigmoid (monotonic: max/sigmoid reordered) --
        cp2.wait()                                                         # w2 now in VMEM
        b2row = slab_ref[off['bias'] + 6:off['bias'] + 7, 0:OUTP]          # pads are -1e30
        logits = jnp.dot(h.astype(BF16), w2_vmem[...],
                         preferred_element_type=F32) + b2row              # (pp, 128)
        pooled = _sigmoid(jnp.max(logits, axis=-1, keepdims=True))        # (pp, 1)

        # -- scatter (pp,1) -> transposed (nb,nb), zero diagonal: o[j,i] = pooled[i*nb+j] --
        erow_f = slab_ref[off['erow']:off['erow'] + pp, 0:nb]              # (pp, nb) f32
        ecolT_f = slab_ref[off['ecolT']:off['ecolT'] + nb, 0:pp]           # (nb, pp) f32
        o_mat = jnp.dot(ecolT_f, pooled * erow_f, preferred_element_type=F32)
        rr = lax.broadcasted_iota(jnp.int32, (nb, nb), 0)
        cc = lax.broadcasted_iota(jnp.int32, (nb, nb), 1)
        o_ref[...] = jnp.where(rr == cc, 0.0, o_mat)

    vmem = pl.BlockSpec(memory_space=pltpu.MemorySpace.VMEM)
    hbm = pl.BlockSpec(memory_space=pl.ANY)

    out = pl.pallas_call(
        kernel,
        out_shape=jax.ShapeDtypeStruct((nb, nb), F32),
        in_specs=[vmem, vmem, vmem, hbm, hbm],
        out_specs=vmem,
        scratch_shapes=[
            pltpu.VMEM((core, 2 * hidden), BF16),   # w1rc landing buffer
            pltpu.VMEM((hidden, OUTP), BF16),       # w2 landing buffer
            pltpu.SemaphoreType.DMA((2,)),
        ],
    )(x.astype(F32), slab, b1f, w1rc, w2b)

    # transpose(0,2) on (nb, nb, 1): out[0, j, i] = pooled[i, j] (already transposed in-kernel)
    return out[None, :, :]


if __name__ == "__main__":
    key = jax.random.PRNGKey(0)
    keys = jax.random.split(key, 20)

    # small synthetic graph
    N, F_IN, E = 16, 8, 48
    x = jax.random.normal(keys[0], (N, F_IN), jnp.float32)
    src = jax.random.randint(keys[1], (E,), 0, N)
    dst = jax.random.randint(keys[2], (E,), 0, N)
    edge_index = jnp.stack([src, dst]).astype(jnp.int32)
    edge_w = jax.random.uniform(keys[3], (E,), jnp.float32)
    waypoints = jnp.array([0, 3, 5, 7, 9, 12], dtype=jnp.int32)   # nb_waypoints = 6

    # module config: out_sizes = range(10, 200, 15), last_layer = 3
    out_sizes = list(range(10, 200, 15))
    last_layer = 3
    sizes = out_sizes[:last_layer + 1]          # [10, 25, 40, 55]
    core = sizes[-1]                            # 55
    hidden = 2048

    # deterministic parameter init (GraphConv: lin_rel has bias, lin_root does not)
    conv_params = []
    prev = F_IN
    k = 4
    for s in sizes:
        wrel = 0.1 * jax.random.normal(keys[k], (prev, s), jnp.float32); k += 1
        brel = 0.1 * jax.random.normal(keys[k], (1, s), jnp.float32);    k += 1
        wroot = 0.1 * jax.random.normal(keys[k], (prev, s), jnp.float32); k += 1
        conv_params.append((wrel, brel, wroot))
        prev = s

    gamma = jnp.ones((1, core), jnp.float32)
    beta = jnp.zeros((1, core), jnp.float32)

    w1 = 0.05 * jax.random.normal(keys[16], (2 * core, hidden), jnp.float32)
    b1 = 0.05 * jax.random.normal(keys[17], (1, hidden), jnp.float32)
    w2 = 0.05 * jax.random.normal(keys[18], (hidden, 100), jnp.float32)
    b2 = 0.05 * jax.random.normal(keys[19], (1, 100), jnp.float32)

    fwd = jax.jit(lambda xx: gcn_forward(xx, edge_index, edge_w, waypoints,
                                         conv_params, gamma, beta, w1, b1, w2, b2))
    out = jax.block_until_ready(fwd(x))
    assert out.shape == (1, waypoints.shape[0], waypoints.shape[0])
    assert bool(jnp.all(jnp.isfinite(out)))
    print("KERNEL_OK")
</pallas_src>

<mosaic_0001>
module attributes {stable_mosaic.version = 11 : i64} {
  func.func @kernel(%arg0: memref<16x8xf32, #tpu.memory_space<vmem>>, %arg1: memref<296x128xf32, #tpu.memory_space<vmem>>, %arg2: memref<1x2048xf32, #tpu.memory_space<vmem>>, %arg3: memref<55x4096xbf16, #tpu.memory_space<any>>, %arg4: memref<2048x128xbf16, #tpu.memory_space<any>>, %arg5: memref<6x6xf32, #tpu.memory_space<vmem>>, %arg6: memref<55x4096xbf16, #tpu.memory_space<vmem>>, %arg7: memref<2048x128xbf16, #tpu.memory_space<vmem>>, %arg8: memref<2x!tpu.dma_semaphore, #tpu.memory_space<semaphore_mem>>) attributes {dimension_semantics = [], scalar_prefetch = 0 : i64, scratch_operands = 3 : i64, tpu.core_type = #tpu.core_type<tc>} {
    %c0_i32 = arith.constant 0 : i32
    %0 = tpu.memref_slice %arg8[%c0_i32] : memref<2x!tpu.dma_semaphore, #tpu.memory_space<semaphore_mem>> -> memref<1x!tpu.dma_semaphore, #tpu.memory_space<semaphore_mem>>
    %1 = tpu.memref_squeeze %0 : memref<1x!tpu.dma_semaphore, #tpu.memory_space<semaphore_mem>> -> memref<!tpu.dma_semaphore, #tpu.memory_space<semaphore_mem>>
    tpu.enqueue_dma source(%arg3 : memref<55x4096xbf16, #tpu.memory_space<any>>) target(%arg6 : memref<55x4096xbf16, #tpu.memory_space<vmem>>) target_semaphore(%1 : memref<!tpu.dma_semaphore, #tpu.memory_space<semaphore_mem>>)
    %c1_i32 = arith.constant 1 : i32
    %2 = tpu.memref_slice %arg8[%c1_i32] : memref<2x!tpu.dma_semaphore, #tpu.memory_space<semaphore_mem>> -> memref<1x!tpu.dma_semaphore, #tpu.memory_space<semaphore_mem>>
    %3 = tpu.memref_squeeze %2 : memref<1x!tpu.dma_semaphore, #tpu.memory_space<semaphore_mem>> -> memref<!tpu.dma_semaphore, #tpu.memory_space<semaphore_mem>>
    tpu.enqueue_dma source(%arg4 : memref<2048x128xbf16, #tpu.memory_space<any>>) target(%arg7 : memref<2048x128xbf16, #tpu.memory_space<vmem>>) target_semaphore(%3 : memref<!tpu.dma_semaphore, #tpu.memory_space<semaphore_mem>>)
    %c0 = arith.constant 0 : index
    %c0_0 = arith.constant 0 : index
    %4 = vector.load %arg1[%c0, %c0_0] : memref<296x128xf32, #tpu.memory_space<vmem>>, vector<16x16xf32>
    %5 = arith.truncf %4 : vector<16x16xf32> to vector<16x16xbf16>
    %c0_1 = arith.constant 0 : index
    %c0_2 = arith.constant 0 : index
    %6 = vector.load %arg0[%c0_1, %c0_2] : memref<16x8xf32, #tpu.memory_space<vmem>>, vector<16x8xf32>
    %7 = arith.truncf %6 : vector<16x8xf32> to vector<16x8xbf16>
    %cst = arith.constant dense<0.000000e+00> : vector<16x8xf32>
    %8 = tpu.matmul %5, %7, %cst {dimension_numbers = #tpu.dot_dimension_numbers<[1], [0], [0], [1], [0, 0, 1, 1], [], []>} : vector<16x16xbf16>, vector<16x8xbf16>, vector<16x8xf32> -> vector<16x8xf32>
    %9 = tpu.concatenate %8, %6 in 1 : vector<16x8xf32>, vector<16x8xf32> -> vector<16x16xf32>
    %10 = arith.truncf %9 : vector<16x16xf32> to vector<16x16xbf16>
    %c120 = arith.constant 120 : index
    %c0_3 = arith.constant 0 : index
    %11 = vector.load %arg1[%c120, %c0_3] : memref<296x128xf32, #tpu.memory_space<vmem>>, vector<16x10xf32>
    %12 = arith.truncf %11 : vector<16x10xf32> to vector<16x10xbf16>
    %c112 = arith.constant 112 : index
    %c0_4 = arith.constant 0 : index
    %13 = vector.load %arg1[%c112, %c0_4] : memref<296x128xf32, #tpu.memory_space<vmem>>, vector<1x10xf32>
    %cst_5 = arith.constant dense<0.000000e+00> : vector<16x10xf32>
    %14 = tpu.matmul %10, %12, %cst_5 {dimension_numbers = #tpu.dot_dimension_numbers<[1], [0], [0], [1], [0, 0, 1, 1], [], []>} : vector<16x16xbf16>, vector<16x10xbf16>, vector<16x10xf32> -> vector<16x10xf32>
    %15 = vector.broadcast %13 : vector<1x10xf32> to vector<16x10xf32>
    %16 = arith.addf %14, %15 : vector<16x10xf32>
    %cst_6 = arith.constant 0.000000e+00 : f32
    %17 = vector.broadcast %cst_6 : f32 to vector<16x10xf32>
    %18 = arith.subf %17, %16 : vector<16x10xf32>
    %19 = math.exp %18 : vector<16x10xf32>
    %cst_7 = arith.constant 1.000000e+00 : f32
    %20 = vector.broadcast %cst_7 : f32 to vector<16x10xf32>
    %21 = arith.addf %20, %19 : vector<16x10xf32>
    %22 = tpu.reciprocal %21 {approx = true} : vector<16x10xf32> -> vector<16x10xf32>
    %23 = arith.truncf %22 : vector<16x10xf32> to vector<16x10xbf16>
    %cst_8 = arith.constant dense<0.000000e+00> : vector<16x10xf32>
    %24 = tpu.matmul %5, %23, %cst_8 {dimension_numbers = #tpu.dot_dimension_numbers<[1], [0], [0], [1], [0, 0, 1, 1], [], []>} : vector<16x16xbf16>, vector<16x10xbf16>, vector<16x10xf32> -> vector<16x10xf32>
    %25 = tpu.concatenate %24, %22 in 1 : vector<16x10xf32>, vector<16x10xf32> -> vector<16x20xf32>
    %26 = arith.truncf %25 : vector<16x20xf32> to vector<16x20xbf16>
    %c136 = arith.constant 136 : index
    %c0_9 = arith.constant 0 : index
    %27 = vector.load %arg1[%c136, %c0_9] : memref<296x128xf32, #tpu.memory_space<vmem>>, vector<20x25xf32>
    %28 = arith.truncf %27 : vector<20x25xf32> to vector<20x25xbf16>
    %c113 = arith.constant 113 : index
    %c0_10 = arith.constant 0 : index
    %29 = vector.load %arg1[%c113, %c0_10] : memref<296x128xf32, #tpu.memory_space<vmem>>, vector<1x25xf32>
    %cst_11 = arith.constant dense<0.000000e+00> : vector<16x25xf32>
    %30 = tpu.matmul %26, %28, %cst_11 {dimension_numbers = #tpu.dot_dimension_numbers<[1], [0], [0], [1], [0, 0, 1, 1], [], []>} : vector<16x20xbf16>, vector<20x25xbf16>, vector<16x25xf32> -> vector<16x25xf32>
    %31 = vector.broadcast %29 : vector<1x25xf32> to vector<16x25xf32>
    %32 = arith.addf %30, %31 : vector<16x25xf32>
    %cst_12 = arith.constant 0.000000e+00 : f32
    %33 = vector.broadcast %cst_12 : f32 to vector<16x25xf32>
    %34 = arith.subf %33, %32 : vector<16x25xf32>
    %35 = math.exp %34 : vector<16x25xf32>
    %cst_13 = arith.constant 1.000000e+00 : f32
    %36 = vector.broadcast %cst_13 : f32 to vector<16x25xf32>
    %37 = arith.addf %36, %35 : vector<16x25xf32>
    %38 = tpu.reciprocal %37 {approx = true} : vector<16x25xf32> -> vector<16x25xf32>
    %39 = arith.truncf %38 : vector<16x25xf32> to vector<16x25xbf16>
    %cst_14 = arith.constant dense<0.000000e+00> : vector<16x25xf32>
    %40 = tpu.matmul %5, %39, %cst_14 {dimension_numbers = #tpu.dot_dimension_numbers<[1], [0], [0], [1], [0, 0, 1, 1], [], []>} : vector<16x16xbf16>, vector<16x25xbf16>, vector<16x25xf32> -> vector<16x25xf32>
    %41 = tpu.concatenate %40, %38 in 1 : vector<16x25xf32>, vector<16x25xf32> -> vector<16x50xf32>
    %42 = arith.truncf %41 : vector<16x50xf32> to vector<16x50xbf16>
    %c160 = arith.constant 160 : index
    %c0_15 = arith.constant 0 : index
    %43 = vector.load %arg1[%c160, %c0_15] : memref<296x128xf32, #tpu.memory_space<vmem>>, vector<50x40xf32>
    %44 = arith.truncf %43 : vector<50x40xf32> to vector<50x40xbf16>
    %c114 = arith.constant 114 : index
    %c0_16 = arith.constant 0 : index
    %45 = vector.load %arg1[%c114, %c0_16] : memref<296x128xf32, #tpu.memory_space<vmem>>, vector<1x40xf32>
    %cst_17 = arith.constant dense<0.000000e+00> : vector<16x40xf32>
    %46 = tpu.matmul %42, %44, %cst_17 {dimension_numbers = #tpu.dot_dimension_numbers<[1], [0], [0], [1], [0, 0, 1, 1], [], []>} : vector<16x50xbf16>, vector<50x40xbf16>, vector<16x40xf32> -> vector<16x40xf32>
    %47 = vector.broadcast %45 : vector<1x40xf32> to vector<16x40xf32>
    %48 = arith.addf %46, %47 : vector<16x40xf32>
    %cst_18 = arith.constant 0.000000e+00 : f32
    %49 = vector.broadcast %cst_18 : f32 to vector<16x40xf32>
    %50 = arith.subf %49, %48 : vector<16x40xf32>
    %51 = math.exp %50 : vector<16x40xf32>
    %cst_19 = arith.constant 1.000000e+00 : f32
    %52 = vector.broadcast %cst_19 : f32 to vector<16x40xf32>
    %53 = arith.addf %52, %51 : vector<16x40xf32>
    %54 = tpu.reciprocal %53 {approx = true} : vector<16x40xf32> -> vector<16x40xf32>
    %55 = arith.truncf %54 : vector<16x40xf32> to vector<16x40xbf16>
    %cst_20 = arith.constant dense<0.000000e+00> : vector<16x40xf32>
    %56 = tpu.matmul %5, %55, %cst_20 {dimension_numbers = #tpu.dot_dimension_numbers<[1], [0], [0], [1], [0, 0, 1, 1], [], []>} : vector<16x16xbf16>, vector<16x40xbf16>, vector<16x40xf32> -> vector<16x40xf32>
    %57 = tpu.concatenate %56, %54 in 1 : vector<16x40xf32>, vector<16x40xf32> -> vector<16x80xf32>
    %58 = arith.truncf %57 : vector<16x80xf32> to vector<16x80xbf16>
    %c216 = arith.constant 216 : index
    %c0_21 = arith.constant 0 : index
    %59 = vector.load %arg1[%c216, %c0_21] : memref<296x128xf32, #tpu.memory_space<vmem>>, vector<80x55xf32>
    %60 = arith.truncf %59 : vector<80x55xf32> to vector<80x55xbf16>
    %c115 = arith.constant 115 : index
    %c0_22 = arith.constant 0 : index
    %61 = vector.load %arg1[%c115, %c0_22] : memref<296x128xf32, #tpu.memory_space<vmem>>, vector<1x55xf32>
    %cst_23 = arith.constant dense<0.000000e+00> : vector<16x55xf32>
    %62 = tpu.matmul %58, %60, %cst_23 {dimension_numbers = #tpu.dot_dimension_numbers<[1], [0], [0], [1], [0, 0, 1, 1], [], []>} : vector<16x80xbf16>, vector<80x55xbf16>, vector<16x55xf32> -> vector<16x55xf32>
    %63 = vector.broadcast %61 : vector<1x55xf32> to vector<16x55xf32>
    %64 = arith.addf %62, %63 : vector<16x55xf32>
    %cst_24 = arith.constant 0.000000e+00 : f32
    %65 = vector.broadcast %cst_24 : f32 to vector<16x55xf32>
    %66 = arith.subf %65, %64 : vector<16x55xf32>
    %67 = math.exp %66 : vector<16x55xf32>
    %cst_25 = arith.constant 1.000000e+00 : f32
    %68 = vector.broadcast %cst_25 : f32 to vector<16x55xf32>
    %69 = arith.addf %68, %67 : vector<16x55xf32>
    %70 = tpu.reciprocal %69 {approx = true} : vector<16x55xf32> -> vector<16x55xf32>
    %cst_26 = arith.constant dense<0.000000e+00> : vector<55xf32>
    %71 = vector.multi_reduction <add>, %70, %cst_26 [0] : vector<16x55xf32> to vector<55xf32>
    %72 = vector.shape_cast %71 : vector<55xf32> to vector<1x55xf32>
    %cst_27 = arith.constant 1.600000e+01 : f32
    %73 = vector.broadcast %cst_27 : f32 to vector<1x55xf32>
    %74 = arith.divf %72, %73 : vector<1x55xf32>
    %75 = vector.broadcast %74 : vector<1x55xf32> to vector<16x55xf32>
    %76 = arith.subf %70, %75 : vector<16x55xf32>
    %77 = vector.broadcast %74 : vector<1x55xf32> to vector<16x55xf32>
    %78 = arith.subf %70, %77 : vector<16x55xf32>
    %79 = arith.mulf %76, %78 : vector<16x55xf32>
    %cst_28 = arith.constant dense<0.000000e+00> : vector<55xf32>
    %80 = vector.multi_reduction <add>, %79, %cst_28 [0] : vector<16x55xf32> to vector<55xf32>
    %81 = vector.shape_cast %80 : vector<55xf32> to vector<1x55xf32>
    %cst_29 = arith.constant 1.600000e+01 : f32
    %82 = vector.broadcast %cst_29 : f32 to vector<1x55xf32>
    %83 = arith.divf %81, %82 : vector<1x55xf32>
    %c116 = arith.constant 116 : index
    %c0_30 = arith.constant 0 : index
    %84 = vector.load %arg1[%c116, %c0_30] : memref<296x128xf32, #tpu.memory_space<vmem>>, vector<1x55xf32>
    %c117 = arith.constant 117 : index
    %c0_31 = arith.constant 0 : index
    %85 = vector.load %arg1[%c117, %c0_31] : memref<296x128xf32, #tpu.memory_space<vmem>>, vector<1x55xf32>
    %86 = vector.broadcast %74 : vector<1x55xf32> to vector<16x55xf32>
    %87 = arith.subf %70, %86 : vector<16x55xf32>
    %cst_32 = arith.constant 9.99999974E-6 : f32
    %88 = vector.broadcast %cst_32 : f32 to vector<1x55xf32>
    %89 = arith.addf %83, %88 : vector<1x55xf32>
    %90 = math.rsqrt %89 : vector<1x55xf32>
    %91 = vector.broadcast %90 : vector<1x55xf32> to vector<16x55xf32>
    %92 = arith.mulf %87, %91 : vector<16x55xf32>
    %93 = vector.broadcast %84 : vector<1x55xf32> to vector<16x55xf32>
    %94 = arith.mulf %92, %93 : vector<16x55xf32>
    %95 = vector.broadcast %85 : vector<1x55xf32> to vector<16x55xf32>
    %96 = arith.addf %94, %95 : vector<16x55xf32>
    %c16 = arith.constant 16 : index
    %c0_33 = arith.constant 0 : index
    %97 = vector.load %arg1[%c16, %c0_33] : memref<296x128xf32, #tpu.memory_space<vmem>>, vector<6x16xf32>
    %98 = arith.truncf %97 : vector<6x16xf32> to vector<6x16xbf16>
    %99 = arith.truncf %96 : vector<16x55xf32> to vector<16x55xbf16>
    %cst_34 = arith.constant dense<0.000000e+00> : vector<6x55xf32>
    %100 = tpu.matmul %98, %99, %cst_34 {dimension_numbers = #tpu.dot_dimension_numbers<[1], [0], [0], [1], [0, 0, 1, 1], [], []>} : vector<6x16xbf16>, vector<16x55xbf16>, vector<6x55xf32> -> vector<6x55xf32>
    %c0_i32_35 = arith.constant 0 : i32
    %101 = tpu.memref_slice %arg8[%c0_i32_35] : memref<2x!tpu.dma_semaphore, #tpu.memory_space<semaphore_mem>> -> memref<1x!tpu.dma_semaphore, #tpu.memory_space<semaphore_mem>>
    %102 = tpu.memref_squeeze %101 : memref<1x!tpu.dma_semaphore, #tpu.memory_space<semaphore_mem>> -> memref<!tpu.dma_semaphore, #tpu.memory_space<semaphore_mem>>
    tpu.wait_dma2 semaphore(%102 : memref<!tpu.dma_semaphore, #tpu.memory_space<semaphore_mem>>) src(%arg3 : memref<55x4096xbf16, #tpu.memory_space<any>>) dst(%arg6 : memref<55x4096xbf16, #tpu.memory_space<vmem>>)
    %103 = arith.truncf %100 : vector<6x55xf32> to vector<6x55xbf16>
    %c0_36 = arith.constant 0 : index
    %c0_37 = arith.constant 0 : index
    %104 = vector.load %arg6[%c0_36, %c0_37] : memref<55x4096xbf16, #tpu.memory_space<vmem>>, vector<55x4096xbf16>
    %cst_38 = arith.constant dense<0.000000e+00> : vector<6x4096xf32>
    %105 = tpu.matmul %103, %104, %cst_38 {dimension_numbers = #tpu.dot_dimension_numbers<[1], [0], [0], [1], [0, 0, 1, 1], [], []>} : vector<6x55xbf16>, vector<55x4096xbf16>, vector<6x4096xf32> -> vector<6x4096xf32>
    %106 = vector.extract_strided_slice %105 {offsets = [0, 0], sizes = [6, 2048], strides = [1, 1]} : vector<6x4096xf32> to vector<6x2048xf32>
    %107 = arith.truncf %106 : vector<6x2048xf32> to vector<6x2048xbf16>
    %108 = vector.extract_strided_slice %105 {offsets = [0, 2048], sizes = [6, 2048], strides = [1, 1]} : vector<6x4096xf32> to vector<6x2048xf32>
    %109 = arith.truncf %108 : vector<6x2048xf32> to vector<6x2048xbf16>
    %c24 = arith.constant 24 : index
    %c0_39 = arith.constant 0 : index
    %110 = vector.load %arg1[%c24, %c0_39] : memref<296x128xf32, #tpu.memory_space<vmem>>, vector<36x6xf32>
    %111 = arith.truncf %110 : vector<36x6xf32> to vector<36x6xbf16>
    %c64 = arith.constant 64 : index
    %c0_40 = arith.constant 0 : index
    %112 = vector.load %arg1[%c64, %c0_40] : memref<296x128xf32, #tpu.memory_space<vmem>>, vector<36x6xf32>
    %113 = arith.truncf %112 : vector<36x6xf32> to vector<36x6xbf16>
    %cst_41 = arith.constant dense<0.000000e+00> : vector<36x2048xf32>
    %114 = tpu.matmul %111, %107, %cst_41 {dimension_numbers = #tpu.dot_dimension_numbers<[1], [0], [0], [1], [0, 0, 1, 1], [], []>} : vector<36x6xbf16>, vector<6x2048xbf16>, vector<36x2048xf32> -> vector<36x2048xf32>
    %cst_42 = arith.constant dense<0.000000e+00> : vector<36x2048xf32>
    %115 = tpu.matmul %113, %109, %cst_42 {dimension_numbers = #tpu.dot_dimension_numbers<[1], [0], [0], [1], [0, 0, 1, 1], [], []>} : vector<36x6xbf16>, vector<6x2048xbf16>, vector<36x2048xf32> -> vector<36x2048xf32>
    %116 = arith.addf %114, %115 : vector<36x2048xf32>
    %c0_43 = arith.constant 0 : index
    %c0_44 = arith.constant 0 : index
    %117 = vector.load %arg2[%c0_43, %c0_44] : memref<1x2048xf32, #tpu.memory_space<vmem>>, vector<1x2048xf32>
    %118 = vector.broadcast %117 : vector<1x2048xf32> to vector<36x2048xf32>
    %119 = arith.addf %116, %118 : vector<36x2048xf32>
    %cst_45 = arith.constant 0.000000e+00 : f32
    %120 = vector.broadcast %cst_45 : f32 to vector<36x2048xf32>
    %121 = arith.subf %120, %119 : vector<36x2048xf32>
    %122 = math.exp %121 : vector<36x2048xf32>
    %cst_46 = arith.constant 1.000000e+00 : f32
    %123 = vector.broadcast %cst_46 : f32 to vector<36x2048xf32>
    %124 = arith.addf %123, %122 : vector<36x2048xf32>
    %125 = tpu.reciprocal %124 {approx = true} : vector<36x2048xf32> -> vector<36x2048xf32>
    %c1_i32_47 = arith.constant 1 : i32
    %126 = tpu.memref_slice %arg8[%c1_i32_47] : memref<2x!tpu.dma_semaphore, #tpu.memory_space<semaphore_mem>> -> memref<1x!tpu.dma_semaphore, #tpu.memory_space<semaphore_mem>>
    %127 = tpu.memref_squeeze %126 : memref<1x!tpu.dma_semaphore, #tpu.memory_space<semaphore_mem>> -> memref<!tpu.dma_semaphore, #tpu.memory_space<semaphore_mem>>
    tpu.wait_dma2 semaphore(%127 : memref<!tpu.dma_semaphore, #tpu.memory_space<semaphore_mem>>) src(%arg4 : memref<2048x128xbf16, #tpu.memory_space<any>>) dst(%arg7 : memref<2048x128xbf16, #tpu.memory_space<vmem>>)
    %c118 = arith.constant 118 : index
    %c0_48 = arith.constant 0 : index
    %128 = vector.load %arg1[%c118, %c0_48] : memref<296x128xf32, #tpu.memory_space<vmem>>, vector<1x128xf32>
    %129 = arith.truncf %125 : vector<36x2048xf32> to vector<36x2048xbf16>
    %c0_49 = arith.constant 0 : index
    %c0_50 = arith.constant 0 : index
    %130 = vector.load %arg7[%c0_49, %c0_50] : memref<2048x128xbf16, #tpu.memory_space<vmem>>, vector<2048x128xbf16>
    %cst_51 = arith.constant dense<0.000000e+00> : vector<36x128xf32>
    %131 = tpu.matmul %129, %130, %cst_51 {dimension_numbers = #tpu.dot_dimension_numbers<[1], [0], [0], [1], [0, 0, 1, 1], [], []>} : vector<36x2048xbf16>, vector<2048x128xbf16>, vector<36x128xf32> -> vector<36x128xf32>
    %132 = vector.broadcast %128 : vector<1x128xf32> to vector<36x128xf32>
    %133 = arith.addf %131, %132 : vector<36x128xf32>
    %cst_52 = arith.constant dense<0xFF800000> : vector<36xf32>
    %134 = vector.multi_reduction <maximumf>, %133, %cst_52 [1] : vector<36x128xf32> to vector<36xf32>
    %135 = vector.shape_cast %134 : vector<36xf32> to vector<36x1xf32>
    %cst_53 = arith.constant 0.000000e+00 : f32
    %136 = vector.broadcast %cst_53 : f32 to vector<36x1xf32>
    %137 = arith.subf %136, %135 : vector<36x1xf32>
    %138 = math.exp %137 : vector<36x1xf32>
    %cst_54 = arith.constant 1.000000e+00 : f32
    %139 = vector.broadcast %cst_54 : f32 to vector<36x1xf32>
    %140 = arith.addf %139, %138 : vector<36x1xf32>
    %141 = tpu.reciprocal %140 {approx = true} : vector<36x1xf32> -> vector<36x1xf32>
    %c24_55 = arith.constant 24 : index
    %c0_56 = arith.constant 0 : index
    %142 = vector.load %arg1[%c24_55, %c0_56] : memref<296x128xf32, #tpu.memory_space<vmem>>, vector<36x6xf32>
    %c104 = arith.constant 104 : index
    %c0_57 = arith.constant 0 : index
    %143 = vector.load %arg1[%c104, %c0_57] : memref<296x128xf32, #tpu.memory_space<vmem>>, vector<6x36xf32>
    %144 = vector.broadcast %141 : vector<36x1xf32> to vector<36x6xf32>
    %145 = arith.mulf %144, %142 : vector<36x6xf32>
    %cst_58 = arith.constant dense<0.000000e+00> : vector<6x6xf32>
    %146 = tpu.matmul %143, %145, %cst_58 {dimension_numbers = #tpu.dot_dimension_numbers<[1], [0], [0], [1], [0, 0, 1, 1], [], []>} : vector<6x36xf32>, vector<36x6xf32>, vector<6x6xf32> -> vector<6x6xf32>
    %147 = tpu.iota {dimensions = array<i32: 0>} : vector<6x6xi32>
    %148 = tpu.iota {dimensions = array<i32: 1>} : vector<6x6xi32>
    %149 = arith.cmpi eq, %147, %148 : vector<6x6xi32>
    %cst_59 = arith.constant 0.000000e+00 : f32
    %150 = vector.broadcast %cst_59 : f32 to vector<6x6xf32>
    %151 = arith.select %149, %150, %146 : vector<6x6xi1>, vector<6x6xf32>
    %c0_60 = arith.constant 0 : index
    %c0_61 = arith.constant 0 : index
    %152 = vector.load %arg5[%c0_60, %c0_61] : memref<6x6xf32, #tpu.memory_space<vmem>>, vector<6x6xf32>
    tpu.vector_store %arg5[%c0_60, %c0_61], %151 {strides = array<i32>} : memref<6x6xf32, #tpu.memory_space<vmem>>, vector<6x6xf32>,
    return
  }
}

</mosaic_0001>

<bundles_post_ra>
// kernel: _lambda_.1
= control target key start
LH: loop header
LB: loop body
LE: loop exit
PB: predicated region body
PF: predicated region fallthrough
CT: control target
= control target key end

     0   :  { %10 = vsyncpa [#allocation6], 0  ;;  %s5971_s18 = smov [#allocation5]   ;;  %s8022_s0 = inlined_call_operand.vmem [shape: f32[16,8], index: 0, kind: input, shape index: {}]   ;;  %s8023_s1 = inlined_call_operand.vmem [shape: f32[296,128], index: 1, kind: input, shape index: {}]   ;;  %s8024_s2 = inlined_call_operand.hbm [shape: f32[1,2048], index: 2, kind: input, shape index: {}]   ;;  %s8025_s3 = inlined_call_operand.vmem [shape: bf16[55,4096], index: 3, kind: input, shape index: {}]   ;;  %s8026_s4 = inlined_call_operand.hbm [shape: bf16[2048,128], index: 4, kind: input, shape index: {}]   ;;  %s8027_s5 = inlined_call_operand.vmem [shape: f32[6,6], index: 5, kind: output, shape index: {}]  }
   0x1   :  { %s21_s19 = sshll.u32 %s5971_s18, 4  ;;  %s5921_s22 = scalar_lea.hbm %s8024_s2, 256  ;;  %s22_s19 = int_to_ptr.vmem [resolvable:$true] %s21_s19 }
   0x2   :  { %p5922_p0 = scmp.ne.s32.totalorder %s8024_s2, %s5921_s22  ;;  %p5925_p1 = scmp.lt.u32.totalorder %s5921_s22, %s8024_s2 }
   0x4   :  { %p5927_p2 = pnand %p5925_p1, %p5922_p0 }
   0x6   :  { %5930 = shalt.err (!%p5927_p2)
}
   0x7   :  { %s5931_s27 = scalar_lea.vmem %s22_s19, 256  ;;  %p5936_p4 = scmp.lt.s32.totalorder %s22_s19, %s22_s19 }
   0x8   :  { %p5932_p3 = scmp.ne.s32.totalorder %s22_s19, %s5931_s27  ;;  %p5937_p5 = scmp.lt.s32.totalorder %s5931_s27, %s5931_s27 }
   0xa   :  { %p5938_p6 = por %p5937_p5, %p5936_p4 }
   0xc   :  { %p5939_p7 = pnand %p5938_p6, %p5932_p3 }
   0xe   :  { %5942 = shalt.err (!%p5939_p7)
}
   0xf   :  { %24 = dma.hbm_to_vmem [thread:$0]  %s8024_s2, 256, %s22_s19, [#allocation6]  }
  0x10   :  { %5965 = dma.done.wait [#allocation6], 256  }
  0x11   :  { %5966 = vsyncadd [#allocation6], 4294967040  ;;  %v6027_v0 = vld [vmem:[%s8025_s3] sm:$0xff]  ;;  %v6032_v1 = vld [vmem:[%s8025_s3 + $0x8] sm:$0xff]  ;;  %vm5973_vm0 = vmmov 0  }
  0x12   :  { %v6037_v2 = vld [vmem:[%s8025_s3 + $0x10] sm:$0xff]  ;;  %v6042_v3 = vld [vmem:[%s8025_s3 + $0x18] sm:$0xff]  ;;  %v6047_v4 = vld [vmem:[%s8025_s3 + $0x20] sm:$0xff] }
  0x13   :  { %v6052_v5 = vld [vmem:[%s8025_s3 + $0x28] sm:$0xff]  ;;  %v6057_v6 = vld [vmem:[%s8025_s3 + $0x30] sm:$0xff]  ;;  %v6062_v7 = vld [vmem:[%s8025_s3 + $0x38] sm:$0xff] }
  0x14   :  { %8111 = vst [vmem:[#allocation15_spill] sm:$0xff] %v6057_v6  ;;  %8112 = vst [vmem:[#allocation16_spill] sm:$0xff] %v6062_v7  ;;  %v6067_v8 = vld [vmem:[%s8025_s3 + $0x40] sm:$0xff]  ;;  %v6072_v9 = vld [vmem:[%s8025_s3 + $0x48] sm:$0xff] }
  0x15   :  { %8113 = vst [vmem:[#allocation17_spill] sm:$0xff] %v6067_v8  ;;  %8114 = vst [vmem:[#allocation18_spill] sm:$0xff] %v6072_v9  ;;  %v6077_v10 = vld [vmem:[%s8025_s3 + $0x50] sm:$0xff]  ;;  %v6082_v11 = vld [vmem:[%s8025_s3 + $0x58] sm:$0xff] }
  0x16   :  { %8115 = vst [vmem:[#allocation19_spill] sm:$0xff] %v6077_v10  ;;  %8116 = vst [vmem:[#allocation20_spill] sm:$0xff] %v6082_v11  ;;  %v6087_v12 = vld [vmem:[%s8025_s3 + $0x60] sm:$0xff]  ;;  %v6092_v13 = vld [vmem:[%s8025_s3 + $0x68] sm:$0xff] }
  0x17   :  { %8117 = vst [vmem:[#allocation21_spill] sm:$0xff] %v6087_v12  ;;  %8118 = vst [vmem:[#allocation22_spill] sm:$0xff] %v6092_v13  ;;  %v6097_v14 = vld [vmem:[%s8025_s3 + $0x70] sm:$0xff]  ;;  %v6102_v15 = vld [vmem:[%s8025_s3 + $0x78] sm:$0xff] }
  0x18   :  { %8119 = vst [vmem:[#allocation23_spill] sm:$0xff] %v6097_v14  ;;  %8120 = vst [vmem:[#allocation24_spill] sm:$0xff] %v6102_v15  ;;  %v6107_v16 = vld [vmem:[%s8025_s3 + $0x80] sm:$0xff]  ;;  %v6112_v17 = vld [vmem:[%s8025_s3 + $0x88] sm:$0xff] }
  0x19   :  { %v6117_v18 = vld [vmem:[%s8025_s3 + $0x90] sm:$0xff]  ;;  %v6122_v19 = vld [vmem:[%s8025_s3 + $0x98] sm:$0xff]  ;;  %v6127_v20 = vld [vmem:[%s8025_s3 + $0xa0] sm:$0xff] }
  0x1a   :  { %v6132_v21 = vld [vmem:[%s8025_s3 + $0xa8] sm:$0xff]  ;;  %v6137_v22 = vld [vmem:[%s8025_s3 + $0xb0] sm:$0xff]  ;;  %v6142_v23 = vld [vmem:[%s8025_s3 + $0xb8] sm:$0xff] }
  0x1b   :  { %8121 = vst [vmem:[#allocation25_spill] sm:$0xff] %v6137_v22  ;;  %8122 = vst [vmem:[#allocation26_spill] sm:$0xff] %v6142_v23  ;;  %v6147_v24 = vld [vmem:[%s8025_s3 + $0xc0] sm:$0xff]  ;;  %v6152_v25 = vld [vmem:[%s8025_s3 + $0xc8] sm:$0xff] }
  0x1c   :  { %8123 = vst [vmem:[#allocation27_spill] sm:$0xff] %v6147_v24  ;;  %8124 = vst [vmem:[#allocation28_spill] sm:$0xff] %v6152_v25  ;;  %v6157_v26 = vld [vmem:[%s8025_s3 + $0xd0] sm:$0xff]  ;;  %v6162_v27 = vld [vmem:[%s8025_s3 + $0xd8] sm:$0xff]  ;;  %v8094_v25 = vmov 0.0  }
  0x1d   :  { %8125 = vst [vmem:[#allocation29_spill] sm:$0xff] %v6157_v26  ;;  %8126 = vst [vmem:[#allocation30_spill] sm:$0xff] %v6162_v27  ;;  %v6167_v28 = vld [vmem:[%s8025_s3 + $0xe0] sm:$0xff]  ;;  %v6172_v29 = vld [vmem:[%s8025_s3 + $0xe8] sm:$0xff]  ;;  %5363 = vmatprep.subr.bf16.mxu0 %v8094_v25  ;;  %5365 = vmatprep.mubr.msk.bf16.mxu0 %vm5973_vm0, %v8094_v25 }
  0x1e   :  { %8127 = vst [vmem:[#allocation31_spill] sm:$0xff] %v6167_v28  ;;  %8128 = vst [vmem:[#allocation32_spill] sm:$0xff] %v6172_v29  ;;  %v6177_v30 = vld [vmem:[%s8025_s3 + $0xf0] sm:$0xff]  ;;  %v6182_v31 = vld [vmem:[%s8025_s3 + $0xf8] sm:$0xff] }
  0x1f   :  { %8129 = vst [vmem:[#allocation33_spill] sm:$0xff] %v6177_v30  ;;  %8130 = vst [vmem:[#allocation34_spill] sm:$0xff] %v6182_v31  ;;  %v6187_v32 = vld [vmem:[%s8025_s3 + $0x100] sm:$0xff]  ;;  %v6192_v33 = vld [vmem:[%s8025_s3 + $0x108] sm:$0xff] }
  0x20   :  { %v6197_v34 = vld [vmem:[%s8025_s3 + $0x110] sm:$0xff]  ;;  %v6202_v35 = vld [vmem:[%s8025_s3 + $0x118] sm:$0xff]  ;;  %v6207_v36 = vld [vmem:[%s8025_s3 + $0x120] sm:$0xff] }
  0x21   :  { %v6212_v37 = vld [vmem:[%s8025_s3 + $0x128] sm:$0xff]  ;;  %v6217_v38 = vld [vmem:[%s8025_s3 + $0x130] sm:$0xff]  ;;  %v6222_v39 = vld [vmem:[%s8025_s3 + $0x138] sm:$0xff] }
  0x22   :  { %8131 = vst [vmem:[#allocation35_spill] sm:$0xff] %v6217_v38  ;;  %8132 = vst [vmem:[#allocation36_spill] sm:$0xff] %v6222_v39  ;;  %v6227_v40 = vld [vmem:[%s8025_s3 + $0x140] sm:$0xff]  ;;  %v6232_v41 = vld [vmem:[%s8025_s3 + $0x148] sm:$0xff] }
  0x23   :  { %8133 = vst [vmem:[#allocation37_spill] sm:$0xff] %v6227_v40  ;;  %8134 = vst [vmem:[#allocation38_spill] sm:$0xff] %v6232_v41  ;;  %v6237_v42 = vld [vmem:[%s8025_s3 + $0x150] sm:$0xff]  ;;  %v6242_v43 = vld [vmem:[%s8025_s3 + $0x158] sm:$0xff] }
  0x24   :  { %8135 = vst [vmem:[#allocation39_spill] sm:$0xff] %v6237_v42  ;;  %8136 = vst [vmem:[#allocation40_spill] sm:$0xff] %v6242_v43  ;;  %v6247_v44 = vld [vmem:[%s8025_s3 + $0x160] sm:$0xff]  ;;  %v6252_v45 = vld [vmem:[%s8025_s3 + $0x168] sm:$0xff] }
  0x25   :  { %8137 = vst [vmem:[#allocation41_spill] sm:$0xff] %v6247_v44  ;;  %8138 = vst [vmem:[#allocation42_spill] sm:$0xff] %v6252_v45  ;;  %v6257_v46 = vld [vmem:[%s8025_s3 + $0x170] sm:$0xff]  ;;  %v6262_v47 = vld [vmem:[%s8025_s3 + $0x178] sm:$0xff] }
  0x26   :  { %8139 = vst [vmem:[#allocation43_spill] sm:$0xff] %v6257_v46  ;;  %8140 = vst [vmem:[#allocation44_spill] sm:$0xff] %v6262_v47  ;;  %v6267_v48 = vld [vmem:[%s8025_s3 + $0x180] sm:$0xff]  ;;  %v6272_v49 = vld [vmem:[%s8025_s3 + $0x188] sm:$0xff] }
  0x27   :  { %v6277_v50 = vld [vmem:[%s8025_s3 + $0x190] sm:$0xff]  ;;  %v6282_v51 = vld [vmem:[%s8025_s3 + $0x198] sm:$0xff]  ;;  %v6287_v52 = vld [vmem:[%s8025_s3 + $0x1a0] sm:$0xff] }
  0x28   :  { %v6292_v53 = vld [vmem:[%s8025_s3 + $0x1a8] sm:$0xff]  ;;  %v6297_v54 = vld [vmem:[%s8025_s3 + $0x1b0] sm:$0xff]  ;;  %v6302_v55 = vld [vmem:[%s8025_s3 + $0x1b8] sm:$0xff] }
  0x29   :  { %8141 = vst [vmem:[#allocation45_spill] sm:$0xff] %v6297_v54  ;;  %8142 = vst [vmem:[#allocation46_spill] sm:$0xff] %v6302_v55  ;;  %v6307_v56 = vld [vmem:[%s8025_s3 + $0x1c0] sm:$0xff]  ;;  %v6312_v57 = vld [vmem:[%s8025_s3 + $0x1c8] sm:$0xff] }
  0x2a   :  { %8143 = vst [vmem:[#allocation47_spill] sm:$0xff] %v6307_v56  ;;  %8144 = vst [vmem:[#allocation48_spill] sm:$0xff] %v6312_v57  ;;  %v6317_v58 = vld [vmem:[%s8025_s3 + $0x1d0] sm:$0xff]  ;;  %v6322_v59 = vld [vmem:[%s8025_s3 + $0x1d8] sm:$0xff] }
  0x2b   :  { %8145 = vst [vmem:[#allocation49_spill] sm:$0xff] %v6317_v58  ;;  %8146 = vst [vmem:[#allocation50_spill] sm:$0xff] %v6322_v59  ;;  %v6327_v60 = vld [vmem:[%s8025_s3 + $0x1e0] sm:$0xff]  ;;  %v6332_v61 = vld [vmem:[%s8025_s3 + $0x1e8] sm:$0xff] }
  0x2c   :  { %8147 = vst [vmem:[#allocation51_spill] sm:$0xff] %v6327_v60  ;;  %8148 = vst [vmem:[#allocation52_spill] sm:$0xff] %v6332_v61  ;;  %v6337_v62 = vld [vmem:[%s8025_s3 + $0x1f0] sm:$0xff]  ;;  %v6342_v63 = vld [vmem:[%s8025_s3 + $0x1f8] sm:$0xff] }
  0x2d   :  { %8149 = vst [vmem:[#allocation53_spill] sm:$0xff] %v6337_v62  ;;  %8150 = vst [vmem:[#allocation54_spill] sm:$0xff] %v6342_v63  ;;  %v6347_v47 = vld [vmem:[%s8025_s3 + $0x200] sm:$0xff]  ;;  %v6352_v46 = vld [vmem:[%s8025_s3 + $0x208] sm:$0xff] }
  0x2e   :  { %v6357_v15 = vld [vmem:[%s8025_s3 + $0x210] sm:$0xff]  ;;  %v6362_v62 = vld [vmem:[%s8025_s3 + $0x218] sm:$0xff]  ;;  %v6367_v63 = vld [vmem:[%s8025_s3 + $0x220] sm:$0xff] }
  0x2f   :  { %v6372_v31 = vld [vmem:[%s8025_s3 + $0x228] sm:$0xff]  ;;  %v6377_v14 = vld [vmem:[%s8025_s3 + $0x230] sm:$0xff]  ;;  %v6382_v30 = vld [vmem:[%s8025_s3 + $0x238] sm:$0xff] }
  0x30   :  { %8151 = vst [vmem:[#allocation55_spill] sm:$0xff] %v6377_v14  ;;  %8152 = vst [vmem:[#allocation56_spill] sm:$0xff] %v6382_v30  ;;  %v6387_v45 = vld [vmem:[%s8025_s3 + $0x240] sm:$0xff]  ;;  %v6392_v61 = vld [vmem:[%s8025_s3 + $0x248] sm:$0xff] }
  0x31   :  { %8153 = vst [vmem:[#allocation57_spill] sm:$0xff] %v6387_v45  ;;  %8154 = vst [vmem:[#allocation58_spill] sm:$0xff] %v6392_v61  ;;  %v6397_v44 = vld [vmem:[%s8025_s3 + $0x250] sm:$0xff]  ;;  %v6402_v60 = vld [vmem:[%s8025_s3 + $0x258] sm:$0xff] }
  0x32   :  { %8155 = vst [vmem:[#allocation59_spill] sm:$0xff] %v6397_v44  ;;  %8156 = vst [vmem:[#allocation60_spill] sm:$0xff] %v6402_v60  ;;  %v6407_v13 = vld [vmem:[%s8025_s3 + $0x260] sm:$0xff]  ;;  %v6412_v29 = vld [vmem:[%s8025_s3 + $0x268] sm:$0xff] }
  0x33   :  { %8157 = vst [vmem:[#allocation61_spill] sm:$0xff] %v6407_v13  ;;  %8158 = vst [vmem:[#allocation62_spill] sm:$0xff] %v6412_v29  ;;  %v6417_v12 = vld [vmem:[%s8025_s3 + $0x270] sm:$0xff]  ;;  %v6422_v28 = vld [vmem:[%s8025_s3 + $0x278] sm:$0xff] }
  0x34   :  { %8159 = vst [vmem:[#allocation63_spill] sm:$0xff] %v6417_v12  ;;  %8160 = vst [vmem:[#allocation64_spill] sm:$0xff] %v6422_v28  ;;  %v6427_v60 = vld [vmem:[%s8025_s3 + $0x280] sm:$0xff]  ;;  %v6432_v13 = vld [vmem:[%s8025_s3 + $0x288] sm:$0xff] }
  0x35   :  { %v6437_v29 = vld [vmem:[%s8025_s3 + $0x290] sm:$0xff]  ;;  %v6442_v12 = vld [vmem:[%s8025_s3 + $0x298] sm:$0xff]  ;;  %v6447_v28 = vld [vmem:[%s8025_s3 + $0x2a0] sm:$0xff] }
  0x36   :  { %v6452_v44 = vld [vmem:[%s8025_s3 + $0x2a8] sm:$0xff]  ;;  %v6457_v43 = vld [vmem:[%s8025_s3 + $0x2b0] sm:$0xff]  ;;  %v6462_v59 = vld [vmem:[%s8025_s3 + $0x2b8] sm:$0xff] }
  0x37   :  { %8161 = vst [vmem:[#allocation65_spill] sm:$0xff] %v6457_v43  ;;  %8162 = vst [vmem:[#allocation66_spill] sm:$0xff] %v6462_v59  ;;  %v6467_v42 = vld [vmem:[%s8025_s3 + $0x2c0] sm:$0xff]  ;;  %v6472_v58 = vld [vmem:[%s8025_s3 + $0x2c8] sm:$0xff] }
  0x38   :  { %8163 = vst [vmem:[#allocation67_spill] sm:$0xff] %v6467_v42  ;;  %8164 = vst [vmem:[#allocation68_spill] sm:$0xff] %v6472_v58  ;;  %v6477_v11 = vld [vmem:[%s8025_s3 + $0x2d0] sm:$0xff]  ;;  %v6482_v27 = vld [vmem:[%s8025_s3 + $0x2d8] sm:$0xff] }
  0x39   :  { %8165 = vst [vmem:[#allocation69_spill] sm:$0xff] %v6477_v11  ;;  %8166 = vst [vmem:[#allocation70_spill] sm:$0xff] %v6482_v27  ;;  %v6487_v10 = vld [vmem:[%s8025_s3 + $0x2e0] sm:$0xff]  ;;  %v6492_v26 = vld [vmem:[%s8025_s3 + $0x2e8] sm:$0xff] }
  0x3a   :  { %8167 = vst [vmem:[#allocation71_spill] sm:$0xff] %v6487_v10  ;;  %8168 = vst [vmem:[#allocation72_spill] sm:$0xff] %v6492_v26  ;;  %v6497_v61 = vld [vmem:[%s8025_s3 + $0x2f0] sm:$0xff]  ;;  %v6502_v11 = vld [vmem:[%s8025_s3 + $0x2f8] sm:$0xff] }
  0x3b   :  { %8169 = vst [vmem:[#allocation73_spill] sm:$0xff] %v6497_v61  ;;  %8170 = vst [vmem:[#allocation74_spill] sm:$0xff] %v6502_v11  ;;  %v6507_v27 = vld [vmem:[%s8025_s3 + $0x300] sm:$0xff]  ;;  %v6512_v10 = vld [vmem:[%s8025_s3 + $0x308] sm:$0xff] }
  0x3c   :  { %v6517_v26 = vld [vmem:[%s8025_s3 + $0x310] sm:$0xff]  ;;  %v6522_v61 = vld [vmem:[%s8025_s3 + $0x318] sm:$0xff]  ;;  %v6527_v11 = vld [vmem:[%s8025_s3 + $0x320] sm:$0xff] }
  0x3d   :  { %v6532_v58 = vld [vmem:[%s8025_s3 + $0x328] sm:$0xff]  ;;  %v6537_v45 = vld [vmem:[%s8025_s3 + $0x330] sm:$0xff]  ;;  %v6542_v42 = vld [vmem:[%s8025_s3 + $0x338] sm:$0xff] }
  0x3e   :  { %8171 = vst [vmem:[#allocation75_spill] sm:$0xff] %v6537_v45  ;;  %8172 = vst [vmem:[#allocation76_spill] sm:$0xff] %v6542_v42  ;;  %v6547_v41 = vld [vmem:[%s8025_s3 + $0x340] sm:$0xff]  ;;  %v6552_v57 = vld [vmem:[%s8025_s3 + $0x348] sm:$0xff] }
  0x3f   :  { %8173 = vst [vmem:[#allocation77_spill] sm:$0xff] %v6547_v41  ;;  %8174 = vst [vmem:[#allocation78_spill] sm:$0xff] %v6552_v57  ;;  %v6557_v40 = vld [vmem:[%s8025_s3 + $0x350] sm:$0xff]  ;;  %v6562_v56 = vld [vmem:[%s8025_s3 + $0x358] sm:$0xff] }
  0x40   :  { %8175 = vst [vmem:[#allocation79_spill] sm:$0xff] %v6557_v40  ;;  %8176 = vst [vmem:[#allocation80_spill] sm:$0xff] %v6562_v56  ;;  %v6567_v9 = vld [vmem:[%s8025_s3 + $0x360] sm:$0xff]  ;;  %v6572_v41 = vld [vmem:[%s8025_s3 + $0x368] sm:$0xff] }
  0x41   :  { %8177 = vst [vmem:[#allocation81_spill] sm:$0xff] %v6567_v9  ;;  %8178 = vst [vmem:[#allocation82_spill] sm:$0xff] %v6572_v41  ;;  %v6577_v57 = vld [vmem:[%s8025_s3 + $0x370] sm:$0xff]  ;;  %v6582_v40 = vld [vmem:[%s8025_s3 + $0x378] sm:$0xff] }
  0x42   :  { %8179 = vst [vmem:[#allocation83_spill] sm:$0xff] %v6577_v57  ;;  %8180 = vst [vmem:[#allocation84_spill] sm:$0xff] %v6582_v40  ;;  %v308_v56 = vld [vmem:[%s8022_s0] sm:$0xff]  ;;  %v309_v9 = vld [vmem:[%s8022_s0 + $0x8] sm:$0xff] }
  0x43   :  { %v305_v41 = vld [vmem:[%s8023_s1] sm:$0xff]  ;;  %v310_v57 = vpack.c.bf16 %v309_v9, %v308_v56  ;;  %v306_v40 = vld [vmem:[%s8023_s1 + $0x8] sm:$0xff]  ;;  %v5527_v8 = vpack.i.bf16 %v309_v9, %v308_v56 }
  0x44   :  { %292 = vsyncadd [#allocation4], 14336  ;;  %v6599_v24 = vpack.c.bf16 %v306_v40, %v305_v41  ;;  %5369 = vmatprep.subr.bf16.mxu1 %v8094_v25  ;;  %5371 = vmatprep.mubr.msk.bf16.mxu1 %vm5973_vm0, %v8094_v25  ;;  %vm311_vm1 = vcmask 130048   ;;  %s5974_s0 = smov 8   ;;  %v368_v9 = vld [vmem:[%s8023_s1 + $0x78] sm:$0xff]  ;;  %v369_v40 = vld [vmem:[%s8023_s1 + $0x80] sm:$0xff] }
  0x45   :  { %5364 = vmatpush3.bf16.msra.mxu0 %v310_v57  ;;  %5528 = vrot.lane.b32.xlu0 %v5527_v8, %s5974_s0  ;;  %v370_v41 = vpack.c.bf16 %v369_v40, %v368_v9  ;;  %vm364_vm2 = vcmask 64512   ;;  %v4832_v9 = vld [vmem:[%s8023_s1 + $0x70] ss:$0 sm:$0xff]  ;;  %s5975_s12 = smov 10   ;;  %vm498_vm3 = vcmask 1041408   ;;  %vm480_vm4 = vcmask 80896  }
  0x46   :  { %5375 = vmatprep.subr.bf16.mxu0 %v8094_v25  ;;  %vm494_vm5 = vcmask 162816   ;;  %s5976_s0 = smov 25   ;;  %vm627_vm6 = vcmask 1040384   ;;  %vm603_vm7 = vcmask 203776   ;;  %vm623_vm8 = vcmask 408576   ;;  %s5977_s10 = smov 40  }
  0x47   :  { %5370 = vmatpush3.bf16.msra.mxu1 %v370_v41  ;;  %vm732_vm9 = vcmask 326656   ;;  %vm756_vm10 = vcmask 654336   ;;  %vm811_vm11 = vcmask 449536   ;;  %s5978_s7 = smov [#allocation3]   ;;  %s5943_s11 = scalar_lea.hbm %s8026_s4, 16384 }
  0x48   :  { %5366 = vmatmul.mubr.msk.bf16.vlgmr.msra.gmra.mrb[0].mxu0 %vm311_vm1, %v6599_v24  ;;  %5381 = vmatprep.subr.bf16.mxu1 %v8094_v25  ;;  %s301_s8 = sshll.u32 %s5978_s7, 4  ;;  %p5944_p8 = scmp.ne.s32.totalorder %s8026_s4, %s5943_s11  ;;  %s302_s8 = int_to_ptr.vmem [resolvable:$true] %s301_s8 }
  0x49   :  { %5377 = vmatprep.mubr.msk.bf16.mxu0 %vm5973_vm0, %v8094_v25  ;;  %p5947_p9 = scmp.lt.u32.totalorder %s5943_s11, %s8026_s4 }
  0x4b   :  { %p5949_p10 = pnand %p5947_p9, %p5944_p8 }
  0xb7   :  { %v5529_v8 = vpop.permute.xlu0 %5528 }
  0xb8   :  { %v5531_v56 = vunpack.i.h.bf16 %v5529_v8  ;;  %v5530_v57 = vunpack.i.l.bf16 %v5529_v8 }
 0x11b   :  { %v349_v42 = vpop.f32.mrb[0].mxu0 }
 0x11c   :  { %v5367_v45 = vpop.f32.mrb[1].mxu0  ;;  %v365_v59 = vsel %vm364_vm2, %v349_v42, %v5530_v57  ;;  %v484_v57 = vld [vmem:[%s8023_s1 + $0x88] sm:$0xff] }
 0x11d   :  { %v352_v30 = vpop.f32.mrb[2].mxu0 }
 0x11e   :  { %v366_v14 = vsel %vm364_vm2, %v352_v30, %v5531_v56  ;;  %v5368_v43 = vpop.f32.mrb[3].mxu0 }
 0x11f   :  { %v367_v39 = vpack.c.bf16 %v366_v14, %v365_v59 }
 0x121   :  { %5372 = vmatmul.mubr.msk.bf16.vlgmr.msra.gmra.mrb[0].mxu1 %vm311_vm1, %v367_v39 }
 0x122   :  { %5385 = vmatprep.mubr.msk.bf16.mxu1 %vm5973_vm0, %v8094_v25 }
 0x1f4   :  { %v413_v40 = vpop.f32.mrb[0].mxu1 }
 0x1f5   :  { %v414_v41 = vadd.f32 %v4832_v9, %v413_v40  ;;  %v5373_v8 = vpop.f32.mrb[1].mxu1 }
 0x1f6   :  { %v416_v55 = vpop.f32.mrb[2].mxu1  ;;  %v486_v8 = vld [vmem:[%s8023_s1 + $0x98] sm:$0xf] }
 0x1f7   :  { %v420_v38 = vsub.f32 0.0, %v414_v41  ;;  %v417_v45 = vadd.f32 %v4832_v9, %v416_v55  ;;  %v5374_v54 = vpop.f32.mrb[3].mxu1  ;;  %v485_v55 = vld [vmem:[%s8023_s1 + $0x90] sm:$0xff] }
 0x1f8   :  { %v487_v54 = vpack.c.bf16 %v485_v55, %v484_v57 }
 0x1f9   :  { %v422_v42 = vmul.f32 1.442695, %v420_v38  ;;  %v421_v30 = vsub.f32 0.0, %v417_v45  ;;  %v488_v45 = vpack.c.bf16 %v486_v8, %v486_v8 }
 0x1fa   :  { %5382 = vmatpush3.bf16.msra.mxu1 %v487_v54 }
 0x1fb   :  { %5547 = vpow2.f32 %v422_v42  ;;  %v424_v14 = vmul.f32 1.442695, %v421_v30  ;;  %5383 = vmatprep.subr.bf16.mxu1 %v8094_v25  ;;  %v500_v42 = vsel %vm498_vm3, %v488_v45, 0 }
 0x1fd   :  { %5549 = vpow2.f32 %v424_v14 }
 0x1fe   :  { %5384 = vmatpush3.bf16.msra.mxu1 %v500_v42 }
 0x1ff   :  { %5395 = vmatprep.subr.bf16.mxu1 %v8094_v25 }
 0x205   :  { %v5548_v39 = vpop.eup %5547 }
 0x206   :  { %v426_v43 = vadd.f32 1.0, %v5548_v39 }
 0x207   :  { %v5550_v59 = vpop.eup %5549 }
 0x208   :  { %v427_v56 = vadd.f32 1.0, %v5550_v59  ;;  %5551 = vrcp.f32 %v426_v43 }
 0x20a   :  { %5553 = vrcp.f32 %v427_v56 }
 0x212   :  { %v5552_v38 = vpop.eup %5551 }
 0x214   :  { %v5554_v9 = vpop.eup %5553 }
 0x215   :  { %v5532_v40 = vpack.i.bf16 %v5554_v9, %v5552_v38  ;;  %v430_v41 = vpack.c.bf16 %v5554_v9, %v5552_v38  ;;  %v4835_v9 = vld [vmem:[%s8023_s1 + $0x71] ss:$0 sm:$0xff] }
 0x217   :  { %5533 = vrot.lane.b32.xlu0 %v5532_v40, %s5975_s12  ;;  %5376 = vmatpush3.bf16.msra.mxu0 %v430_v41 }
 0x218   :  { %5389 = vmatprep.subr.bf16.mxu0 %v8094_v25 }
 0x21a   :  { %5378 = vmatmul.mubr.msk.bf16.vlgmr.msra.gmra.mrb[4].mxu0 %vm311_vm1, %v6599_v24 }
 0x21b   :  { %5391 = vmatprep.mubr.msk.bf16.mxu0 %vm5973_vm0, %v8094_v25 }
 0x289   :  { %v5534_v30 = vpop.permute.xlu0 %5533 }
 0x28a   :  { %v5536_v39 = vunpack.i.h.bf16 %v5534_v30  ;;  %v5535_v43 = vunpack.i.l.bf16 %v5534_v30 }
 0x2ed   :  { %v465_v14 = vpop.f32.mrb[4].mxu0 }
 0x2ee   :  { %v5379_v59 = vpop.f32.mrb[5].mxu0  ;;  %v481_v57 = vsel %vm480_vm4, %v465_v14, %v5535_v43 }
 0x2ef   :  { %v468_v56 = vpop.f32.mrb[6].mxu0 }
 0x2f0   :  { %v482_v55 = vsel %vm480_vm4, %v468_v56, %v5536_v39  ;;  %v5380_v54 = vpop.f32.mrb[7].mxu0 }
 0x2f1   :  { %v483_v38 = vpack.c.bf16 %v482_v55, %v481_v57 }
 0x2f3   :  { %5386 = vmatmul.mubr.msk.bf16.vlgmr.msra.gmra.mrb[4].mxu1 %vm494_vm5, %v483_v38  ;;  %v607_v38 = vld [vmem:[%s8023_s1 + $0xa0] sm:$0xff] }
 0x2f4   :  { %5403 = vmatprep.mubr.msk.bf16.mxu1 %vm5973_vm0, %v8094_v25 }
 0x3c6   :  { %v536_v40 = vpop.f32.mrb[4].mxu1 }
 0x3c7   :  { %v537_v41 = vadd.f32 %v4835_v9, %v536_v40  ;;  %v5387_v8 = vpop.f32.mrb[5].mxu1  ;;  %v609_v40 = vld [vmem:[%s8023_s1 + $0xb0] sm:$0xff] }
 0x3c8   :  { %v539_v45 = vpop.f32.mrb[6].mxu1  ;;  %v610_v8 = vld [vmem:[%s8023_s1 + $0xb8] sm:$0xff] }
 0x3c9   :  { %v543_v42 = vsub.f32 0.0, %v537_v41  ;;  %v540_v30 = vadd.f32 %v4835_v9, %v539_v45  ;;  %v5388_v59 = vpop.f32.mrb[7].mxu1  ;;  %v608_v9 = vld [vmem:[%s8023_s1 + $0xa8] sm:$0xff]  ;;  %v615_v45 = vpack.c.bf16 %v610_v8, %v609_v40 }
 0x3ca   :  { %v614_v41 = vpack.c.bf16 %v608_v9, %v607_v38 }
 0x3cb   :  { %v545_v14 = vmul.f32 1.442695, %v543_v42  ;;  %v544_v39 = vsub.f32 0.0, %v540_v30  ;;  %v611_v42 = vld [vmem:[%s8023_s1 + $0xc0] sm:$0xff]  ;;  %v612_v30 = vld [vmem:[%s8023_s1 + $0xc8] sm:$0xff] }
 0x3cc   :  { %5396 = vmatpush3.bf16.msra.mxu1 %v614_v41  ;;  %v616_v59 = vpack.c.bf16 %v612_v30, %v611_v42 }
 0x3cd   :  { %5555 = vpow2.f32 %v545_v14  ;;  %v547_v43 = vmul.f32 1.442695, %v544_v39  ;;  %5397 = vmatprep.subr.bf16.mxu1 %v8094_v25 }
 0x3cf   :  { %5557 = vpow2.f32 %v547_v43 }
 0x3d0   :  { %5398 = vmatpush3.bf16.msra.mxu1 %v615_v45 }
 0x3d1   :  { %5399 = vmatprep.subr.bf16.mxu1 %v8094_v25 }
 0x3d4   :  { %5400 = vmatpush3.bf16.msra.mxu1 %v616_v59 }
 0x3d5   :  { %5401 = vmatprep.subr.bf16.mxu1 %v8094_v25 }
 0x3d7   :  { %v5556_v56 = vpop.eup %5555 }
 0x3d8   :  { %v549_v57 = vadd.f32 1.0, %v5556_v56 }
 0x3d9   :  { %v5558_v55 = vpop.eup %5557 }
 0x3da   :  { %v550_v54 = vadd.f32 1.0, %v5558_v55  ;;  %5559 = vrcp.f32 %v549_v57  ;;  %v613_v57 = vld [vmem:[%s8023_s1 + $0xd0] sm:$0x3] }
 0x3db   :  { %v617_v55 = vpack.c.bf16 %v613_v57, %v613_v57 }
 0x3dc   :  { %5561 = vrcp.f32 %v550_v54 }
 0x3dd   :  { %v629_v54 = vsel %vm627_vm6, %v617_v55, 0 }
 0x3de   :  { %5402 = vmatpush3.bf16.msra.mxu1 %v629_v54 }
 0x3df   :  { %5427 = vmatprep.subr.bf16.mxu1 %v8094_v25 }
 0x3e4   :  { %v5560_v14 = vpop.eup %5559 }
 0x3e6   :  { %v5562_v39 = vpop.eup %5561 }
 0x3e7   :  { %v5537_v43 = vpack.i.bf16 %v5562_v39, %v5560_v14  ;;  %v553_v56 = vpack.c.bf16 %v5562_v39, %v5560_v14  ;;  %v4838_v39 = vld [vmem:[%s8023_s1 + $0x72] ss:$0 sm:$0xff] }
 0x3e9   :  { %5538 = vrot.lane.b32.xlu1 %v5537_v43, %s5976_s0  ;;  %5390 = vmatpush3.bf16.msra.mxu0 %v553_v56 }
 0x3ea   :  { %5407 = vmatprep.subr.bf16.mxu0 %v8094_v25 }
 0x3ec   :  { %5392 = vmatmul.mubr.msk.bf16.vlgmr.msra.gmra.mrb[8].mxu0 %vm311_vm1, %v6599_v24 }
 0x3ed   :  { %5409 = vmatprep.mubr.msk.bf16.mxu0 %vm5973_vm0, %v8094_v25 }
 0x45b   :  { %v5539_v38 = vpop.permute.xlu1 %5538 }
 0x45c   :  { %v5541_v40 = vunpack.i.h.bf16 %v5539_v38  ;;  %v5540_v41 = vunpack.i.l.bf16 %v5539_v38 }
 0x4bf   :  { %v588_v9 = vpop.f32.mrb[8].mxu0 }
 0x4c0   :  { %v5393_v8 = vpop.f32.mrb[9].mxu0  ;;  %v604_v42 = vsel %vm603_vm7, %v588_v9, %v5540_v41 }
 0x4c1   :  { %v591_v45 = vpop.f32.mrb[10].mxu0 }
 0x4c2   :  { %v605_v30 = vsel %vm603_vm7, %v591_v45, %v5541_v40  ;;  %v5394_v59 = vpop.f32.mrb[11].mxu0 }
 0x4c3   :  { %v606_v14 = vpack.c.bf16 %v605_v30, %v604_v42 }
 0x4c5   :  { %5404 = vmatmul.mubr.msk.bf16.vlgmr.msra.gmra.mrb[8].mxu1 %vm623_vm8, %v606_v14 }
 0x4c6   :  { %5429 = vmatprep.mubr.msk.bf16.mxu1 %vm5973_vm0, %v8094_v25 }
 0x598   :  { %v665_v43 = vpop.f32.mrb[8].mxu1 }
 0x599   :  { %v666_v56 = vadd.f32 %v4838_v39, %v665_v43  ;;  %v5405_v57 = vpop.f32.mrb[9].mxu1  ;;  %v736_v43 = vld [vmem:[%s8023_s1 + $0xd8] sm:$0xff] }
 0x59a   :  { %v668_v55 = vpop.f32.mrb[10].mxu1 }
 0x59b   :  { %v672_v54 = vsub.f32 0.0, %v666_v56  ;;  %v669_v38 = vadd.f32 %v4838_v39, %v668_v55  ;;  %v5406_v8 = vpop.f32.mrb[11].mxu1  ;;  %v737_v39 = vld [vmem:[%s8023_s1 + $0xe0] sm:$0xff] }
 0x59c   :  { %v746_v55 = vpack.c.bf16 %v737_v39, %v736_v43  ;;  %v739_v8 = vld [vmem:[%s8023_s1 + $0xf0] sm:$0xff] }
 0x59d   :  { %v674_v9 = vmul.f32 1.442695, %v672_v54  ;;  %v673_v40 = vsub.f32 0.0, %v669_v38  ;;  %v8181_v54 = vmov 0.0   ;;  %v738_v38 = vld [vmem:[%s8023_s1 + $0xe8] sm:$0xff] }
 0x59f   :  { %5563 = vpow2.f32 %v674_v9  ;;  %v676_v41 = vmul.f32 1.442695, %v673_v40  ;;  %v747_v9 = vpack.c.bf16 %v739_v8, %v738_v38  ;;  %v741_v40 = vld [vmem:[%s8023_s1 + $0x100] sm:$0xff] }
 0x5a1   :  { %5565 = vpow2.f32 %v676_v41 }
 0x5a9   :  { %v5564_v45 = vpop.eup %5563 }
 0x5aa   :  { %v678_v42 = vadd.f32 1.0, %v5564_v45  ;;  %v743_v45 = vld [vmem:[%s8023_s1 + $0x110] sm:$0xff] }
 0x5ab   :  { %v5566_v30 = vpop.eup %5565 }
 0x5ac   :  { %v679_v59 = vadd.f32 1.0, %v5566_v30  ;;  %5567 = vrcp.f32 %v678_v42  ;;  %v744_v30 = vld [vmem:[%s8023_s1 + $0x118] sm:$0xff] }
 0x5ae   :  { %5569 = vrcp.f32 %v679_v59  ;;  %v745_v59 = vld [vmem:[%s8023_s1 + $0x120] sm:$0xff] }
 0x5b6   :  { %v5568_v14 = vpop.eup %5567 }
 0x5b8   :  { %v5570_v25 = vpop.eup %5569 }
 0x5b9   :  { %v5542_v56 = vpack.i.bf16 %v5570_v25, %v5568_v14  ;;  %v682_v57 = vpack.c.bf16 %v5570_v25, %v5568_v14  ;;  %v740_v25 = vld [vmem:[%s8023_s1 + $0xf8] sm:$0xff]  ;;  %v750_v14 = vpack.c.bf16 %v745_v59, %v744_v30 }
 0x5ba   :  { %v748_v41 = vpack.c.bf16 %v741_v40, %v740_v25 }
 0x5bb   :  { %5543 = vrot.lane.b32.xlu1 %v5542_v56, %s5977_s10  ;;  %5408 = vmatpush3.bf16.msra.mxu0 %v682_v57 }
 0x5bc   :  { %5413 = vmatprep.subr.bf16.mxu0 %v8181_v54 }
 0x5be   :  { %5410 = vmatmul.mubr.msk.bf16.vlgmr.msra.gmra.mrb[12].mxu0 %vm311_vm1, %v6599_v24  ;;  %v742_v24 = vld [vmem:[%s8023_s1 + $0x108] sm:$0xff] }
 0x5bf   :  { %5414 = vmatpush3.bf16.msra.mxu0 %v746_v55  ;;  %5423 = vmatprep.mubr.msk.bf16.mxu0 %vm5973_vm0, %v8181_v54  ;;  %v749_v42 = vpack.c.bf16 %v743_v45, %v742_v24 }
 0x5c0   :  { %5415 = vmatprep.subr.bf16.mxu0 %v8181_v54 }
 0x5c3   :  { %5416 = vmatpush3.bf16.msra.mxu0 %v747_v9 }
 0x5c4   :  { %5417 = vmatprep.subr.bf16.mxu0 %v8181_v54 }
 0x5c7   :  { %5418 = vmatpush3.bf16.msra.mxu0 %v748_v41  ;;  %v4841_v41 = vld [vmem:[%s8023_s1 + $0x73] ss:$0 sm:$0xff] }
 0x5c8   :  { %5419 = vmatprep.subr.bf16.mxu0 %v8181_v54 }
 0x5cb   :  { %5420 = vmatpush3.bf16.msra.mxu0 %v749_v42 }
 0x5cc   :  { %5421 = vmatprep.subr.bf16.mxu0 %v8181_v54 }
 0x5cf   :  { %5422 = vmatpush3.bf16.msra.mxu0 %v750_v14 }
 0x62d   :  { %v5544_v43 = vpop.permute.xlu1 %5543 }
 0x62e   :  { %v5546_v56 = vunpack.i.h.bf16 %v5544_v43  ;;  %v5545_v57 = vunpack.i.l.bf16 %v5544_v43 }
 0x691   :  { %v717_v39 = vpop.f32.mrb[12].mxu0 }
 0x692   :  { %v5411_v55 = vpop.f32.mrb[13].mxu0  ;;  %v733_v8 = vsel %vm732_vm9, %v717_v39, %v5545_v57 }
 0x693   :  { %v720_v38 = vpop.f32.mrb[14].mxu0 }
 0x694   :  { %v734_v9 = vsel %vm732_vm9, %v720_v38, %v5546_v56  ;;  %v5412_v25 = vpop.f32.mrb[15].mxu0 }
 0x695   :  { %v735_v40 = vpack.c.bf16 %v734_v9, %v733_v8 }
 0x697   :  { %5424 = vmatmul.mubr.msk.bf16.vlgmr.msra.gmra.mrb[16].mxu0 %vm756_vm10, %v735_v40 }
 0x76a   :  { %v794_v24 = vpop.f32.mrb[16].mxu0 }
 0x76b   :  { %v795_v45 = vadd.f32 %v4841_v41, %v794_v24  ;;  %v5425_v42 = vpop.f32.mrb[17].mxu0 }
 0x76c   :  { %v797_v30 = vpop.f32.mrb[18].mxu0 }
 0x76d   :  { %v801_v59 = vsub.f32 0.0, %v795_v45  ;;  %v798_v14 = vadd.f32 %v4841_v41, %v797_v30  ;;  %v5426_v54 = vpop.f32.mrb[19].mxu0 }
 0x76f   :  { %v803_v43 = vmul.f32 1.442695, %v801_v59  ;;  %v802_v55 = vsub.f32 0.0, %v798_v14 }
 0x771   :  { %5571 = vpow2.f32 %v803_v43  ;;  %v805_v39 = vmul.f32 1.442695, %v802_v55 }
 0x773   :  { %5573 = vpow2.f32 %v805_v39 }
 0x77b   :  { %v5572_v56 = vpop.eup %5571 }
 0x77c   :  { %v807_v57 = vadd.f32 1.0, %v5572_v56 }
 0x77d   :  { %v5574_v38 = vpop.eup %5573 }
 0x77e   :  { %5575 = vrcp.f32 %v807_v57  ;;  %v808_v8 = vadd.f32 1.0, %v5574_v38 }
 0x780   :  { %5577 = vrcp.f32 %v808_v8 }
 0x788   :  { %v5576_v9 = vpop.eup %5575 }
 0x789   :  { %v812_v40 = vsel %vm811_vm11, %v5576_v9, 0.0 }
 0x78a   :  { %v5578_v25 = vpop.eup %5577 }
 0x78b   :  { %v813_v24 = vsel %vm811_vm11, %v5578_v25, 0.0 }
 0x78c   :  { %v814_v41 = vadd.f32 %v813_v24, %v812_v40 }
 0x78e   :  { %v815_v54 = vrot.slane %v814_v41, 4 }
 0x790   :  { %v816_v45 = vadd.f32 %v815_v54, %v814_v41 }
 0x792   :  { %v817_v42 = vrot.slane %v816_v45, 2 }
 0x794   :  { %v818_v30 = vadd.f32 %v817_v42, %v816_v45 }
 0x796   :  { %v819_v59 = vrot.slane %v818_v30, 1 }
 0x798   :  { %v820_v14 = vadd.f32 %v819_v59, %v818_v30  ;;  %v4844_v59 = vld [vmem:[%s8023_s1 + $0x75] ss:$0 sm:$0xff] }
 0x79a   :  { %v822_v43 = vmul.f32 0.0625, %v820_v14 }
 0x79c   :  { %v823_v55 = vsub.f32 %v5576_v9, %v822_v43  ;;  %v824_v39 = vsub.f32 %v5578_v25, %v822_v43  ;;  %v4843_v9 = vld [vmem:[%s8023_s1 + $0x74] ss:$0 sm:$0xff] }
 0x79e   :  { %v825_v56 = vmul.f32 %v823_v55, %v823_v55  ;;  %v826_v57 = vmul.f32 %v824_v39, %v824_v39 }
 0x7a0   :  { %v827_v38 = vsel %vm811_vm11, %v825_v56, 0.0  ;;  %v828_v8 = vsel %vm811_vm11, %v826_v57, 0.0 }
 0x7a1   :  { %v829_v7 = vadd.f32 %v828_v8, %v827_v38 }
 0x7a3   :  { %v830_v23 = vrot.slane %v829_v7, 4 }
 0x7a5   :  { %v831_v6 = vadd.f32 %v830_v23, %v829_v7 }
 0x7a7   :  { %v832_v22 = vrot.slane %v831_v6, 2 }
 0x7a9   :  { %v833_v40 = vadd.f32 %v832_v22, %v831_v6  ;;  %v855_v22 = vld [vmem:[%s8023_s1 + $0x10] sm:$0x3f] }
 0x7aa   :  { %v856_v56 = vpack.c.bf16 %v855_v22, %v855_v22 }
 0x7ab   :  { %v834_v24 = vrot.slane %v833_v40, 1 }
 0x7ad   :  { %v835_v41 = vadd.f32 %v834_v24, %v833_v40 }
 0x7af   :  { %v836_v54 = vmul.f32 0.0625, %v835_v41 }
 0x7b1   :  { %v839_v45 = vadd.f32 1e-05, %v836_v54 }
 0x7b3   :  { %5579 = vrsqrt.f32 %v839_v45 }
 0x7bd   :  { %v5580_v42 = vpop.eup %5579 }
 0x7be   :  { %v841_v25 = vmul.f32 %v5580_v42, %v823_v55  ;;  %v842_v30 = vmul.f32 %v5580_v42, %v824_v39 }
 0x7c0   :  { %v847_v14 = vmul.f32 %v4843_v9, %v841_v25  ;;  %v848_v7 = vmul.f32 %v4843_v9, %v842_v30 }
 0x7c2   :  { %v853_v23 = vadd.f32 %v4844_v59, %v847_v14  ;;  %v854_v6 = vadd.f32 %v4844_v59, %v848_v7 }
 0x7c4   :  { %v857_v43 = vpack.c.bf16 %v854_v6, %v853_v23 }
 0x7c6   :  { %5428 = vmatpush3.bf16.msra.mxu1 %v857_v43 }
 0x7c9   :  { %5430 = vmatmul.mubr.msk.bf16.vlgmr.msra.gmra.mrb[12].mxu1 %vm311_vm1, %v856_v56 }
 0x7ca   :  { %5952 = shalt.err (!%p5949_p10)  }
 0x7cb   :  { %s5953_s15 = scalar_lea.vmem %s302_s8, 16384  ;;  %p5958_p12 = scmp.lt.s32.totalorder %s302_s8, %s302_s8 }
 0x7cc   :  { %p5954_p11 = scmp.ne.s32.totalorder %s302_s8, %s5953_s15  ;;  %p5959_p13 = scmp.lt.s32.totalorder %s5953_s15, %s5953_s15 }
 0x7ce   :  { %p5960_p0 = por %p5959_p13, %p5958_p12 }
 0x7d0   :  { %p5961_p1 = pnand %p5960_p0, %p5954_p11 }
 0x7d2   :  { %5964 = shalt.err (!%p5961_p1)  }
 0x7d3   :  { %304 = dma.hbm_to_vmem [thread:$0]  %s8026_s4, 16384, %s302_s8, [#allocation4 + $0x1]  ;;  %v4847_v8 = vcombine.high %v6027_v0, %v6107_v16  ;;  %v4849_v40 = vcombine.high %v6032_v1, %v6112_v17  ;;  %v4846_v24 = vcombine.low %v6027_v0, %v6107_v16  ;;  %v4848_v41 = vcombine.low %v6032_v1, %v6112_v17 }
 0x89c   :  { %v895_v55 = vpop.f32.mrb[12].mxu1 }
 0x89d   :  { %v5431_v39 = vpop.f32.mrb[13].mxu1 }
 0x89e   :  { %v898_v57 = vpop.f32.mrb[14].mxu1 }
 0x89f   :  { %v5432_v38 = vpop.f32.mrb[15].mxu1 }
 0x8a0   :  { %5967 = dma.done.wait [#allocation4], 14336 }
 0x8a1   :  { %5968 = vsyncadd [#allocation4], 4294952960  ;;  %v4879_v54 = vcombine.high %v6187_v32, %v6267_v48  ;;  %v4881_v45 = vcombine.high %v6192_v33, %v6272_v49  ;;  %1681 = vmatprep.subr.bf16.mxu1 %v4847_v8  ;;  %1722 = vmatprep.subr.bf16.mxu0 %v4849_v40  ;;  %v4878_v42 = vcombine.low %v6187_v32, %v6267_v48  ;;  %vm1581_vm12 = vcmask 1042432  }
 0x8a2   :  { %1682 = vmatpush1.bf16.msra.mxu1 %v4846_v24  ;;  %1723 = vmatpush1.bf16.msra.mxu0 %v4848_v41  ;;  %v4880_v0 = vcombine.low %v6192_v33, %v6272_v49  ;;  %v4911_v1 = vcombine.high %v6347_v47, %v6427_v60  ;;  %vm1582_vm13 = vcmask 1043456   ;;  %v4913_v16 = vcombine.high %v6352_v46, %v6432_v13 }
 0x8a3   :  { %1683 = vmatprep.subr.bf16.mxu1 %v4879_v54  ;;  %1724 = vmatprep.subr.bf16.mxu0 %v4881_v45  ;;  %v4943_v17 = vcombine.high %v6507_v27, %v6507_v27  ;;  %v5979_v9 = vmov 65535   ;;  %v4945_v48 = vcombine.high %v6512_v10, %v6512_v10  ;;  %v4910_v49 = vcombine.low %v6347_v47, %v6427_v60  ;;  %v8184_v45 = vld [vmem:[#allocation26_spill] sm:$0xff] }
 0x8a4   :  { %v1583_v32 = vsel %vm1581_vm12, 4294967295, %v5979_v9  ;;  %v5980_v25 = vmov 0   ;;  %v4912_v30 = vcombine.low %v6352_v46, %v6432_v13  ;;  %v4942_v59 = vcombine.low %v6507_v27, %v6507_v27 }
 0x8a5   :  { %v6772_v33 = vsel %vm1582_vm13, %v1583_v32, 0  ;;  %1713 = vmatprep.mubr.bf16.mxu1 %v5980_v25  ;;  %v4944_v14 = vcombine.low %v6512_v10, %v6512_v10  ;;  %1754 = vmatprep.mubr.bf16.mxu0 %v5980_v25  ;;  %v4851_v27 = vcombine.high %v6037_v2, %v6117_v18  ;;  %v4853_v10 = vcombine.high %v6042_v3, %v6122_v19  ;;  %v8188_v32 = vld [vmem:[#allocation46_spill] sm:$0xff] }
 0x8a6   :  { %1684 = vmatpush1.bf16.msra.mxu1 %v4878_v42  ;;  %1725 = vmatpush1.bf16.msra.mxu0 %v4880_v0  ;;  %v1589_v7 = vand.u32 %v4943_v17, %v6772_v33  ;;  %v1595_v47 = vand.u32 %v4945_v48, %v6772_v33  ;;  %v1586_v60 = vand.u32 %v4942_v59, %v6772_v33  ;;  %v8185_v42 = vld [vmem:[#allocation16_spill] sm:$0xff]  ;;  %v8187_v17 = vld [vmem:[#allocation35_spill] sm:$0xff]  ;;  %vm2385_vm14 = vcmask 48128  }
 0x8a7   :  { %1685 = vmatprep.subr.bf16.mxu1 %v4911_v1  ;;  %1726 = vmatprep.subr.bf16.mxu0 %v4913_v16  ;;  %v1592_v13 = vand.u32 %v4944_v14, %v6772_v33  ;;  %v6792_v46 = vpack.c.bf16 %v895_v55, %v895_v55  ;;  %v4850_v23 = vcombine.low %v6037_v2, %v6117_v18  ;;  %v8186_v16 = vld [vmem:[#allocation45_spill] sm:$0xff]  ;;  %v8189_v48 = vld [vmem:[#allocation36_spill] sm:$0xff] }
 0x8a8   :  { %v4852_v6 = vcombine.low %v6042_v3, %v6122_v19  ;;  %v4883_v22 = vcombine.high %v6197_v34, %v6277_v50  ;;  %v4885_v43 = vcombine.high %v6202_v35, %v6282_v51  ;;  %v4882_v2 = vcombine.low %v6197_v34, %v6277_v50  ;;  %v8190_v14 = vld [vmem:[#allocation65_spill] sm:$0xff] }
 0x8a9   :  { %v4884_v3 = vcombine.low %v6202_v35, %v6282_v51  ;;  %v4915_v18 = vcombine.high %v6357_v15, %v6437_v29  ;;  %v4917_v19 = vcombine.high %v6362_v62, %v6442_v12  ;;  %v4947_v56 = vcombine.high %v6517_v26, %v6517_v26 }
 0x8aa   :  { %1686 = vmatpush1.bf16.msra.mxu1 %v4910_v49  ;;  %1727 = vmatpush1.bf16.msra.mxu0 %v4912_v30  ;;  %v4949_v55 = vcombine.high %v6522_v61, %v6522_v61  ;;  %v4914_v34 = vcombine.low %v6357_v15, %v6437_v29  ;;  %v4916_v35 = vcombine.low %v6362_v62, %v6442_v12 }
 0x8ab   :  { %1687 = vmatprep.subr.bf16.mxu1 %v1589_v7  ;;  %1728 = vmatprep.subr.bf16.mxu0 %v1595_v47  ;;  %v4946_v50 = vcombine.low %v6517_v26, %v6517_v26  ;;  %v4948_v51 = vcombine.low %v6522_v61, %v6522_v61  ;;  %v1601_v39 = vand.u32 %v4947_v56, %v6772_v33  ;;  %v8191_v7 = vld [vmem:[#allocation55_spill] sm:$0xff] }
 0x8ac   :  { %v1607_v57 = vand.u32 %v4949_v55, %v6772_v33  ;;  %v4855_v12 = vcombine.high %v6047_v4, %v6127_v20  ;;  %v4857_v26 = vcombine.high %v6052_v5, %v6132_v21  ;;  %v4854_v61 = vcombine.low %v6047_v4, %v6127_v20 }
 0x8ad   :  { %v1598_v15 = vand.u32 %v4946_v50, %v6772_v33  ;;  %v1604_v29 = vand.u32 %v4948_v51, %v6772_v33  ;;  %v4856_v62 = vcombine.low %v6052_v5, %v6132_v21  ;;  %v4887_v38 = vcombine.high %v6207_v36, %v6287_v52  ;;  %v8197_v50 = vld [vmem:[#allocation17_spill] sm:$0xff] }
 0x8ae   :  { %1688 = vmatpush1.bf16.msra.mxu1 %v1586_v60  ;;  %1729 = vmatpush1.bf16.msra.mxu0 %v1592_v13  ;;  %v4889_v8 = vcombine.high %v6212_v37, %v6292_v53  ;;  %v4886_v4 = vcombine.low %v6207_v36, %v6287_v52  ;;  %v4888_v5 = vcombine.low %v6212_v37, %v6292_v53  ;;  %v8192_v60 = vld [vmem:[#allocation66_spill] sm:$0xff]  ;;  %v8193_v13 = vld [vmem:[#allocation56_spill] sm:$0xff] }
 0x8af   :  { %1763 = vmatprep.subr.bf16.mxu1 %v4851_v27  ;;  %1804 = vmatprep.subr.bf16.mxu0 %v4853_v10  ;;  %v4919_v20 = vcombine.high %v6367_v63, %v6447_v28  ;;  %v4921_v21 = vcombine.high %v6372_v31, %v6452_v44  ;;  %v4951_v40 = vcombine.high %v6527_v11, %v6527_v11  ;;  %v8194_v10 = vld [vmem:[#allocation75_spill] sm:$0xff] }
 0x8b0   :  { %v4953_v24 = vcombine.high %v6532_v58, %v6532_v58  ;;  %v4918_v36 = vcombine.low %v6367_v63, %v6447_v28  ;;  %v4920_v37 = vcombine.low %v6372_v31, %v6452_v44  ;;  %v4950_v52 = vcombine.low %v6527_v11, %v6527_v11  ;;  %v8182_v31 = vld [vmem:[#allocation25_spill] sm:$0xff]  ;;  %v8183_v44 = vld [vmem:[#allocation15_spill] sm:$0xff] }
 0x8b1   :  { %4974 = vmatmul.mubr.msk.bf16.vlgmr.msra.gmra.mrb[16].mxu1 %vm811_vm11, %v6792_v46  ;;  %4975 = vmatmul.mubr.msk.bf16.vlgmr.msra.gmra.mrb[20].mxu0 %vm811_vm11, %v6792_v46  ;;  %v4952_v53 = vcombine.low %v6532_v58, %v6532_v58  ;;  %v1613_v41 = vand.u32 %v4951_v40, %v6772_v33  ;;  %v4859_v11 = vcombine.high %v8183_v44, %v8182_v31  ;;  %v8205_v40 = vld [vmem:[#allocation57_spill] sm:$0xff] }
 0x8b2   :  { %1764 = vmatpush1.bf16.msra.mxu1 %v4850_v23  ;;  %1805 = vmatpush1.bf16.msra.mxu0 %v4852_v6  ;;  %v1619_v54 = vand.u32 %v4953_v24, %v6772_v33  ;;  %v1610_v28 = vand.u32 %v4950_v52, %v6772_v33  ;;  %v4861_v58 = vcombine.high %v8185_v42, %v8184_v45  ;;  %v8195_v6 = vld [vmem:[#allocation76_spill] sm:$0xff] }
 0x8b3   :  { %1765 = vmatprep.subr.bf16.mxu1 %v4883_v22  ;;  %1806 = vmatprep.subr.bf16.mxu0 %v4885_v43  ;;  %v1616_v63 = vand.u32 %v4952_v53, %v6772_v33  ;;  %v4858_v0 = vcombine.low %v8183_v44, %v8182_v31  ;;  %v4860_v1 = vcombine.low %v8185_v42, %v8184_v45  ;;  %v8208_v53 = vld [vmem:[#allocation77_spill] sm:$0xff] }
 0x8b4   :  { %1795 = vmatprep.mubr.bf16.mxu1 %v5980_v25  ;;  %1836 = vmatprep.mubr.bf16.mxu0 %v5980_v25  ;;  %v4891_v9 = vcombine.high %v8187_v17, %v8186_v16  ;;  %v4893_v49 = vcombine.high %v8189_v48, %v8188_v32  ;;  %v4890_v30 = vcombine.low %v8187_v17, %v8186_v16  ;;  %v8211_v16 = vld [vmem:[#allocation19_spill] sm:$0xff] }
 0x8b5   :  { %v4892_v59 = vcombine.low %v8189_v48, %v8188_v32  ;;  %v4923_v47 = vcombine.high %v8191_v7, %v8190_v14  ;;  %v4925_v27 = vcombine.high %v8193_v13, %v8192_v60  ;;  %v4955_v23 = vcombine.high %v8194_v10, %v8194_v10  ;;  %v8213_v32 = vld [vmem:[#allocation20_spill] sm:$0xff] }
 0x8b6   :  { %1766 = vmatpush1.bf16.msra.mxu1 %v4882_v2  ;;  %1807 = vmatpush1.bf16.msra.mxu0 %v4884_v3  ;;  %v4957_v22 = vcombine.high %v8195_v6, %v8195_v6  ;;  %v4922_v43 = vcombine.low %v8191_v7, %v8190_v14  ;;  %v4924_v2 = vcombine.low %v8193_v13, %v8192_v60  ;;  %v8215_v14 = vld [vmem:[#allocation39_spill] sm:$0xff]  ;;  %v8217_v60 = vld [vmem:[#allocation40_spill] sm:$0xff] }
 0x8b7   :  { %1767 = vmatprep.subr.bf16.mxu1 %v4915_v18  ;;  %1808 = vmatprep.subr.bf16.mxu0 %v4917_v19  ;;  %v4954_v3 = vcombine.low %v8194_v10, %v8194_v10  ;;  %v4956_v18 = vcombine.low %v8195_v6, %v8195_v6  ;;  %v1625_v19 = vand.u32 %v4955_v23, %v6772_v33  ;;  %v8218_v23 = vld [vmem:[#allocation69_spill] sm:$0xff]  ;;  %v8219_v6 = vld [vmem:[#allocation59_spill] sm:$0xff] }
 0x8b8   :  { %v1631_v56 = vand.u32 %v4957_v22, %v6772_v33  ;;  %v4958_v44 = vcombine.low %v8208_v53, %v8208_v53  ;;  %v4931_v22 = vcombine.high %v8219_v6, %v8218_v23 }
 0x8b9   :  { %v1622_v55 = vand.u32 %v4954_v3, %v6772_v33 }
 0x8ba   :  { %1768 = vmatpush1.bf16.msra.mxu1 %v4914_v34  ;;  %1809 = vmatpush1.bf16.msra.mxu0 %v4916_v35  ;;  %v1628_v34 = vand.u32 %v4956_v18, %v6772_v33  ;;  %v8196_v35 = vld [vmem:[#allocation27_spill] sm:$0xff] }
 0x8bb   :  { %1769 = vmatprep.subr.bf16.mxu1 %v1601_v39  ;;  %1810 = vmatprep.subr.bf16.mxu0 %v1607_v57  ;;  %v4863_v51 = vcombine.high %v8197_v50, %v8196_v35  ;;  %v8198_v39 = vld [vmem:[#allocation28_spill] sm:$0xff]  ;;  %v8199_v57 = vld [vmem:[#allocation18_spill] sm:$0xff]  ;;  %v8222_v18 = vld [vmem:[#allocation79_spill] sm:$0xff] }
 0x8be   :  { %1770 = vmatpush1.bf16.msra.mxu1 %v1598_v15  ;;  %1811 = vmatpush1.bf16.msra.mxu0 %v1604_v29  ;;  %v4865_v15 = vcombine.high %v8199_v57, %v8198_v39  ;;  %v4862_v29 = vcombine.low %v8197_v50, %v8196_v35  ;;  %v4962_v50 = vcombine.low %v8222_v18, %v8222_v18 }
 0x8bf   :  { %1845 = vmatprep.subr.bf16.mxu1 %v4855_v12  ;;  %1886 = vmatprep.subr.bf16.mxu0 %v4857_v26  ;;  %v4864_v12 = vcombine.low %v8199_v57, %v8198_v39  ;;  %v8200_v26 = vld [vmem:[#allocation47_spill] sm:$0xff] }
 0x8c1   :  { %4976 = vmatmul.mubr.msk.bf16.vlgmr.msra.gmra.mrb[20].mxu1 %vm811_vm11, %v6792_v46  ;;  %4977 = vmatmul.mubr.msk.bf16.vlgmr.msra.gmra.mrb[24].mxu0 %vm811_vm11, %v6792_v46 }
 0x8c2   :  { %1846 = vmatpush1.bf16.msra.mxu1 %v4854_v61  ;;  %1887 = vmatpush1.bf16.msra.mxu0 %v4856_v62  ;;  %v8201_v61 = vld [vmem:[#allocation37_spill] sm:$0xff] }
 0x8c3   :  { %1847 = vmatprep.subr.bf16.mxu1 %v4887_v38  ;;  %1888 = vmatprep.subr.bf16.mxu0 %v4889_v8  ;;  %v4895_v62 = vcombine.high %v8201_v61, %v8200_v26  ;;  %v8202_v38 = vld [vmem:[#allocation48_spill] sm:$0xff]  ;;  %v8203_v8 = vld [vmem:[#allocation38_spill] sm:$0xff] }
 0x8c4   :  { %1877 = vmatprep.mubr.bf16.mxu1 %v5980_v25  ;;  %1918 = vmatprep.mubr.bf16.mxu0 %v5980_v25 }
 0x8c6   :  { %1848 = vmatpush1.bf16.msra.mxu1 %v4886_v4  ;;  %1889 = vmatpush1.bf16.msra.mxu0 %v4888_v5  ;;  %v4897_v4 = vcombine.high %v8203_v8, %v8202_v38  ;;  %v4894_v5 = vcombine.low %v8201_v61, %v8200_v26  ;;  %v8225_v26 = vld [vmem:[#allocation21_spill] sm:$0xff] }
 0x8c7   :  { %1849 = vmatprep.subr.bf16.mxu1 %v4919_v20  ;;  %1890 = vmatprep.subr.bf16.mxu0 %v4921_v21  ;;  %v4896_v20 = vcombine.low %v8203_v8, %v8202_v38  ;;  %v8204_v21 = vld [vmem:[#allocation67_spill] sm:$0xff]  ;;  %v8227_v38 = vld [vmem:[#allocation22_spill] sm:$0xff] }
 0x8c8   :  { %v4927_v24 = vcombine.high %v8205_v40, %v8204_v21 }
 0x8ca   :  { %1850 = vmatpush1.bf16.msra.mxu1 %v4918_v36  ;;  %1891 = vmatpush1.bf16.msra.mxu0 %v4920_v37  ;;  %v8206_v36 = vld [vmem:[#allocation68_spill] sm:$0xff]  ;;  %v8207_v37 = vld [vmem:[#allocation58_spill] sm:$0xff] }
 0x8cb   :  { %1851 = vmatprep.subr.bf16.mxu1 %v1613_v41  ;;  %1892 = vmatprep.subr.bf16.mxu0 %v1619_v54  ;;  %v4929_v52 = vcombine.high %v8207_v37, %v8206_v36  ;;  %v4959_v41 = vcombine.high %v8208_v53, %v8208_v53  ;;  %v8209_v54 = vld [vmem:[#allocation78_spill] sm:$0xff]  ;;  %v4928_v31 = vcombine.low %v8207_v37, %v8206_v36 }
 0x8cc   :  { %v8231_v36 = vld [vmem:[#allocation42_spill] sm:$0xff] }
 0x8cd   :  { %v1637_v45 = vand.u32 %v4959_v41, %v6772_v33  ;;  %v8232_v41 = vld [vmem:[#allocation71_spill] sm:$0xff] }
 0x8ce   :  { %1852 = vmatpush1.bf16.msra.mxu1 %v1610_v28  ;;  %1893 = vmatpush1.bf16.msra.mxu0 %v1616_v63  ;;  %v4961_v28 = vcombine.high %v8209_v54, %v8209_v54  ;;  %v4926_v63 = vcombine.low %v8205_v40, %v8204_v21  ;;  %v8229_v21 = vld [vmem:[#allocation41_spill] sm:$0xff] }
 0x8cf   :  { %1927 = vmatprep.subr.bf16.mxu1 %v4859_v11  ;;  %1968 = vmatprep.subr.bf16.mxu0 %v4861_v58  ;;  %v4960_v11 = vcombine.low %v8209_v54, %v8209_v54  ;;  %v1634_v58 = vand.u32 %v4958_v44, %v6772_v33  ;;  %v8233_v54 = vld [vmem:[#allocation61_spill] sm:$0xff] }
 0x8d0   :  { %v1643_v42 = vand.u32 %v4961_v28, %v6772_v33  ;;  %v4935_v28 = vcombine.high %v8233_v54, %v8232_v41 }
 0x8d1   :  { %4978 = vmatmul.mubr.msk.bf16.vlgmr.msra.gmra.mrb[24].mxu1 %vm811_vm11, %v6792_v46  ;;  %4979 = vmatmul.mubr.msk.bf16.vlgmr.msra.gmra.mrb[28].mxu0 %vm811_vm11, %v6792_v46 }
 0x8d2   :  { %1928 = vmatpush1.bf16.msra.mxu1 %v4858_v0  ;;  %1969 = vmatpush1.bf16.msra.mxu0 %v4860_v1  ;;  %v1640_v0 = vand.u32 %v4960_v11, %v6772_v33  ;;  %v8210_v1 = vld [vmem:[#allocation29_spill] sm:$0xff] }
 0x8d3   :  { %1929 = vmatprep.subr.bf16.mxu1 %v4891_v9  ;;  %1970 = vmatprep.subr.bf16.mxu0 %v4893_v49  ;;  %v4867_v17 = vcombine.high %v8211_v16, %v8210_v1  ;;  %v8212_v9 = vld [vmem:[#allocation30_spill] sm:$0xff]  ;;  %v4866_v49 = vcombine.low %v8211_v16, %v8210_v1  ;;  %v8236_v11 = vld [vmem:[#allocation81_spill] sm:$0xff] }
 0x8d4   :  { %1959 = vmatprep.mubr.bf16.mxu1 %v5980_v25  ;;  %2000 = vmatprep.mubr.bf16.mxu0 %v5980_v25  ;;  %v4869_v48 = vcombine.high %v8213_v32, %v8212_v9  ;;  %v4966_v16 = vcombine.low %v8236_v11, %v8236_v11 }
 0x8d6   :  { %1930 = vmatpush1.bf16.msra.mxu1 %v4890_v30  ;;  %1971 = vmatpush1.bf16.msra.mxu0 %v4892_v59  ;;  %v4868_v30 = vcombine.low %v8213_v32, %v8212_v9  ;;  %v8214_v59 = vld [vmem:[#allocation49_spill] sm:$0xff] }
 0x8d7   :  { %1931 = vmatprep.subr.bf16.mxu1 %v4923_v47  ;;  %1972 = vmatprep.subr.bf16.mxu0 %v4925_v27  ;;  %v4899_v7 = vcombine.high %v8215_v14, %v8214_v59  ;;  %v8216_v47 = vld [vmem:[#allocation50_spill] sm:$0xff]  ;;  %v4898_v27 = vcombine.low %v8215_v14, %v8214_v59  ;;  %v8239_v59 = vld [vmem:[#allocation23_spill] sm:$0xff] }
 0x8d8   :  { %v4901_v13 = vcombine.high %v8217_v60, %v8216_v47  ;;  %v4900_v10 = vcombine.low %v8217_v60, %v8216_v47  ;;  %v8241_v47 = vld [vmem:[#allocation24_spill] sm:$0xff] }
 0x8da   :  { %1932 = vmatpush1.bf16.msra.mxu1 %v4922_v43  ;;  %1973 = vmatpush1.bf16.msra.mxu0 %v4924_v2  ;;  %v8220_v43 = vld [vmem:[#allocation70_spill] sm:$0xff]  ;;  %v8221_v2 = vld [vmem:[#allocation60_spill] sm:$0xff] }
 0x8db   :  { %1933 = vmatprep.subr.bf16.mxu1 %v1625_v19  ;;  %1974 = vmatprep.subr.bf16.mxu0 %v1631_v56  ;;  %v4933_v3 = vcombine.high %v8221_v2, %v8220_v43  ;;  %v4963_v19 = vcombine.high %v8222_v18, %v8222_v18  ;;  %v8223_v56 = vld [vmem:[#allocation80_spill] sm:$0xff]  ;;  %v4932_v35 = vcombine.low %v8221_v2, %v8220_v43 }
 0x8dc   :  { %v8245_v43 = vld [vmem:[#allocation44_spill] sm:$0xff] }
 0x8dd   :  { %v1649_v39 = vand.u32 %v4963_v19, %v6772_v33  ;;  %v8246_v19 = vld [vmem:[#allocation73_spill] sm:$0xff] }
 0x8de   :  { %1934 = vmatpush1.bf16.msra.mxu1 %v1622_v55  ;;  %1975 = vmatpush1.bf16.msra.mxu0 %v1628_v34  ;;  %v4965_v55 = vcombine.high %v8223_v56, %v8223_v56  ;;  %v4930_v34 = vcombine.low %v8219_v6, %v8218_v23  ;;  %v8243_v23 = vld [vmem:[#allocation43_spill] sm:$0xff] }
 0x8df   :  { %2009 = vmatprep.subr.bf16.mxu1 %v4863_v51  ;;  %2050 = vmatprep.subr.bf16.mxu0 %v4865_v15  ;;  %v4964_v51 = vcombine.low %v8223_v56, %v8223_v56  ;;  %v1646_v15 = vand.u32 %v4962_v50, %v6772_v33  ;;  %v8247_v56 = vld [vmem:[#allocation63_spill] sm:$0xff] }
 0x8e0   :  { %v1655_v57 = vand.u32 %v4965_v55, %v6772_v33  ;;  %v4939_v55 = vcombine.high %v8247_v56, %v8246_v19 }
 0x8e1   :  { %4980 = vmatmul.mubr.msk.bf16.vlgmr.msra.gmra.mrb[28].mxu1 %vm811_vm11, %v6792_v46  ;;  %4981 = vmatmul.mubr.msk.bf16.vlgmr.msra.gmra.mrb[32].mxu0 %vm811_vm11, %v6792_v46 }
 0x8e2   :  { %2010 = vmatpush1.bf16.msra.mxu1 %v4862_v29  ;;  %2051 = vmatpush1.bf16.msra.mxu0 %v4864_v12  ;;  %v1652_v29 = vand.u32 %v4964_v51, %v6772_v33  ;;  %v8224_v12 = vld [vmem:[#allocation31_spill] sm:$0xff] }
 0x8e3   :  { %2011 = vmatprep.subr.bf16.mxu1 %v4895_v62  ;;  %2052 = vmatprep.subr.bf16.mxu0 %v4897_v4  ;;  %v4871_v61 = vcombine.high %v8225_v26, %v8224_v12  ;;  %v8226_v62 = vld [vmem:[#allocation32_spill] sm:$0xff]  ;;  %v4870_v4 = vcombine.low %v8225_v26, %v8224_v12  ;;  %v8250_v51 = vld [vmem:[#allocation83_spill] sm:$0xff] }
 0x8e4   :  { %2041 = vmatprep.mubr.bf16.mxu1 %v5980_v25  ;;  %2082 = vmatprep.mubr.bf16.mxu0 %v5980_v25  ;;  %v4873_v8 = vcombine.high %v8227_v38, %v8226_v62  ;;  %v4970_v26 = vcombine.low %v8250_v51, %v8250_v51 }
 0x8e6   :  { %2012 = vmatpush1.bf16.msra.mxu1 %v4894_v5  ;;  %2053 = vmatpush1.bf16.msra.mxu0 %v4896_v20  ;;  %v4872_v5 = vcombine.low %v8227_v38, %v8226_v62  ;;  %v8228_v20 = vld [vmem:[#allocation51_spill] sm:$0xff] }
 0x8e7   :  { %2013 = vmatprep.subr.bf16.mxu1 %v4927_v24  ;;  %2054 = vmatprep.subr.bf16.mxu0 %v4929_v52  ;;  %v4903_v40 = vcombine.high %v8229_v21, %v8228_v20  ;;  %v8230_v24 = vld [vmem:[#allocation52_spill] sm:$0xff]  ;;  %v4902_v52 = vcombine.low %v8229_v21, %v8228_v20 }
 0x8e8   :  { %v4905_v37 = vcombine.high %v8231_v36, %v8230_v24  ;;  %v4904_v53 = vcombine.low %v8231_v36, %v8230_v24 }
 0x8ea   :  { %2014 = vmatpush1.bf16.msra.mxu1 %v4926_v63  ;;  %2055 = vmatpush1.bf16.msra.mxu0 %v4928_v31  ;;  %v8234_v63 = vld [vmem:[#allocation72_spill] sm:$0xff]  ;;  %v8235_v31 = vld [vmem:[#allocation62_spill] sm:$0xff] }
 0x8eb   :  { %2015 = vmatprep.subr.bf16.mxu1 %v1637_v45  ;;  %2056 = vmatprep.subr.bf16.mxu0 %v1643_v42  ;;  %v4937_v44 = vcombine.high %v8235_v31, %v8234_v63  ;;  %v4967_v45 = vcombine.high %v8236_v11, %v8236_v11  ;;  %v8237_v42 = vld [vmem:[#allocation82_spill] sm:$0xff]  ;;  %v4936_v1 = vcombine.low %v8235_v31, %v8234_v63 }
 0x8ed   :  { %v1661_v9 = vand.u32 %v4967_v45, %v6772_v33 }
 0x8ee   :  { %2016 = vmatpush1.bf16.msra.mxu1 %v1634_v58  ;;  %2057 = vmatpush1.bf16.msra.mxu0 %v1640_v0  ;;  %v4969_v58 = vcombine.high %v8237_v42, %v8237_v42  ;;  %v4934_v0 = vcombine.low %v8233_v54, %v8232_v41 }
 0x8ef   :  { %2091 = vmatprep.subr.bf16.mxu1 %v4867_v17  ;;  %2132 = vmatprep.subr.bf16.mxu0 %v4869_v48  ;;  %v4968_v17 = vcombine.low %v8237_v42, %v8237_v42  ;;  %v1658_v48 = vand.u32 %v4966_v16, %v6772_v33 }
 0x8f0   :  { %v1667_v32 = vand.u32 %v4969_v58, %v6772_v33 }
 0x8f1   :  { %4982 = vmatmul.mubr.msk.bf16.vlgmr.msra.gmra.mrb[32].mxu1 %vm811_vm11, %v6792_v46  ;;  %4983 = vmatmul.mubr.msk.bf16.vlgmr.msra.gmra.mrb[36].mxu0 %vm811_vm11, %v6792_v46 }
 0x8f2   :  { %2092 = vmatpush1.bf16.msra.mxu1 %v4866_v49  ;;  %2133 = vmatpush1.bf16.msra.mxu0 %v4868_v30  ;;  %v1664_v49 = vand.u32 %v4968_v17, %v6772_v33  ;;  %v8238_v30 = vld [vmem:[#allocation33_spill] sm:$0xff] }
 0x8f3   :  { %2093 = vmatprep.subr.bf16.mxu1 %v4899_v7  ;;  %2134 = vmatprep.subr.bf16.mxu0 %v4901_v13  ;;  %v4875_v14 = vcombine.high %v8239_v59, %v8238_v30  ;;  %v8240_v7 = vld [vmem:[#allocation34_spill] sm:$0xff]  ;;  %v4874_v13 = vcombine.low %v8239_v59, %v8238_v30 }
 0x8f4   :  { %2123 = vmatprep.mubr.bf16.mxu1 %v5980_v25  ;;  %2164 = vmatprep.mubr.bf16.mxu0 %v5980_v25  ;;  %v4877_v60 = vcombine.high %v8241_v47, %v8240_v7 }
 0x8f6   :  { %2094 = vmatpush1.bf16.msra.mxu1 %v4898_v27  ;;  %2135 = vmatpush1.bf16.msra.mxu0 %v4900_v10  ;;  %v4876_v27 = vcombine.low %v8241_v47, %v8240_v7  ;;  %v8242_v10 = vld [vmem:[#allocation53_spill] sm:$0xff] }
 0x8f7   :  { %2095 = vmatprep.subr.bf16.mxu1 %v4931_v22  ;;  %2136 = vmatprep.subr.bf16.mxu0 %v4933_v3  ;;  %v4907_v6 = vcombine.high %v8243_v23, %v8242_v10  ;;  %v8244_v22 = vld [vmem:[#allocation54_spill] sm:$0xff]  ;;  %v4906_v3 = vcombine.low %v8243_v23, %v8242_v10  ;;  %v2377_v23 = vld [vmem:[%s8023_s1 + $0x40] sm:$0xff] }
 0x8f8   :  { %v4909_v2 = vcombine.high %v8245_v43, %v8244_v22  ;;  %v4908_v18 = vcombine.low %v8245_v43, %v8244_v22 }
 0x8fa   :  { %2096 = vmatpush1.bf16.msra.mxu1 %v4930_v34  ;;  %2137 = vmatpush1.bf16.msra.mxu0 %v4932_v35  ;;  %v8248_v34 = vld [vmem:[#allocation74_spill] sm:$0xff]  ;;  %v8249_v35 = vld [vmem:[#allocation64_spill] sm:$0xff] }
 0x8fb   :  { %2097 = vmatprep.subr.bf16.mxu1 %v1649_v39  ;;  %2138 = vmatprep.subr.bf16.mxu0 %v1655_v57  ;;  %v4941_v50 = vcombine.high %v8249_v35, %v8248_v34  ;;  %v4971_v39 = vcombine.high %v8250_v51, %v8250_v51  ;;  %v8251_v57 = vld [vmem:[#allocation84_spill] sm:$0xff]  ;;  %v4940_v12 = vcombine.low %v8249_v35, %v8248_v34  ;;  %v2379_v35 = vld [vmem:[%s8023_s1 + $0x50] sm:$0xff] }
 0x8fd   :  { %v1673_v62 = vand.u32 %v4971_v39, %v6772_v33 }
 0x8fe   :  { %2098 = vmatpush1.bf16.msra.mxu1 %v1646_v15  ;;  %2139 = vmatpush1.bf16.msra.mxu0 %v1652_v29  ;;  %v4973_v15 = vcombine.high %v8251_v57, %v8251_v57  ;;  %v4938_v29 = vcombine.low %v8247_v56, %v8246_v19 }
 0x8ff   :  { %2173 = vmatprep.subr.bf16.mxu1 %v4871_v61  ;;  %2214 = vmatprep.subr.bf16.mxu0 %v4873_v8  ;;  %v4972_v61 = vcombine.low %v8251_v57, %v8251_v57  ;;  %v1670_v8 = vand.u32 %v4970_v26, %v6772_v33 }
 0x900   :  { %v1679_v38 = vand.u32 %v4973_v15, %v6772_v33 }
 0x901   :  { %4984 = vmatmul.mubr.msk.bf16.vlgmr.msra.gmra.mrb[36].mxu1 %vm811_vm11, %v6792_v46  ;;  %4985 = vmatmul.mubr.msk.bf16.vlgmr.msra.gmra.mrb[40].mxu0 %vm811_vm11, %v6792_v46 }
 0x902   :  { %2174 = vmatpush1.bf16.msra.mxu1 %v4870_v4  ;;  %2215 = vmatpush1.bf16.msra.mxu0 %v4872_v5  ;;  %v1676_v4 = vand.u32 %v4972_v61, %v6772_v33  ;;  %v2381_v61 = vld [vmem:[%s8023_s1 + $0x60] sm:$0xf] }
 0x903   :  { %2175 = vmatprep.subr.bf16.mxu1 %v4903_v40  ;;  %2216 = vmatprep.subr.bf16.mxu0 %v4905_v37 }
 0x904   :  { %2205 = vmatprep.mubr.bf16.mxu1 %v5980_v25  ;;  %2246 = vmatprep.mubr.bf16.mxu0 %v5980_v25 }
 0x906   :  { %2176 = vmatpush1.bf16.msra.mxu1 %v4902_v52  ;;  %2217 = vmatpush1.bf16.msra.mxu0 %v4904_v53 }
 0x907   :  { %2177 = vmatprep.subr.bf16.mxu1 %v4935_v28  ;;  %2218 = vmatprep.subr.bf16.mxu0 %v4937_v44 }
 0x90a   :  { %2178 = vmatpush1.bf16.msra.mxu1 %v4934_v0  ;;  %2219 = vmatpush1.bf16.msra.mxu0 %v4936_v1 }
 0x90b   :  { %2179 = vmatprep.subr.bf16.mxu1 %v1661_v9  ;;  %2220 = vmatprep.subr.bf16.mxu0 %v1667_v32 }
 0x90e   :  { %2180 = vmatpush1.bf16.msra.mxu1 %v1658_v48  ;;  %2221 = vmatpush1.bf16.msra.mxu0 %v1664_v49 }
 0x90f   :  { %2255 = vmatprep.subr.bf16.mxu1 %v4875_v14  ;;  %2296 = vmatprep.subr.bf16.mxu0 %v4877_v60 }
 0x911   :  { %4986 = vmatmul.mubr.msk.bf16.vlgmr.msra.gmra.mrb[40].mxu1 %vm811_vm11, %v6792_v46  ;;  %4987 = vmatmul.mubr.msk.bf16.vlgmr.msra.gmra.mrb[44].mxu0 %vm811_vm11, %v6792_v46 }
 0x912   :  { %2256 = vmatpush1.bf16.msra.mxu1 %v4874_v13  ;;  %2297 = vmatpush1.bf16.msra.mxu0 %v4876_v27 }
 0x913   :  { %2257 = vmatprep.subr.bf16.mxu1 %v4907_v6  ;;  %2298 = vmatprep.subr.bf16.mxu0 %v4909_v2  ;;  %v2378_v6 = vld [vmem:[%s8023_s1 + $0x48] sm:$0xff] }
 0x914   :  { %2287 = vmatprep.mubr.bf16.mxu1 %v5980_v25  ;;  %2328 = vmatprep.mubr.bf16.mxu0 %v5980_v25  ;;  %v7132_v34 = vpack.c.bf16 %v2378_v6, %v2377_v23 }
 0x916   :  { %2258 = vmatpush1.bf16.msra.mxu1 %v4906_v3  ;;  %2299 = vmatpush1.bf16.msra.mxu0 %v4908_v18 }
 0x917   :  { %2259 = vmatprep.subr.bf16.mxu1 %v4939_v55  ;;  %2300 = vmatprep.subr.bf16.mxu0 %v4941_v50  ;;  %v2380_v50 = vld [vmem:[%s8023_s1 + $0x58] sm:$0xff] }
 0x918   :  { %v7146_v51 = vpack.c.bf16 %v2380_v50, %v2379_v35 }
 0x91a   :  { %2260 = vmatpush1.bf16.msra.mxu1 %v4938_v29  ;;  %2301 = vmatpush1.bf16.msra.mxu0 %v4940_v12 }
 0x91b   :  { %2261 = vmatprep.subr.bf16.mxu1 %v1673_v62  ;;  %2302 = vmatprep.subr.bf16.mxu0 %v1679_v38 }
 0x91e   :  { %2262 = vmatpush1.bf16.msra.mxu1 %v1670_v8  ;;  %2303 = vmatpush1.bf16.msra.mxu0 %v1676_v4 }
 0x921   :  { %4988 = vmatmul.mubr.msk.bf16.vlgmr.msra.gmra.mrb[44].mxu1 %vm811_vm11, %v6792_v46  ;;  %4989 = vmatmul.mubr.msk.bf16.vlgmr.msra.gmra.mrb[48].mxu0 %vm811_vm11, %v6792_v46 }
 0x922   :  { %2475 = vmatprep.mubr.bf16.mxu1 %v5980_v25  ;;  %2536 = vmatprep.mubr.bf16.mxu0 %v5980_v25 }
 0x984   :  { %v7090_v5 = vpop.f32.mrb[16].mxu1  ;;  %v7092_v20 = vpop.f32.mrb[20].mxu0 }
 0x985   :  { %v7094_v21 = vpop.f32.mrb[17].mxu1  ;;  %v7096_v33 = vpop.f32.mrb[21].mxu0 }
 0x986   :  { %v1719_v40 = vpop.f32.mrb[18].mxu1  ;;  %v1760_v24 = vpop.f32.mrb[22].mxu0  ;;  %v2338_v50 = vpack.c.bf16 %v7094_v21, %v7094_v21  ;;  %v2337_v21 = vpack.c.bf16 %v7090_v5, %v7090_v5  ;;  %v2369_v5 = vld [vmem:[%s8023_s1 + $0x18] sm:$0xff] }
 0x987   :  { %v1720_v36 = vpop.f32.mrb[19].mxu1  ;;  %v1761_v37 = vpop.f32.mrb[23].mxu0 }
 0x994   :  { %v7098_v52 = vpop.f32.mrb[20].mxu1  ;;  %v7100_v53 = vpop.f32.mrb[24].mxu0 }
 0x995   :  { %v7102_v46 = vpop.f32.mrb[21].mxu1  ;;  %v7104_v41 = vpop.f32.mrb[25].mxu0 }
 0x996   :  { %v1801_v54 = vpop.f32.mrb[22].mxu1  ;;  %v1842_v28 = vpop.f32.mrb[26].mxu0 }
 0x997   :  { %v1802_v63 = vpop.f32.mrb[23].mxu1  ;;  %v1843_v31 = vpop.f32.mrb[27].mxu0  ;;  %v7161_v54 = vpack.c.bf16 %v2381_v61, %v2381_v61 }
 0x9a4   :  { %v7106_v44 = vpop.f32.mrb[24].mxu1  ;;  %v7108_v11 = vpop.f32.mrb[28].mxu0 }
 0x9a5   :  { %v7110_v45 = vpop.f32.mrb[25].mxu1  ;;  %v7112_v42 = vpop.f32.mrb[29].mxu0 }
 0x9a6   :  { %v1883_v58 = vpop.f32.mrb[26].mxu1  ;;  %v1924_v0 = vpop.f32.mrb[30].mxu0  ;;  %v2346_v61 = vpack.c.bf16 %v7110_v45, %v7110_v45 }
 0x9a7   :  { %v1884_v1 = vpop.f32.mrb[27].mxu1  ;;  %v1925_v16 = vpop.f32.mrb[31].mxu0 }
 0x9b4   :  { %v7114_v17 = vpop.f32.mrb[28].mxu1  ;;  %v7116_v9 = vpop.f32.mrb[32].mxu0 }
 0x9b5   :  { %v7118_v32 = vpop.f32.mrb[29].mxu1  ;;  %v7120_v48 = vpop.f32.mrb[33].mxu0 }
 0x9b6   :  { %v1965_v49 = vpop.f32.mrb[30].mxu1  ;;  %v2006_v30 = vpop.f32.mrb[34].mxu0 }
 0x9b7   :  { %v1966_v59 = vpop.f32.mrb[31].mxu1  ;;  %v2007_v14 = vpop.f32.mrb[35].mxu0 }
 0x9c4   :  { %v2043_v7 = vpop.f32.mrb[32].mxu1  ;;  %v2084_v47 = vpop.f32.mrb[36].mxu0 }
 0x9c5   :  { %v2353_v60 = vpack.c.bf16 %v2043_v7, %v2043_v7  ;;  %v2355_v13 = vpack.c.bf16 %v2084_v47, %v2084_v47  ;;  %v2045_v27 = vpop.f32.mrb[33].mxu1  ;;  %v2086_v10 = vpop.f32.mrb[37].mxu0 }
 0x9c6   :  { %v2354_v22 = vpack.c.bf16 %v2045_v27, %v2045_v27  ;;  %v2356_v43 = vpack.c.bf16 %v2086_v10, %v2086_v10  ;;  %v2047_v2 = vpop.f32.mrb[34].mxu1  ;;  %v2088_v3 = vpop.f32.mrb[38].mxu0 }
 0x9c7   :  { %v2396_v18 = vsel %vm1581_vm12, %v2353_v60, 0  ;;  %v2402_v19 = vsel %vm1581_vm12, %v2355_v13, 0  ;;  %v2048_v56 = vpop.f32.mrb[35].mxu1  ;;  %v2089_v55 = vpop.f32.mrb[39].mxu0 }
 0x9c8   :  { %4990 = vmatprep.subr.msk.bf16.mxu1 %vm1581_vm12, %v2354_v22  ;;  %4994 = vmatprep.subr.msk.bf16.mxu0 %vm1581_vm12, %v2356_v43 }
 0x9c9   :  { %2444 = vmatpush1.bf16.msra.mxu1 %v2396_v18  ;;  %2505 = vmatpush1.bf16.msra.mxu0 %v2402_v19 }
 0x9cc   :  { %4991 = vmatmul.mubr.msk.bf16.vlgmr.msra.gmra.mrb[48].mxu1 %vm2385_vm14, %v7132_v34  ;;  %4995 = vmatmul.mubr.msk.bf16.vlgmr.msra.gmra.mrb[52].mxu0 %vm2385_vm14, %v7132_v34 }
 0x9cd   :  { %2485 = vmatprep.mubr.bf16.mxu1 %v5980_v25  ;;  %2546 = vmatprep.mubr.bf16.mxu0 %v5980_v25 }
 0x9d4   :  { %v2125_v39 = vpop.f32.mrb[36].mxu1  ;;  %v2166_v57 = vpop.f32.mrb[40].mxu0  ;;  %4992 = vmatmul.mubr.msk.bf16.gmra.mrb[52].mxu1 %vm2385_vm14, %v7146_v51  ;;  %4996 = vmatmul.mubr.msk.bf16.gmra.mrb[56].mxu0 %vm2385_vm14, %v7146_v51 }
 0x9d5   :  { %v2357_v15 = vpack.c.bf16 %v2125_v39, %v2125_v39  ;;  %v2359_v29 = vpack.c.bf16 %v2166_v57, %v2166_v57  ;;  %v2127_v12 = vpop.f32.mrb[37].mxu1  ;;  %v2168_v26 = vpop.f32.mrb[41].mxu0  ;;  %2495 = vmatprep.mubr.bf16.mxu1 %v5980_v25  ;;  %2556 = vmatprep.mubr.bf16.mxu0 %v5980_v25  ;;  %v2340_v39 = vpack.c.bf16 %v7096_v33, %v7096_v33  ;;  %v2941_v57 = vsel %vm1581_vm12, %v2337_v21, 0  ;;  %v7387_v21 = vld [vmem:[#allocation5] sm:$0xff] }
 0x9d6   :  { %v2358_v62 = vpack.c.bf16 %v2127_v12, %v2127_v12  ;;  %v2360_v38 = vpack.c.bf16 %v2168_v26, %v2168_v26  ;;  %v2129_v8 = vpop.f32.mrb[38].mxu1  ;;  %v2170_v4 = vpop.f32.mrb[42].mxu0  ;;  %v2339_v33 = vpack.c.bf16 %v7092_v20, %v7092_v20  ;;  %v2344_v12 = vpack.c.bf16 %v7104_v41, %v7104_v41  ;;  %v2370_v20 = vld [vmem:[%s8023_s1 + $0x20] sm:$0xff] }
 0x9d7   :  { %v2408_v40 = vsel %vm1581_vm12, %v2357_v15, 0  ;;  %v2414_v24 = vsel %vm1581_vm12, %v2359_v29, 0  ;;  %v2130_v36 = vpop.f32.mrb[39].mxu1  ;;  %v2171_v37 = vpop.f32.mrb[43].mxu0  ;;  %v2342_v29 = vpack.c.bf16 %v7102_v46, %v7102_v46  ;;  %v2341_v46 = vpack.c.bf16 %v7098_v52, %v7098_v52  ;;  %v2371_v52 = vld [vmem:[%s8023_s1 + $0x28] sm:$0xff] }
 0x9d8   :  { %4998 = vmatprep.subr.msk.bf16.mxu1 %vm1581_vm12, %v2358_v62  ;;  %5002 = vmatprep.subr.msk.bf16.mxu0 %vm1581_vm12, %v2360_v38  ;;  %v2947_v15 = vsel %vm1581_vm12, %v2339_v33, 0  ;;  %v2343_v41 = vpack.c.bf16 %v7100_v53, %v7100_v53  ;;  %v2348_v62 = vpack.c.bf16 %v7112_v42, %v7112_v42  ;;  %v2372_v53 = vld [vmem:[%s8023_s1 + $0x30] sm:$0xff]  ;;  %v2373_v42 = vld [vmem:[%s8023_s1 + $0x38] sm:$0xf]  ;;  %v2345_v8 = vpack.c.bf16 %v7106_v44, %v7106_v44 }
 0x9d9   :  { %2566 = vmatpush1.bf16.msra.mxu1 %v2408_v40  ;;  %2627 = vmatpush1.bf16.msra.mxu0 %v2414_v24  ;;  %v2375_v45 = vpack.c.bf16 %v2372_v53, %v2371_v52  ;;  %v2376_v38 = vpack.c.bf16 %v2373_v42, %v2373_v42  ;;  %v2347_v4 = vpack.c.bf16 %v7108_v11, %v7108_v11 }
 0x9da   :  { %v2959_v26 = vsel %vm1581_vm12, %v2343_v41, 0  ;;  %v2965_v40 = vsel %vm1581_vm12, %v2345_v8, 0  ;;  %v2350_v36 = vpack.c.bf16 %v7118_v32, %v7118_v32  ;;  %v2352_v37 = vpack.c.bf16 %v7120_v48, %v7120_v48 }
 0x9db   :  { %v2971_v24 = vsel %vm1581_vm12, %v2347_v4, 0  ;;  %v2349_v44 = vpack.c.bf16 %v7114_v17, %v7114_v17  ;;  %v2351_v11 = vpack.c.bf16 %v7116_v9, %v7116_v9 }
 0x9dc   :  { %4993 = vmatmul.mubr.msk.bf16.gmra.mrb[56].mxu1 %vm2385_vm14, %v7161_v54  ;;  %4997 = vmatmul.mubr.msk.bf16.gmra.mrb[60].mxu0 %vm2385_vm14, %v7161_v54 }
 0x9dd   :  { %2597 = vmatprep.mubr.bf16.mxu1 %v5980_v25  ;;  %2658 = vmatprep.mubr.bf16.mxu0 %v5980_v25  ;;  %v2977_v32 = vsel %vm1581_vm12, %v2349_v44, 0  ;;  %v2983_v48 = vsel %vm1581_vm12, %v2351_v11, 0 }
 0x9e4   :  { %4999 = vmatmul.mubr.msk.bf16.vlgmr.msra.gmra.mrb[60].mxu1 %vm2385_vm14, %v7132_v34  ;;  %5003 = vmatmul.mubr.msk.bf16.vlgmr.msra.gmra.mrb[64].mxu0 %vm2385_vm14, %v7132_v34  ;;  %v2207_v28 = vpop.f32.mrb[40].mxu1  ;;  %v2248_v63 = vpop.f32.mrb[44].mxu0 }
 0x9e5   :  { %v2361_v31 = vpack.c.bf16 %v2207_v28, %v2207_v28  ;;  %v2363_v58 = vpack.c.bf16 %v2248_v63, %v2248_v63  ;;  %v2209_v0 = vpop.f32.mrb[41].mxu1  ;;  %v2250_v1 = vpop.f32.mrb[45].mxu0  ;;  %2607 = vmatprep.mubr.bf16.mxu1 %v5980_v25  ;;  %2668 = vmatprep.mubr.bf16.mxu0 %v5980_v25 }
 0x9e6   :  { %v2362_v16 = vpack.c.bf16 %v2209_v0, %v2209_v0  ;;  %v2364_v49 = vpack.c.bf16 %v2250_v1, %v2250_v1  ;;  %v2211_v30 = vpop.f32.mrb[42].mxu1  ;;  %v2252_v59 = vpop.f32.mrb[46].mxu0 }
 0x9e7   :  { %v2420_v14 = vsel %vm1581_vm12, %v2361_v31, 0  ;;  %v2426_v7 = vsel %vm1581_vm12, %v2363_v58, 0  ;;  %v2212_v47 = vpop.f32.mrb[43].mxu1  ;;  %v2253_v60 = vpop.f32.mrb[47].mxu0 }
 0x9e8   :  { %5006 = vmatprep.subr.msk.bf16.mxu1 %vm1581_vm12, %v2362_v16  ;;  %5010 = vmatprep.subr.msk.bf16.mxu0 %vm1581_vm12, %v2364_v49 }
 0x9e9   :  { %2688 = vmatpush1.bf16.msra.mxu1 %v2420_v14  ;;  %2749 = vmatpush1.bf16.msra.mxu0 %v2426_v7 }
 0x9ec   :  { %5000 = vmatmul.mubr.msk.bf16.gmra.mrb[64].mxu1 %vm2385_vm14, %v7146_v51  ;;  %5004 = vmatmul.mubr.msk.bf16.gmra.mrb[68].mxu0 %vm2385_vm14, %v7146_v51 }
 0x9ed   :  { %2617 = vmatprep.mubr.bf16.mxu1 %v5980_v25  ;;  %2678 = vmatprep.mubr.bf16.mxu0 %v5980_v25 }
 0x9f4   :  { %5001 = vmatmul.mubr.msk.bf16.gmra.mrb[68].mxu1 %vm2385_vm14, %v7161_v54  ;;  %5005 = vmatmul.mubr.msk.bf16.gmra.mrb[72].mxu0 %vm2385_vm14, %v7161_v54  ;;  %v2289_v13 = vpop.f32.mrb[44].mxu1  ;;  %v2330_v27 = vpop.f32.mrb[48].mxu0 }
 0x9f5   :  { %v2291_v10 = vpop.f32.mrb[45].mxu1  ;;  %v2332_v23 = vpop.f32.mrb[49].mxu0  ;;  %2719 = vmatprep.mubr.bf16.mxu1 %v5980_v25  ;;  %2780 = vmatprep.mubr.bf16.mxu0 %v5980_v25  ;;  %v2365_v6 = vpack.c.bf16 %v2289_v13, %v2289_v13  ;;  %v2367_v22 = vpack.c.bf16 %v2330_v27, %v2330_v27 }
 0x9f6   :  { %v2366_v43 = vpack.c.bf16 %v2291_v10, %v2291_v10  ;;  %v2368_v2 = vpack.c.bf16 %v2332_v23, %v2332_v23  ;;  %v2293_v3 = vpop.f32.mrb[46].mxu1  ;;  %v2334_v18 = vpop.f32.mrb[50].mxu0 }
 0x9f7   :  { %v2294_v19 = vpop.f32.mrb[47].mxu1  ;;  %v2335_v56 = vpop.f32.mrb[51].mxu0  ;;  %v2432_v55 = vsel %vm1581_vm12, %v2365_v6, 0  ;;  %v2438_v35 = vsel %vm1581_vm12, %v2367_v22, 0 }
 0x9f8   :  { %5014 = vmatprep.subr.msk.bf16.mxu1 %vm1581_vm12, %v2366_v43  ;;  %5018 = vmatprep.subr.msk.bf16.mxu0 %vm1581_vm12, %v2368_v2  ;;  %v8101_v43 = vlaneseq }
 0x9fa   :  { %v7375_v2 = vshrl.u32 %v8101_v43, 7 }
 0x9fc   :  { %5007 = vmatmul.mubr.msk.bf16.vlgmr.msra.gmra.mrb[72].mxu1 %vm2385_vm14, %v7132_v34  ;;  %5011 = vmatmul.mubr.msk.bf16.vlgmr.msra.gmra.mrb[76].mxu0 %vm2385_vm14, %v7132_v34  ;;  %8252 = vst [vmem:[#allocation25_spill] sm:$0xff] %v7375_v2  ;;  %v8107_v33 = vsub.s32 1, %v7375_v2 }
 0x9fd   :  { %2810 = vmatpush1.bf16.msra.mxu1 %v2432_v55  ;;  %2871 = vmatpush1.bf16.msra.mxu0 %v2438_v35  ;;  %v8109_v55 = vsub.s32 0, %v7375_v2  ;;  %v8108_v35 = vsub.s32 2, %v7375_v2 }
 0x9fe   :  { %5022 = vmatprep.subr.msk.bf16.mxu1 %vm1581_vm12, %v2338_v50  ;;  %5026 = vmatprep.subr.msk.bf16.mxu0 %vm1581_vm12, %v2340_v39 }
 0x9ff   :  { %2729 = vmatprep.mubr.bf16.mxu1 %v5980_v25  ;;  %2790 = vmatprep.mubr.bf16.mxu0 %v5980_v25 }
 0xa04   :  { %5008 = vmatmul.mubr.msk.bf16.gmra.mrb[76].mxu1 %vm2385_vm14, %v7146_v51  ;;  %5012 = vmatmul.mubr.msk.bf16.gmra.mrb[80].mxu0 %vm2385_vm14, %v7146_v51 }
 0xa05   :  { %2739 = vmatprep.mubr.bf16.mxu1 %v5980_v25  ;;  %2800 = vmatprep.mubr.bf16.mxu0 %v5980_v25 }
 0xa0c   :  { %5009 = vmatmul.mubr.msk.bf16.gmra.mrb[80].mxu1 %vm2385_vm14, %v7161_v54  ;;  %5013 = vmatmul.mubr.msk.bf16.gmra.mrb[84].mxu0 %vm2385_vm14, %v7161_v54 }
 0xa0d   :  { %2841 = vmatprep.mubr.bf16.mxu1 %v5980_v25  ;;  %2902 = vmatprep.mubr.bf16.mxu0 %v5980_v25 }
 0xa14   :  { %5015 = vmatmul.mubr.msk.bf16.vlgmr.msra.gmra.mrb[84].mxu1 %vm2385_vm14, %v7132_v34  ;;  %5019 = vmatmul.mubr.msk.bf16.vlgmr.msra.gmra.mrb[88].mxu0 %vm2385_vm14, %v7132_v34  ;;  %v7259_v34 = vpack.c.bf16 %v2370_v20, %v2369_v5  ;;  %v7399_v5 = vrot.slane %v7387_v21, %v8108_v35  ;;  %v7404_v20 = vrot.slane %v7387_v21, %v8107_v33 }
 0xa15   :  { %2989 = vmatpush1.bf16.msra.mxu1 %v2941_v57  ;;  %3050 = vmatpush1.bf16.msra.mxu0 %v2947_v15  ;;  %v8106_v57 = vsub.s32 3, %v7375_v2 }
 0xa16   :  { %5030 = vmatprep.subr.msk.bf16.mxu1 %vm1581_vm12, %v2342_v29  ;;  %5034 = vmatprep.subr.msk.bf16.mxu0 %vm1581_vm12, %v2344_v12  ;;  %v7394_v12 = vrot.slane %v7387_v21, %v8109_v55 }
 0xa17   :  { %2851 = vmatprep.mubr.bf16.mxu1 %v5980_v25  ;;  %2912 = vmatprep.mubr.bf16.mxu0 %v5980_v25 }
 0xa1c   :  { %5016 = vmatmul.mubr.msk.bf16.gmra.mrb[88].mxu1 %vm2385_vm14, %v7146_v51  ;;  %5020 = vmatmul.mubr.msk.bf16.gmra.mrb[92].mxu0 %vm2385_vm14, %v7146_v51  ;;  %v2953_v51 = vsel %vm1581_vm12, %v2341_v46, 0  ;;  %v7409_v46 = vrot.slane %v7387_v21, %v8106_v57 }
 0xa1d   :  { %2861 = vmatprep.mubr.bf16.mxu1 %v5980_v25  ;;  %2922 = vmatprep.mubr.bf16.mxu0 %v5980_v25 }
 0xa24   :  { %5017 = vmatmul.mubr.msk.bf16.gmra.mrb[92].mxu1 %vm2385_vm14, %v7161_v54  ;;  %5021 = vmatmul.mubr.msk.bf16.gmra.mrb[96].mxu0 %vm2385_vm14, %v7161_v54 }
 0xa25   :  { %3020 = vmatprep.mubr.bf16.mxu1 %v5980_v25  ;;  %3081 = vmatprep.mubr.bf16.mxu0 %v5980_v25 }
 0xa2c   :  { %5023 = vmatmul.mubr.msk.bf16.vlgmr.msra.gmra.mrb[48].mxu1 %vm2385_vm14, %v7259_v34  ;;  %5027 = vmatmul.mubr.msk.bf16.vlgmr.msra.gmra.mrb[52].mxu0 %vm2385_vm14, %v7259_v34 }
 0xa2d   :  { %3111 = vmatpush1.bf16.msra.mxu1 %v2953_v51  ;;  %3172 = vmatpush1.bf16.msra.mxu0 %v2959_v26 }
 0xa2e   :  { %5038 = vmatprep.subr.msk.bf16.mxu1 %vm1581_vm12, %v2346_v61  ;;  %5042 = vmatprep.subr.msk.bf16.mxu0 %vm1581_vm12, %v2348_v62 }
 0xa2f   :  { %3030 = vmatprep.mubr.bf16.mxu1 %v5980_v25  ;;  %3091 = vmatprep.mubr.bf16.mxu0 %v5980_v25 }
 0xa34   :  { %5024 = vmatmul.mubr.msk.bf16.gmra.mrb[52].mxu1 %vm2385_vm14, %v2375_v45  ;;  %5028 = vmatmul.mubr.msk.bf16.gmra.mrb[56].mxu0 %vm2385_vm14, %v2375_v45 }
 0xa35   :  { %3040 = vmatprep.mubr.bf16.mxu1 %v5980_v25  ;;  %3101 = vmatprep.mubr.bf16.mxu0 %v5980_v25 }
 0xa3c   :  { %5025 = vmatmul.mubr.msk.bf16.gmra.mrb[96].mxu1 %vm2385_vm14, %v2376_v38  ;;  %5029 = vmatmul.mubr.msk.bf16.gmra.mrb[100].mxu0 %vm2385_vm14, %v2376_v38 }
 0xa3d   :  { %3142 = vmatprep.mubr.bf16.mxu1 %v5980_v25  ;;  %3203 = vmatprep.mubr.bf16.mxu0 %v5980_v25 }
 0xa44   :  { %5031 = vmatmul.mubr.msk.bf16.vlgmr.msra.gmra.mrb[60].mxu1 %vm2385_vm14, %v7259_v34  ;;  %5035 = vmatmul.mubr.msk.bf16.vlgmr.msra.gmra.mrb[64].mxu0 %vm2385_vm14, %v7259_v34 }
 0xa45   :  { %3233 = vmatpush1.bf16.msra.mxu1 %v2965_v40  ;;  %3294 = vmatpush1.bf16.msra.mxu0 %v2971_v24 }
 0xa46   :  { %5046 = vmatprep.subr.msk.bf16.mxu1 %vm1581_vm12, %v2350_v36  ;;  %5050 = vmatprep.subr.msk.bf16.mxu0 %vm1581_vm12, %v2352_v37 }
 0xa47   :  { %3152 = vmatprep.mubr.bf16.mxu1 %v5980_v25  ;;  %3213 = vmatprep.mubr.bf16.mxu0 %v5980_v25 }
 0xa4c   :  { %5032 = vmatmul.mubr.msk.bf16.gmra.mrb[64].mxu1 %vm2385_vm14, %v2375_v45  ;;  %5036 = vmatmul.mubr.msk.bf16.gmra.mrb[68].mxu0 %vm2385_vm14, %v2375_v45 }
 0xa4d   :  { %3162 = vmatprep.mubr.bf16.mxu1 %v5980_v25  ;;  %3223 = vmatprep.mubr.bf16.mxu0 %v5980_v25 }
 0xa54   :  { %5033 = vmatmul.mubr.msk.bf16.gmra.mrb[100].mxu1 %vm2385_vm14, %v2376_v38  ;;  %5037 = vmatmul.mubr.msk.bf16.gmra.mrb[104].mxu0 %vm2385_vm14, %v2376_v38 }
 0xa55   :  { %3264 = vmatprep.mubr.bf16.mxu1 %v5980_v25  ;;  %3325 = vmatprep.mubr.bf16.mxu0 %v5980_v25 }
 0xa5c   :  { %5039 = vmatmul.mubr.msk.bf16.vlgmr.msra.gmra.mrb[72].mxu1 %vm2385_vm14, %v7259_v34  ;;  %5043 = vmatmul.mubr.msk.bf16.vlgmr.msra.gmra.mrb[76].mxu0 %vm2385_vm14, %v7259_v34 }
 0xa5d   :  { %3355 = vmatpush1.bf16.msra.mxu1 %v2977_v32  ;;  %3416 = vmatpush1.bf16.msra.mxu0 %v2983_v48 }
 0xa5e   :  { %3274 = vmatprep.mubr.bf16.mxu1 %v5980_v25  ;;  %3335 = vmatprep.mubr.bf16.mxu0 %v5980_v25 }
 0xa64   :  { %5040 = vmatmul.mubr.msk.bf16.gmra.mrb[76].mxu1 %vm2385_vm14, %v2375_v45  ;;  %5044 = vmatmul.mubr.msk.bf16.gmra.mrb[80].mxu0 %vm2385_vm14, %v2375_v45 }
 0xa65   :  { %3284 = vmatprep.mubr.bf16.mxu1 %v5980_v25  ;;  %3345 = vmatprep.mubr.bf16.mxu0 %v5980_v25 }
 0xa6c   :  { %5041 = vmatmul.mubr.msk.bf16.gmra.mrb[104].mxu1 %vm2385_vm14, %v2376_v38  ;;  %5045 = vmatmul.mubr.msk.bf16.gmra.mrb[108].mxu0 %vm2385_vm14, %v2376_v38 }
 0xa6d   :  { %3386 = vmatprep.mubr.bf16.mxu1 %v5980_v25  ;;  %3447 = vmatprep.mubr.bf16.mxu0 %v5980_v25 }
 0xa74   :  { %5047 = vmatmul.mubr.msk.bf16.vlgmr.msra.gmra.mrb[84].mxu1 %vm2385_vm14, %v7259_v34  ;;  %5051 = vmatmul.mubr.msk.bf16.vlgmr.msra.gmra.mrb[88].mxu0 %vm2385_vm14, %v7259_v34 }
 0xa75   :  { %3396 = vmatprep.mubr.bf16.mxu1 %v5980_v25  ;;  %3457 = vmatprep.mubr.bf16.mxu0 %v5980_v25 }
 0xa7c   :  { %5048 = vmatmul.mubr.msk.bf16.gmra.mrb[88].mxu1 %vm2385_vm14, %v2375_v45  ;;  %5052 = vmatmul.mubr.msk.bf16.gmra.mrb[92].mxu0 %vm2385_vm14, %v2375_v45 }
 0xa7d   :  { %3406 = vmatprep.mubr.bf16.mxu1 %v5980_v25  ;;  %3467 = vmatprep.mubr.bf16.mxu0 %v5980_v25 }
 0xa84   :  { %5049 = vmatmul.mubr.msk.bf16.gmra.mrb[108].mxu1 %vm2385_vm14, %v2376_v38  ;;  %5053 = vmatmul.mubr.msk.bf16.gmra.mrb[112].mxu0 %vm2385_vm14, %v2376_v38 }
 0xaaf   :  { %v7350_v17 = vpop.f32.mrb[56].mxu1  ;;  %v7352_v9 = vpop.f32.mrb[60].mxu0 }
 0xab0   :  { %v7354_v54 = vpop.f32.mrb[57].mxu1  ;;  %v7356_v28 = vpop.f32.mrb[61].mxu0 }
 0xab1   :  { %v2501_v63 = vpop.f32.mrb[58].mxu1  ;;  %v2562_v31 = vpop.f32.mrb[62].mxu0 }
 0xab2   :  { %v2502_v58 = vpop.f32.mrb[59].mxu1  ;;  %v2563_v0 = vpop.f32.mrb[63].mxu0 }
 0xac7   :  { %v7358_v1 = vpop.f32.mrb[68].mxu1  ;;  %v7360_v16 = vpop.f32.mrb[72].mxu0 }
 0xac8   :  { %v7362_v25 = vpop.f32.mrb[69].mxu1  ;;  %v7364_v49 = vpop.f32.mrb[73].mxu0 }
 0xac9   :  { %v2623_v30 = vpop.f32.mrb[70].mxu1  ;;  %v2684_v59 = vpop.f32.mrb[74].mxu0 }
 0xaca   :  { %v2624_v14 = vpop.f32.mrb[71].mxu1  ;;  %v2685_v7 = vpop.f32.mrb[75].mxu0 }
 0xadf   :  { %v7366_v47 = vpop.f32.mrb[80].mxu1  ;;  %v7368_v60 = vpop.f32.mrb[84].mxu0 }
 0xae0   :  { %v7370_v13 = vpop.f32.mrb[81].mxu1  ;;  %v7372_v27 = vpop.f32.mrb[85].mxu0 }
 0xae1   :  { %v2745_v10 = vpop.f32.mrb[82].mxu1  ;;  %v2806_v23 = vpop.f32.mrb[86].mxu0 }
 0xae2   :  { %v2746_v6 = vpop.f32.mrb[83].mxu1  ;;  %v2807_v22 = vpop.f32.mrb[87].mxu0 }
 0xaf7   :  { %v7377_v3 = vpop.f32.mrb[92].mxu1  ;;  %v7379_v18 = vpop.f32.mrb[96].mxu0 }
 0xaf8   :  { %v7381_v19 = vpop.f32.mrb[93].mxu1  ;;  %v7383_v56 = vpop.f32.mrb[97].mxu0 }
 0xaf9   :  { %v2867_v50 = vpop.f32.mrb[94].mxu1  ;;  %v2928_v39 = vpop.f32.mrb[98].mxu0 }
 0xafa   :  { %v2868_v15 = vpop.f32.mrb[95].mxu1  ;;  %v2929_v29 = vpop.f32.mrb[99].mxu0 }
 0xaff   :  { %v3022_v41 = vpop.f32.mrb[48].mxu1  ;;  %v3083_v34 = vpop.f32.mrb[52].mxu0 }
 0xb00   :  { %v3560_v51 = vadd.f32 %v7394_v12, %v3022_v41  ;;  %v3562_v26 = vadd.f32 %v7399_v5, %v3083_v34  ;;  %v3024_v61 = vpop.f32.mrb[49].mxu1  ;;  %v3085_v62 = vpop.f32.mrb[53].mxu0 }
 0xb01   :  { %v3561_v52 = vadd.f32 %v7404_v20, %v3024_v61  ;;  %v3563_v53 = vadd.f32 %v7409_v46, %v3085_v62  ;;  %v3026_v45 = vpop.f32.mrb[50].mxu1  ;;  %v3087_v42 = vpop.f32.mrb[54].mxu0 }
 0xb02   :  { %v3640_v38 = vsub.f32 0.0, %v3560_v51  ;;  %v3642_v8 = vsub.f32 0.0, %v3562_v26  ;;  %v3576_v4 = vadd.f32 %v7394_v12, %v3026_v45  ;;  %v3578_v40 = vadd.f32 %v7399_v5, %v3087_v42  ;;  %v3028_v24 = vpop.f32.mrb[51].mxu1  ;;  %v3089_v36 = vpop.f32.mrb[55].mxu0 }
 0xb03   :  { %v3641_v37 = vsub.f32 0.0, %v3561_v52  ;;  %v3643_v44 = vsub.f32 0.0, %v3563_v53  ;;  %v3577_v11 = vadd.f32 %v7404_v20, %v3028_v24  ;;  %v3579_v32 = vadd.f32 %v7409_v46, %v3089_v36 }
 0xb04   :  { %v3720_v48 = vmul.f32 1.442695, %v3640_v38  ;;  %v3724_v63 = vmul.f32 1.442695, %v3642_v8  ;;  %v3656_v31 = vsub.f32 0.0, %v3576_v4  ;;  %v3658_v58 = vsub.f32 0.0, %v3578_v40 }
 0xb05   :  { %v3722_v0 = vmul.f32 1.442695, %v3641_v37  ;;  %v3726_v30 = vmul.f32 1.442695, %v3643_v44  ;;  %v3657_v59 = vsub.f32 0.0, %v3577_v11  ;;  %v3659_v14 = vsub.f32 0.0, %v3579_v32 }
 0xb06   :  { %5581 = vpow2.f32 %v3720_v48  ;;  %v3752_v7 = vmul.f32 1.442695, %v3656_v31  ;;  %v3756_v10 = vmul.f32 1.442695, %v3658_v58  ;;  %v8105_v48 = vsub.s32 4, %v7375_v2 }
 0xb07   :  { %5583 = vpow2.f32 %v3724_v63  ;;  %v3032_v23 = vpop.f32.mrb[52].mxu1  ;;  %v3093_v6 = vpop.f32.mrb[56].mxu0  ;;  %v3754_v22 = vmul.f32 1.442695, %v3657_v59  ;;  %v3758_v41 = vmul.f32 1.442695, %v3659_v14 }
 0xb08   :  { %5585 = vpow2.f32 %v3722_v0  ;;  %v3592_v50 = vadd.f32 %v7394_v12, %v3032_v23  ;;  %v3594_v39 = vadd.f32 %v7399_v5, %v3093_v6  ;;  %v3034_v15 = vpop.f32.mrb[53].mxu1  ;;  %v3095_v29 = vpop.f32.mrb[57].mxu0  ;;  %v8104_v59 = vsub.s32 6, %v7375_v2 }
 0xb09   :  { %5587 = vpow2.f32 %v3726_v30  ;;  %v3593_v34 = vadd.f32 %v7404_v20, %v3034_v15  ;;  %v3595_v51 = vadd.f32 %v7409_v46, %v3095_v29  ;;  %v3036_v26 = vpop.f32.mrb[54].mxu1  ;;  %v3097_v61 = vpop.f32.mrb[58].mxu0 }
 0xb0a   :  { %5589 = vpow2.f32 %v3752_v7  ;;  %v3672_v62 = vsub.f32 0.0, %v3592_v50  ;;  %v3674_v52 = vsub.f32 0.0, %v3594_v39  ;;  %v3608_v53 = vadd.f32 %v7394_v12, %v3036_v26  ;;  %v3038_v45 = vpop.f32.mrb[55].mxu1  ;;  %v3099_v42 = vpop.f32.mrb[59].mxu0 }
 0xb0b   :  { %5591 = vpow2.f32 %v3756_v10  ;;  %v3673_v38 = vsub.f32 0.0, %v3593_v34  ;;  %v3675_v8 = vsub.f32 0.0, %v3595_v51  ;;  %v3610_v31 = vadd.f32 %v7399_v5, %v3097_v61 }
 0xb0c   :  { %5593 = vpow2.f32 %v3754_v22  ;;  %v3784_v4 = vmul.f32 1.442695, %v3672_v62  ;;  %v3788_v40 = vmul.f32 1.442695, %v3674_v52  ;;  %v3688_v24 = vsub.f32 0.0, %v3608_v53 }
 0xb0d   :  { %5595 = vpow2.f32 %v3758_v41  ;;  %v3786_v36 = vmul.f32 1.442695, %v3673_v38  ;;  %v3790_v37 = vmul.f32 1.442695, %v3675_v8  ;;  %v3609_v15 = vadd.f32 %v7404_v20, %v3038_v45 }
 0xb0e   :  { %5597 = vpow2.f32 %v3784_v4  ;;  %v3816_v44 = vmul.f32 1.442695, %v3688_v24  ;;  %v3690_v62 = vsub.f32 0.0, %v3610_v31  ;;  %v3611_v38 = vadd.f32 %v7409_v46, %v3099_v42 }
 0xb0f   :  { %5599 = vpow2.f32 %v3788_v40  ;;  %v3042_v11 = vpop.f32.mrb[96].mxu1  ;;  %v3103_v32 = vpop.f32.mrb[100].mxu0  ;;  %v7443_v8 = vrot.slane %v7387_v21, %v8104_v59  ;;  %v3689_v24 = vsub.f32 0.0, %v3609_v15 }
 0xb10   :  { %v5582_v63 = vpop.eup %5581  ;;  %5601 = vpow2.f32 %v3786_v36  ;;  %v3043_v58 = vadd.f32 %v3042_v11, %v7350_v17  ;;  %v3044_v0 = vpop.f32.mrb[97].mxu1  ;;  %v3104_v10 = vadd.f32 %v3103_v32, %v7352_v9  ;;  %v8103_v17 = vsub.s32 5, %v7375_v2 }
 0xb11   :  { %v3105_v30 = vpop.f32.mrb[101].mxu0  ;;  %v5584_v14 = vpop.eup %5583  ;;  %v3880_v7 = vadd.f32 1.0, %v5582_v63  ;;  %5603 = vpow2.f32 %v3790_v37  ;;  %v3045_v23 = vadd.f32 %v3044_v0, %v7354_v54  ;;  %v7435_v9 = vrot.slane %v7387_v21, %v8105_v48 }
 0xb12   :  { %v3046_v6 = vpop.f32.mrb[98].mxu1  ;;  %v3107_v22 = vpop.f32.mrb[102].mxu0  ;;  %v3882_v39 = vadd.f32 1.0, %v5584_v14  ;;  %5605 = vpow2.f32 %v3816_v44  ;;  %v8102_v54 = vsub.s32 7, %v7375_v2  ;;  %v3106_v52 = vadd.f32 %v3105_v30, %v7356_v28 }
 0xb13   :  { %v5586_v50 = vpop.eup %5585  ;;  %v3047_v29 = vpop.f32.mrb[99].mxu1  ;;  %5607 = vrcp.f32 %v3880_v7  ;;  %v7448_v36 = vrot.slane %v7387_v21, %v8103_v17  ;;  %v3624_v44 = vadd.f32 %v7394_v12, %v3043_v58  ;;  %v3820_v31 = vmul.f32 1.442695, %v3690_v62 }
 0xb14   :  { %v5588_v41 = vpop.eup %5587  ;;  %v3881_v34 = vadd.f32 1.0, %v5586_v50  ;;  %v3108_v51 = vpop.f32.mrb[103].mxu0  ;;  %5609 = vrcp.f32 %v3882_v39  ;;  %v7454_v11 = vrot.slane %v7387_v21, %v8102_v54  ;;  %v3626_v0 = vadd.f32 %v7399_v5, %v3104_v10 }
 0xb15   :  { %v5590_v26 = vpop.eup %5589  ;;  %v3883_v61 = vadd.f32 1.0, %v5588_v41  ;;  %v3691_v22 = vsub.f32 0.0, %v3611_v38  ;;  %v3625_v12 = vadd.f32 %v7404_v20, %v3045_v23  ;;  %v3818_v15 = vmul.f32 1.442695, %v3689_v24 }
 0xb16   :  { %v5592_v53 = vpop.eup %5591  ;;  %5611 = vrcp.f32 %v3881_v34  ;;  %v3896_v45 = vadd.f32 1.0, %v5590_v26  ;;  %v3627_v29 = vadd.f32 %v7409_v46, %v3106_v52  ;;  %v3704_v51 = vsub.f32 0.0, %v3624_v44 }
 0xb17   :  { %v5594_v4 = vpop.eup %5593  ;;  %5613 = vrcp.f32 %v3883_v61  ;;  %v3898_v40 = vadd.f32 1.0, %v5592_v53  ;;  %v3144_v42 = vpop.f32.mrb[60].mxu1  ;;  %v3706_v62 = vsub.f32 0.0, %v3626_v0  ;;  %v3705_v52 = vsub.f32 0.0, %v3625_v12 }
 0xb18   :  { %v5596_v28 = vpop.eup %5595  ;;  %5615 = vrcp.f32 %v3896_v45  ;;  %v3897_v37 = vadd.f32 1.0, %v5594_v4  ;;  %v3205_v30 = vpop.f32.mrb[64].mxu0  ;;  %v3564_v26 = vadd.f32 %v7435_v9, %v3144_v42  ;;  %v3707_v24 = vsub.f32 0.0, %v3627_v29 }
 0xb19   :  { %v5598_v32 = vpop.eup %5597  ;;  %5617 = vrcp.f32 %v3898_v40  ;;  %v3899_v63 = vadd.f32 1.0, %v5596_v28  ;;  %v3146_v14 = vpop.f32.mrb[61].mxu1  ;;  %v3566_v53 = vadd.f32 %v7443_v8, %v3205_v30  ;;  %v3822_v40 = vmul.f32 1.442695, %v3691_v22 }
 0xb1a   :  { %v5600_v7 = vpop.eup %5599  ;;  %5619 = vrcp.f32 %v3897_v37  ;;  %v3912_v6 = vadd.f32 1.0, %v5598_v32  ;;  %v3207_v58 = vpop.f32.mrb[65].mxu0  ;;  %v3565_v38 = vadd.f32 %v7448_v36, %v3146_v14  ;;  %v3848_v44 = vmul.f32 1.442695, %v3704_v51 }
 0xb1b   :  { %v3148_v50 = vpop.f32.mrb[62].mxu1  ;;  %v5602_v39 = vpop.eup %5601  ;;  %5621 = vrcp.f32 %v3899_v63  ;;  %v3914_v21 = vadd.f32 1.0, %v5600_v7  ;;  %v3567_v28 = vadd.f32 %v7454_v11, %v3207_v58  ;;  %v3644_v42 = vsub.f32 0.0, %v3564_v26 }
 0xb1c   :  { %v3209_v41 = vpop.f32.mrb[66].mxu0  ;;  %v7459_v34 = vpop.f32.mrb[63].mxu1  ;;  %5623 = vrcp.f32 %v3912_v6  ;;  %v3913_v10 = vadd.f32 1.0, %v5602_v39  ;;  %v3580_v32 = vadd.f32 %v7435_v9, %v3148_v50  ;;  %v3852_v14 = vmul.f32 1.442695, %v3706_v62 }
 0xb1d   :  { %v5604_v5 = vpop.eup %5603  ;;  %v7462_v61 = vpop.f32.mrb[67].mxu0  ;;  %5625 = vrcp.f32 %v3914_v21  ;;  %v3646_v7 = vsub.f32 0.0, %v3566_v53  ;;  %v3582_v6 = vadd.f32 %v7443_v8, %v3209_v41  ;;  %v3850_v39 = vmul.f32 1.442695, %v3705_v52 }
 0xb1e   :  { %v5606_v20 = vpop.eup %5605  ;;  %v3915_v23 = vadd.f32 1.0, %v5604_v5  ;;  %5627 = vrcp.f32 %v3913_v10  ;;  %v3645_v50 = vsub.f32 0.0, %v3565_v38  ;;  %v3647_v10 = vsub.f32 0.0, %v3567_v28 }
 0xb1f   :  { %v7465_v45 = vpop.eup %5607  ;;  %v3928_v46 = vadd.f32 1.0, %v5606_v20  ;;  %v7474_v63 = vpop.f32.mrb[64].mxu1  ;;  %v3728_v20 = vmul.f32 1.442695, %v3644_v42  ;;  %v3732_v62 = vmul.f32 1.442695, %v3646_v7 }
 0xb20   :  { %v7468_v4 = vpop.eup %5609  ;;  %5629 = vrcp.f32 %v3915_v23  ;;  %v7476_v0 = vpop.f32.mrb[68].mxu0  ;;  %v3662_v53 = vsub.f32 0.0, %v3582_v6  ;;  %v3730_v52 = vmul.f32 1.442695, %v3645_v50  ;;  %v3581_v50 = vadd.f32 %v7448_v36, %v7459_v34 }
 0xb21   :  { %8253 = vst [vmem:[#allocation15_spill] sm:$0xff] %v7468_v4  ;;  %v7471_v37 = vpop.eup %5611  ;;  %5631 = vrcp.f32 %v3928_v46  ;;  %v7481_v22 = vpop.f32.mrb[65].mxu1 }
 0xb22   :  { %v7478_v30 = vpop.eup %5613  ;;  %5633 = vpow2.f32 %v3820_v31  ;;  %v7483_v12 = vpop.f32.mrb[69].mxu0  ;;  %v3854_v31 = vmul.f32 1.442695, %v3707_v24 }
 0xb23   :  { %v7485_v58 = vpop.eup %5615  ;;  %5635 = vpow2.f32 %v3818_v15  ;;  %v7487_v21 = vpop.f32.mrb[66].mxu1  ;;  %v3660_v15 = vsub.f32 0.0, %v3580_v32 }
 0xb24   :  { %8254 = vst [vmem:[#allocation26_spill] sm:$0xff] %v7485_v58  ;;  %v7489_v29 = vpop.f32.mrb[70].mxu0  ;;  %v7491_v5 = vpop.eup %5617  ;;  %5637 = vpow2.f32 %v3822_v40  ;;  %v3734_v40 = vmul.f32 1.442695, %v3647_v10 }
 0xb25   :  { %8255 = vst [vmem:[#allocation16_spill] sm:$0xff] %v7491_v5  ;;  %v7493_v51 = vpop.f32.mrb[67].mxu1  ;;  %v7495_v41 = vpop.f32.mrb[71].mxu0  ;;  %5639 = vpow2.f32 %v3848_v44  ;;  %v3760_v28 = vmul.f32 1.442695, %v3660_v15 }
 0xb26   :  { %v7497_v26 = vpop.eup %5619  ;;  %5641 = vpow2.f32 %v3852_v14  ;;  %v3764_v14 = vmul.f32 1.442695, %v3662_v53  ;;  %v3613_v35 = vadd.f32 %v7448_v36, %v7493_v51 }
 0xb27   :  { %v7499_v23 = vpop.eup %5621  ;;  %5643 = vpow2.f32 %v3850_v39  ;;  %v3164_v44 = vpop.f32.mrb[100].mxu1 }
 0xb28   :  { %v7501_v46 = vpop.eup %5623  ;;  %5645 = vpow2.f32 %v3854_v31  ;;  %v3225_v42 = vpop.f32.mrb[104].mxu0  ;;  %v7514_v31 = vadd.f32 %v3164_v44, %v7358_v1  ;;  %v3583_v1 = vadd.f32 %v7454_v11, %v7462_v61 }
 0xb29   :  { %8256 = vst [vmem:[#allocation45_spill] sm:$0xff] %v7501_v46  ;;  %v7503_v38 = vpop.eup %5625  ;;  %5647 = vpow2.f32 %v3728_v20  ;;  %v3166_v7 = vpop.f32.mrb[101].mxu1 }
 0xb2a   :  { %8257 = vst [vmem:[#allocation35_spill] sm:$0xff] %v7503_v38  ;;  %v7505_v24 = vpop.eup %5627  ;;  %5649 = vpow2.f32 %v3732_v62  ;;  %v3227_v6 = vpop.f32.mrb[105].mxu0  ;;  %v7517_v62 = vadd.f32 %v3225_v42, %v7360_v16  ;;  %v7520_v53 = vadd.f32 %v3166_v7, %v7362_v25  ;;  %v3596_v16 = vadd.f32 %v7435_v9, %v7474_v63 }
 0xb2b   :  { %8258 = vst [vmem:[#allocation46_spill] sm:$0xff] %v7505_v24  ;;  %v7507_v32 = vpop.eup %5629  ;;  %5651 = vpow2.f32 %v3730_v52  ;;  %v3168_v10 = vpop.f32.mrb[102].mxu1  ;;  %v7527_v25 = vadd.f32 %v3227_v6, %v7364_v49  ;;  %v3661_v7 = vsub.f32 0.0, %v3581_v50  ;;  %v3598_v6 = vadd.f32 %v7443_v8, %v7476_v0 }
 0xb2c   :  { %8259 = vst [vmem:[#allocation36_spill] sm:$0xff] %v7507_v32  ;;  %v7509_v43 = vpop.eup %5631  ;;  %5653 = vpow2.f32 %v3734_v40  ;;  %v3229_v20 = vpop.f32.mrb[106].mxu0  ;;  %v3599_v0 = vadd.f32 %v7454_v11, %v7483_v12 }
 0xb2d   :  { %8260 = vst [vmem:[#allocation65_spill] sm:$0xff] %v7509_v43  ;;  %v5634_v39 = vpop.eup %5633  ;;  %5655 = vpow2.f32 %v3760_v28  ;;  %v3169_v52 = vpop.f32.mrb[103].mxu1  ;;  %v3663_v20 = vsub.f32 0.0, %v3583_v1  ;;  %v3678_v33 = vsub.f32 0.0, %v3598_v6 }
 0xb2e   :  { %v5636_v15 = vpop.eup %5635  ;;  %v3930_v54 = vadd.f32 1.0, %v5634_v39  ;;  %v3230_v17 = vpop.f32.mrb[107].mxu0  ;;  %5657 = vpow2.f32 %v3764_v14 }
 0xb2f   :  { %v5638_v40 = vpop.eup %5637  ;;  %v3929_v59 = vadd.f32 1.0, %v5636_v15  ;;  %v7529_v14 = vpop.f32.mrb[72].mxu1 }
 0xb30   :  { %v5640_v34 = vpop.eup %5639  ;;  %5659 = vrcp.f32 %v3930_v54  ;;  %v3931_v44 = vadd.f32 1.0, %v5638_v40  ;;  %v7531_v39 = vpop.f32.mrb[76].mxu0 }
 0xb31   :  { %v5642_v10 = vpop.eup %5641  ;;  %5661 = vrcp.f32 %v3929_v59  ;;  %v3944_v28 = vadd.f32 1.0, %v5640_v34  ;;  %v7533_v59 = vpop.f32.mrb[73].mxu1  ;;  %v3676_v34 = vsub.f32 0.0, %v3596_v16  ;;  %v3766_v16 = vmul.f32 1.442695, %v3663_v20 }
 0xb32   :  { %v5644_v42 = vpop.eup %5643  ;;  %5663 = vrcp.f32 %v3931_v44  ;;  %v3946_v17 = vadd.f32 1.0, %v5642_v10  ;;  %v7535_v15 = vpop.f32.mrb[77].mxu0  ;;  %v3597_v44 = vadd.f32 %v7448_v36, %v7481_v22  ;;  %v3612_v22 = vadd.f32 %v7435_v9, %v7487_v21 }
 0xb33   :  { %v5646_v61 = vpop.eup %5645  ;;  %5665 = vrcp.f32 %v3944_v28  ;;  %v3945_v54 = vadd.f32 1.0, %v5644_v42  ;;  %v7539_v52 = vpop.f32.mrb[74].mxu1  ;;  %v3615_v21 = vadd.f32 %v7454_v11, %v7495_v41  ;;  %v3630_v41 = vadd.f32 %v7443_v8, %v7517_v62 }
 0xb34   :  { %v5648_v63 = vpop.eup %5647  ;;  %5667 = vrcp.f32 %v3946_v17  ;;  %v3947_v49 = vadd.f32 1.0, %v5646_v61  ;;  %v7543_v1 = vpop.f32.mrb[78].mxu0  ;;  %v3762_v17 = vmul.f32 1.442695, %v3661_v7  ;;  %v3677_v12 = vsub.f32 0.0, %v3597_v44 }
 0xb35   :  { %v5650_v50 = vpop.eup %5649  ;;  %5669 = vrcp.f32 %v3945_v54  ;;  %v3884_v40 = vadd.f32 1.0, %v5648_v63  ;;  %v7545_v10 = vpop.f32.mrb[75].mxu1  ;;  %v3628_v44 = vadd.f32 %v7435_v9, %v7514_v31  ;;  %v3693_v31 = vsub.f32 0.0, %v3613_v35 }
 0xb36   :  { %v5652_v28 = vpop.eup %5651  ;;  %5671 = vrcp.f32 %v3947_v49  ;;  %v3886_v42 = vadd.f32 1.0, %v5650_v50  ;;  %v7549_v61 = vpop.f32.mrb[79].mxu0  ;;  %v3614_v49 = vadd.f32 %v7443_v8, %v7489_v29  ;;  %v3792_v29 = vmul.f32 1.442695, %v3676_v34 }
 0xb37   :  { %v5654_v48 = vpop.eup %5653  ;;  %5673 = vrcp.f32 %v3884_v40  ;;  %v3885_v54 = vadd.f32 1.0, %v5652_v28  ;;  %v3679_v28 = vsub.f32 0.0, %v3599_v0  ;;  %v3796_v0 = vmul.f32 1.442695, %v3678_v33 }
 0xb38   :  { %v5656_v63 = vpop.eup %5655  ;;  %5675 = vrcp.f32 %v3886_v42  ;;  %v3887_v57 = vadd.f32 1.0, %v5654_v48  ;;  %v7561_v48 = vpop.f32.mrb[76].mxu1  ;;  %v3692_v42 = vsub.f32 0.0, %v3612_v22  ;;  %v3794_v9 = vmul.f32 1.442695, %v3677_v12 }
 0xb39   :  { %v5658_v7 = vpop.eup %5657  ;;  %5677 = vrcp.f32 %v3885_v54  ;;  %v3900_v50 = vadd.f32 1.0, %v5656_v63  ;;  %v7567_v54 = vpop.f32.mrb[80].mxu0  ;;  %v3694_v63 = vsub.f32 0.0, %v3614_v49  ;;  %v3629_v22 = vadd.f32 %v7448_v36, %v7520_v53 }
 0xb3a   :  { %v7557_v40 = vpop.eup %5659  ;;  %5679 = vrcp.f32 %v3887_v57  ;;  %v3902_v20 = vadd.f32 1.0, %v5658_v7  ;;  %v7569_v51 = vpop.f32.mrb[77].mxu1  ;;  %v3798_v8 = vmul.f32 1.442695, %v3679_v28  ;;  %v3695_v62 = vsub.f32 0.0, %v3615_v21 }
 0xb3b   :  { %8261 = vst [vmem:[#allocation55_spill] sm:$0xff] %v7557_v40  ;;  %v7563_v6 = vpop.eup %5661  ;;  %5681 = vrcp.f32 %v3900_v50  ;;  %v7575_v7 = vpop.f32.mrb[81].mxu0  ;;  %v3708_v12 = vsub.f32 0.0, %v3628_v44  ;;  %v3828_v36 = vmul.f32 1.442695, %v3694_v63  ;;  %v3710_v53 = vsub.f32 0.0, %v3630_v41 }
 0xb3c   :  { %8262 = vst [vmem:[#allocation66_spill] sm:$0xff] %v7563_v6  ;;  %v7571_v57 = vpop.eup %5663  ;;  %5683 = vrcp.f32 %v3902_v20  ;;  %v7577_v50 = vpop.f32.mrb[78].mxu1  ;;  %v3826_v38 = vmul.f32 1.442695, %v3693_v31  ;;  %v3830_v28 = vmul.f32 1.442695, %v3695_v62 }
 0xb3d   :  { %8263 = vst [vmem:[#allocation56_spill] sm:$0xff] %v7571_v57  ;;  %v7579_v34 = vpop.eup %5665  ;;  %5685 = vpow2.f32 %v3762_v17  ;;  %v7583_v55 = vpop.f32.mrb[82].mxu0  ;;  %v3824_v17 = vmul.f32 1.442695, %v3692_v42  ;;  %v7601_v42 = vld [vmem:[#allocation5 + $0x8] sm:$0xff] }
 0xb3e   :  { %8264 = vst [vmem:[#allocation75_spill] sm:$0xff] %v7579_v34  ;;  %v7585_v20 = vpop.f32.mrb[79].mxu1  ;;  %v7587_v33 = vpop.eup %5667  ;;  %5687 = vpow2.f32 %v3766_v16  ;;  %v3860_v41 = vmul.f32 1.442695, %v3710_v53 }
 0xb3f   :  { %8265 = vst [vmem:[#allocation76_spill] sm:$0xff] %v7587_v33  ;;  %v7589_v49 = vpop.f32.mrb[83].mxu0  ;;  %v7591_v40 = vpop.eup %5669  ;;  %5689 = vpow2.f32 %v3792_v29  ;;  %v3709_v33 = vsub.f32 0.0, %v3629_v22  ;;  %v3856_v29 = vmul.f32 1.442695, %v3708_v12 }
 0xb40   :  { %8266 = vst [vmem:[#allocation27_spill] sm:$0xff] %v7591_v40  ;;  %v7593_v35 = vpop.eup %5671  ;;  %5691 = vpow2.f32 %v3796_v0  ;;  %v3286_v21 = vpop.f32.mrb[104].mxu1 }
 0xb41   :  { %8267 = vst [vmem:[#allocation17_spill] sm:$0xff] %v7593_v35  ;;  %v7595_v34 = vpop.eup %5673  ;;  %5693 = vpow2.f32 %v3794_v9  ;;  %v3347_v43 = vpop.f32.mrb[108].mxu0 }
 0xb42   :  { %8268 = vst [vmem:[#allocation28_spill] sm:$0xff] %v7595_v34  ;;  %v7597_v16 = vpop.eup %5675  ;;  %5695 = vpow2.f32 %v3798_v8  ;;  %v3288_v44 = vpop.f32.mrb[105].mxu1  ;;  %v3858_v8 = vmul.f32 1.442695, %v3709_v33  ;;  %v7622_v33 = vadd.f32 %v3286_v21, %v7366_v47 }
 0xb43   :  { %8269 = vst [vmem:[#allocation18_spill] sm:$0xff] %v7597_v16  ;;  %v7599_v40 = vpop.eup %5677  ;;  %5697 = vpow2.f32 %v3824_v17  ;;  %v3349_v0 = vpop.f32.mrb[109].mxu0  ;;  %v8274_v17 = vsub.s32 0, %v7375_v2 }
 0xb44   :  { %8270 = vst [vmem:[#allocation47_spill] sm:$0xff] %v7599_v40  ;;  %v7603_v63 = vpop.eup %5679  ;;  %5699 = vpow2.f32 %v3828_v36  ;;  %v3290_v9 = vpop.f32.mrb[106].mxu1 }
 0xb45   :  { %8271 = vst [vmem:[#allocation37_spill] sm:$0xff] %v7603_v63  ;;  %v3351_v31 = vpop.f32.mrb[110].mxu0  ;;  %v7605_v22 = vpop.eup %5681  ;;  %5701 = vpow2.f32 %v3826_v38  ;;  %v7612_v12 = vrot.slane %v7601_v42, %v8274_v17  ;;  %v8275_v63 = vsub.s32 2, %v7375_v2  ;;  %v3631_v38 = vadd.f32 %v7454_v11, %v7527_v25 }
 0xb46   :  { %8272 = vst [vmem:[#allocation48_spill] sm:$0xff] %v7605_v22  ;;  %v3291_v62 = vpop.f32.mrb[107].mxu1  ;;  %v3352_v16 = vpop.f32.mrb[111].mxu0  ;;  %5703 = vpow2.f32 %v3830_v28  ;;  %v7628_v31 = vadd.f32 %v3288_v44, %v7370_v13  ;;  %v8276_v11 = vsub.s32 1, %v7375_v2 }
 0xb47   :  { %v7607_v34 = vpop.eup %5683  ;;  %v7617_v36 = vrot.slane %v7601_v42, %v8275_v63  ;;  %5705 = vpow2.f32 %v3856_v29  ;;  %v7625_v16 = vadd.f32 %v3347_v43, %v7368_v60  ;;  %v7631_v63 = vadd.f32 %v3349_v0, %v7372_v27  ;;  %v7640_v21 = vpop.f32.mrb[84].mxu1 }
 0xb48   :  { %8273 = vst [vmem:[#allocation38_spill] sm:$0xff] %v7607_v34  ;;  %v5686_v53 = vpop.eup %5685  ;;  %5707 = vpow2.f32 %v3860_v41  ;;  %v7636_v47 = vrot.slane %v7601_v42, %v8276_v11  ;;  %v3568_v43 = vadd.f32 %v7612_v12, %v7529_v14  ;;  %v7642_v13 = vpop.f32.mrb[88].mxu0  ;;  %v3711_v0 = vsub.f32 0.0, %v3631_v38 }
 0xb49   :  { %v5688_v28 = vpop.eup %5687  ;;  %v3901_v9 = vadd.f32 1.0, %v5686_v53  ;;  %5709 = vpow2.f32 %v3858_v8  ;;  %v8277_v41 = vsub.s32 3, %v7375_v2  ;;  %v7649_v17 = vpop.f32.mrb[85].mxu1 }
 0xb4a   :  { %v5690_v62 = vpop.eup %5689  ;;  %v3903_v29 = vadd.f32 1.0, %v5688_v28  ;;  %v7651_v53 = vpop.f32.mrb[89].mxu0  ;;  %v3862_v35 = vmul.f32 1.442695, %v3711_v0 }
 0xb4b   :  { %v5692_v25 = vpop.eup %5691  ;;  %5711 = vrcp.f32 %v3901_v9  ;;  %v3916_v60 = vadd.f32 1.0, %v5690_v62  ;;  %v7647_v8 = vrot.slane %v7601_v42, %v8277_v41  ;;  %v3570_v9 = vadd.f32 %v7617_v36, %v7531_v39  ;;  %v7655_v62 = vpop.f32.mrb[86].mxu1 }
 0xb4c   :  { %v5694_v27 = vpop.eup %5693  ;;  %5713 = vrcp.f32 %v3903_v29  ;;  %v3918_v44 = vadd.f32 1.0, %v5692_v25  ;;  %v7657_v29 = vpop.f32.mrb[90].mxu0  ;;  %v3569_v25 = vadd.f32 %v7636_v47, %v7533_v59  ;;  %v3584_v59 = vadd.f32 %v7612_v12, %v7539_v52 }
 0xb4d   :  { %v5696_v28 = vpop.eup %5695  ;;  %5715 = vrcp.f32 %v3916_v60  ;;  %v3917_v14 = vadd.f32 1.0, %v5694_v27  ;;  %v7661_v41 = vpop.f32.mrb[87].mxu1  ;;  %v3648_v27 = vsub.f32 0.0, %v3568_v43  ;;  %v3571_v46 = vadd.f32 %v7647_v8, %v7535_v15 }
 0xb4e   :  { %v5698_v38 = vpop.eup %5697  ;;  %5717 = vrcp.f32 %v3918_v44  ;;  %v3919_v11 = vadd.f32 1.0, %v5696_v28  ;;  %v7663_v34 = vpop.f32.mrb[91].mxu0  ;;  %v3650_v57 = vsub.f32 0.0, %v3570_v9  ;;  %v3586_v43 = vadd.f32 %v7617_v36, %v7543_v1 }
 0xb4f   :  { %v5700_v22 = vpop.eup %5699  ;;  %5719 = vrcp.f32 %v3917_v14  ;;  %v3932_v60 = vadd.f32 1.0, %v5698_v38  ;;  %v3649_v14 = vsub.f32 0.0, %v3569_v25  ;;  %v3736_v0 = vmul.f32 1.442695, %v3648_v27 }
 0xb50   :  { %v5702_v40 = vpop.eup %5701  ;;  %5721 = vrcp.f32 %v3919_v11  ;;  %v3934_v39 = vadd.f32 1.0, %v5700_v22  ;;  %v3585_v15 = vadd.f32 %v7636_v47, %v7545_v10  ;;  %v7673_v11 = vpop.f32.mrb[88].mxu1  ;;  %v3587_v25 = vadd.f32 %v7647_v8, %v7549_v61 }
 0xb51   :  { %v5704_v44 = vpop.eup %5703  ;;  %5723 = vrcp.f32 %v3932_v60  ;;  %v3933_v28 = vadd.f32 1.0, %v5702_v40  ;;  %v7675_v40 = vpop.f32.mrb[92].mxu0  ;;  %v3651_v60 = vsub.f32 0.0, %v3571_v46  ;;  %v3664_v10 = vsub.f32 0.0, %v3584_v59 }
 0xb52   :  { %v5706_v32 = vpop.eup %5705  ;;  %5725 = vrcp.f32 %v3934_v39  ;;  %v3935_v6 = vadd.f32 1.0, %v5704_v44  ;;  %v7679_v39 = vpop.f32.mrb[89].mxu1  ;;  %v3600_v44 = vadd.f32 %v7612_v12, %v7561_v48  ;;  %v3740_v46 = vmul.f32 1.442695, %v3650_v57 }
 0xb53   :  { %v5708_v38 = vpop.eup %5707  ;;  %5727 = vrcp.f32 %v3933_v28  ;;  %v3948_v22 = vadd.f32 1.0, %v5706_v32  ;;  %v7681_v1 = vpop.f32.mrb[93].mxu0  ;;  %v3602_v61 = vadd.f32 %v7617_v36, %v7567_v54  ;;  %v3738_v59 = vmul.f32 1.442695, %v3649_v14 }
 0xb54   :  { %v5710_v9 = vpop.eup %5709  ;;  %5729 = vrcp.f32 %v3935_v6  ;;  %v3950_v52 = vadd.f32 1.0, %v5708_v38  ;;  %v7687_v28 = vpop.f32.mrb[90].mxu1  ;;  %v3666_v38 = vsub.f32 0.0, %v3586_v43  ;;  %v3601_v48 = vadd.f32 %v7636_v47, %v7569_v51 }
 0xb55   :  { %v7683_v32 = vpop.eup %5711  ;;  %5731 = vrcp.f32 %v3948_v22  ;;  %v3949_v27 = vadd.f32 1.0, %v5710_v9  ;;  %v7693_v24 = vpop.f32.mrb[94].mxu0  ;;  %v3665_v9 = vsub.f32 0.0, %v3585_v15  ;;  %v3742_v57 = vmul.f32 1.442695, %v3651_v60 }
 0xb56   :  { %8278 = vst [vmem:[#allocation67_spill] sm:$0xff] %v7683_v32  ;;  %v7689_v6 = vpop.eup %5713  ;;  %5733 = vrcp.f32 %v3950_v52  ;;  %v7695_v5 = vpop.f32.mrb[91].mxu1  ;;  %v3667_v43 = vsub.f32 0.0, %v3587_v25  ;;  %v3603_v54 = vadd.f32 %v7647_v8, %v7575_v7  ;;  %v3772_v15 = vmul.f32 1.442695, %v3666_v38 }
 0xb57   :  { %8279 = vst [vmem:[#allocation57_spill] sm:$0xff] %v7689_v6  ;;  %v7697_v22 = vpop.eup %5715  ;;  %5735 = vrcp.f32 %v3949_v27  ;;  %v7701_v32 = vpop.f32.mrb[95].mxu0  ;;  %v3680_v27 = vsub.f32 0.0, %v3600_v44  ;;  %v3682_v51 = vsub.f32 0.0, %v3602_v61 }
 0xb58   :  { %8280 = vst [vmem:[#allocation68_spill] sm:$0xff] %v7697_v22  ;;  %v7703_v52 = vpop.eup %5717  ;;  %5737 = vpow2.f32 %v3862_v35  ;;  %v3768_v22 = vmul.f32 1.442695, %v3664_v10  ;;  %v3681_v35 = vsub.f32 0.0, %v3601_v48  ;;  %v3774_v25 = vmul.f32 1.442695, %v3667_v43 }
 0xb59   :  { %8281 = vst [vmem:[#allocation58_spill] sm:$0xff] %v7703_v52  ;;  %v7707_v6 = vpop.eup %5719  ;;  %5739 = vpow2.f32 %v3736_v0  ;;  %v3770_v52 = vmul.f32 1.442695, %v3665_v9  ;;  %v3683_v7 = vsub.f32 0.0, %v3603_v54  ;;  %v3408_v58 = vpop.f32.mrb[108].mxu1 }
 0xb5a   :  { %8282 = vst [vmem:[#allocation77_spill] sm:$0xff] %v7707_v6  ;;  %v7709_v14 = vpop.eup %5721  ;;  %5741 = vpow2.f32 %v3740_v46  ;;  %v3469_v6 = vpop.f32.mrb[112].mxu0  ;;  %v3800_v10 = vmul.f32 1.442695, %v3680_v27  ;;  %v3804_v61 = vmul.f32 1.442695, %v3682_v51  ;;  %v7728_v51 = vadd.f32 %v3408_v58, %v7377_v3 }
 0xb5b   :  { %v7711_v4 = vpop.eup %5723  ;;  %5743 = vpow2.f32 %v3738_v59  ;;  %v3410_v44 = vpop.f32.mrb[109].mxu1 }
 0xb5c   :  { %8283 = vst [vmem:[#allocation78_spill] sm:$0xff] %v7711_v4  ;;  %v7713_v60 = vpop.eup %5725  ;;  %5745 = vpow2.f32 %v3742_v57  ;;  %v3471_v46 = vpop.f32.mrb[113].mxu0  ;;  %v3802_v57 = vmul.f32 1.442695, %v3681_v35  ;;  %v3806_v4 = vmul.f32 1.442695, %v3683_v7 }
 0xb5d   :  { %8284 = vst [vmem:[#allocation29_spill] sm:$0xff] %v7713_v60  ;;  %v7715_v0 = vpop.eup %5727  ;;  %5747 = vpow2.f32 %v3768_v22  ;;  %v3412_v59 = vpop.f32.mrb[110].mxu1  ;;  %v7737_v7 = vadd.f32 %v3471_v46, %v7383_v56 }
 0xb5e   :  { %v7717_v38 = vpop.eup %5729  ;;  %5749 = vpow2.f32 %v3772_v15  ;;  %v3473_v9 = vpop.f32.mrb[114].mxu0  ;;  %v3616_v15 = vadd.f32 %v7612_v12, %v7577_v50  ;;  %v3618_v50 = vadd.f32 %v7617_v36, %v7583_v55  ;;  %v8286_v55 = vsub.s32 6, %v7375_v2 }
 0xb5f   :  { %v7719_v48 = vpop.eup %5731  ;;  %5751 = vpow2.f32 %v3770_v52  ;;  %v3413_v43 = vpop.f32.mrb[111].mxu1  ;;  %v7731_v52 = vadd.f32 %v3469_v6, %v7379_v18  ;;  %v3617_v9 = vadd.f32 %v7636_v47, %v7585_v20  ;;  %v8287_v20 = vsub.s32 5, %v7375_v2 }
 0xb60   :  { %v3474_v54 = vpop.f32.mrb[115].mxu0  ;;  %v7721_v60 = vpop.eup %5733  ;;  %5753 = vpow2.f32 %v3774_v25  ;;  %v7734_v25 = vadd.f32 %v3410_v44, %v7381_v19  ;;  %v8285_v19 = vsub.s32 4, %v7375_v2  ;;  %v3696_v46 = vsub.f32 0.0, %v3616_v15 }
 0xb61   :  { %v7723_v22 = vpop.eup %5735  ;;  %5755 = vpow2.f32 %v3800_v10  ;;  %v3619_v15 = vadd.f32 %v7647_v8, %v7589_v49 }
 0xb62   :  { %v5738_v27 = vpop.eup %5737  ;;  %5757 = vpow2.f32 %v3804_v61  ;;  %v7746_v56 = vrot.slane %v7601_v42, %v8285_v19 }
 0xb63   :  { %v5740_v35 = vpop.eup %5739  ;;  %v3951_v59 = vadd.f32 1.0, %v5738_v27  ;;  %5759 = vpow2.f32 %v3802_v57  ;;  %v7751_v57 = vrot.slane %v7601_v42, %v8286_v55  ;;  %v3698_v27 = vsub.f32 0.0, %v3618_v50 }
 0xb64   :  { %v5742_v10 = vpop.eup %5741  ;;  %v3888_v61 = vadd.f32 1.0, %v5740_v35  ;;  %5761 = vpow2.f32 %v3806_v4  ;;  %v7756_v35 = vrot.slane %v7601_v42, %v8287_v20  ;;  %v3697_v50 = vsub.f32 0.0, %v3617_v9 }
 0xb65   :  { %v5744_v3 = vpop.eup %5743  ;;  %5763 = vrcp.f32 %v3951_v59  ;;  %v3890_v58 = vadd.f32 1.0, %v5742_v10  ;;  %v3634_v55 = vadd.f32 %v7617_v36, %v7625_v16  ;;  %v3836_v20 = vmul.f32 1.442695, %v3698_v27 }
 0xb66   :  { %v5746_v18 = vpop.eup %5745  ;;  %5765 = vrcp.f32 %v3888_v61  ;;  %v3889_v6 = vadd.f32 1.0, %v5744_v3  ;;  %v8288_v61 = vsub.s32 7, %v7375_v2  ;;  %v3572_v36 = vadd.f32 %v7746_v56, %v7640_v21 }
 0xb67   :  { %v5748_v44 = vpop.eup %5747  ;;  %5767 = vrcp.f32 %v3890_v58  ;;  %v3891_v4 = vadd.f32 1.0, %v5746_v18 }
 0xb68   :  { %v5750_v43 = vpop.eup %5749  ;;  %5769 = vrcp.f32 %v3889_v6  ;;  %v3904_v54 = vadd.f32 1.0, %v5748_v44  ;;  %v7763_v3 = vrot.slane %v7601_v42, %v8288_v61  ;;  %v3632_v6 = vadd.f32 %v7612_v12, %v7622_v33 }
 0xb69   :  { %v5752_v59 = vpop.eup %5751  ;;  %5771 = vrcp.f32 %v3891_v4  ;;  %v3906_v10 = vadd.f32 1.0, %v5750_v43  ;;  %v3832_v4 = vmul.f32 1.442695, %v3696_v46  ;;  %v3633_v42 = vadd.f32 %v7636_v47, %v7628_v31 }
 0xb6a   :  { %v5754_v58 = vpop.eup %5753  ;;  %5773 = vrcp.f32 %v3904_v54  ;;  %v3905_v18 = vadd.f32 1.0, %v5752_v59  ;;  %v3699_v59 = vsub.f32 0.0, %v3619_v15  ;;  %v3635_v12 = vadd.f32 %v7647_v8, %v7631_v63 }
 0xb6b   :  { %v5756_v19 = vpop.eup %5755  ;;  %5775 = vrcp.f32 %v3906_v10  ;;  %v3907_v44 = vadd.f32 1.0, %v5754_v58  ;;  %v3712_v10 = vsub.f32 0.0, %v3632_v6  ;;  %v3714_v61 = vsub.f32 0.0, %v3634_v55 }
 0xb6c   :  { %v5758_v49 = vpop.eup %5757  ;;  %5777 = vrcp.f32 %v3905_v18  ;;  %v3920_v43 = vadd.f32 1.0, %v5756_v19  ;;  %v3574_v31 = vadd.f32 %v7751_v57, %v7642_v13  ;;  %v3834_v15 = vmul.f32 1.442695, %v3697_v50 }
 0xb6d   :  { %v5760_v54 = vpop.eup %5759  ;;  %5779 = vrcp.f32 %v3907_v44  ;;  %v3922_v9 = vadd.f32 1.0, %v5758_v49  ;;  %v3713_v63 = vsub.f32 0.0, %v3633_v42  ;;  %v3573_v8 = vadd.f32 %v7756_v35, %v7649_v17 }
 0xb6e   :  { %v5762_v33 = vpop.eup %5761  ;;  %5781 = vrcp.f32 %v3920_v43  ;;  %v3921_v46 = vadd.f32 1.0, %v5760_v54  ;;  %v3838_v21 = vmul.f32 1.442695, %v3699_v59  ;;  %v3715_v18 = vsub.f32 0.0, %v3635_v12 }
 0xb6f   :  { %v7775_v16 = vpop.eup %5763  ;;  %5783 = vrcp.f32 %v3922_v9  ;;  %v3923_v27 = vadd.f32 1.0, %v5762_v33  ;;  %v3575_v6 = vadd.f32 %v7763_v3, %v7651_v53  ;;  %v3864_v13 = vmul.f32 1.442695, %v3712_v10 }
 0xb70   :  { %v7779_v47 = vpop.eup %5765  ;;  %5785 = vrcp.f32 %v3921_v46  ;;  %v3652_v44 = vsub.f32 0.0, %v3572_v36  ;;  %v3588_v50 = vadd.f32 %v7746_v56, %v7655_v62  ;;  %v3868_v17 = vmul.f32 1.442695, %v3714_v61 }
 0xb71   :  { %v7783_v58 = vpop.eup %5767  ;;  %5787 = vrcp.f32 %v3923_v27  ;;  %v3654_v49 = vsub.f32 0.0, %v3574_v31  ;;  %v3866_v42 = vmul.f32 1.442695, %v3713_v63  ;;  %v3653_v54 = vsub.f32 0.0, %v3573_v8 }
 0xb72   :  { %v7787_v19 = vpop.eup %5769  ;;  %5789 = vpow2.f32 %v3832_v4  ;;  %v3870_v53 = vmul.f32 1.442695, %v3715_v18  ;;  %v3655_v4 = vsub.f32 0.0, %v3575_v6  ;;  %v3744_v12 = vmul.f32 1.442695, %v3652_v44 }
 0xb73   :  { %v7791_v55 = vpop.eup %5771  ;;  %5791 = vpow2.f32 %v3836_v20  ;;  %v3668_v62 = vsub.f32 0.0, %v3588_v50  ;;  %v3748_v20 = vmul.f32 1.442695, %v3654_v49  ;;  %v3746_v10 = vmul.f32 1.442695, %v3653_v54 }
 0xb74   :  { %v7793_v43 = vpop.eup %5773  ;;  %5793 = vpow2.f32 %v3834_v15  ;;  %v3750_v27 = vmul.f32 1.442695, %v3655_v4  ;;  %v3591_v54 = vadd.f32 %v7763_v3, %v7663_v34 }
 0xb75   :  { %v7795_v9 = vpop.eup %5775  ;;  %5795 = vpow2.f32 %v3838_v21  ;;  %v3776_v31 = vmul.f32 1.442695, %v3668_v62 }
 0xb76   :  { %v7797_v59 = vpop.eup %5777  ;;  %5797 = vpow2.f32 %v3864_v13  ;;  %v3590_v13 = vadd.f32 %v7751_v57, %v7657_v29 }
 0xb77   :  { %v7799_v33 = vpop.eup %5779  ;;  %5799 = vpow2.f32 %v3868_v17 }
 0xb78   :  { %v7801_v46 = vpop.eup %5781  ;;  %5801 = vpow2.f32 %v3866_v42  ;;  %v3589_v42 = vadd.f32 %v7756_v35, %v7661_v41 }
 0xb79   :  { %v7803_v36 = vpop.eup %5783  ;;  %5803 = vpow2.f32 %v3870_v53 }
 0xb7a   :  { %v7805_v61 = vpop.eup %5785  ;;  %5805 = vpow2.f32 %v3744_v12  ;;  %v3604_v12 = vadd.f32 %v7746_v56, %v7673_v11  ;;  %v3669_v34 = vsub.f32 0.0, %v3589_v42  ;;  %v3605_v11 = vadd.f32 %v7756_v35, %v7679_v39 }
 0xb7b   :  { %v7807_v15 = vpop.eup %5787  ;;  %5807 = vpow2.f32 %v3748_v20  ;;  %v3670_v20 = vsub.f32 0.0, %v3590_v13  ;;  %v3620_v42 = vadd.f32 %v7746_v56, %v7687_v28  ;;  %v3622_v39 = vadd.f32 %v7751_v57, %v7693_v24 }
 0xb7c   :  { %v5790_v63 = vpop.eup %5789  ;;  %5809 = vpow2.f32 %v3746_v10 }
 0xb7d   :  { %v5792_v8 = vpop.eup %5791  ;;  %v3936_v21 = vadd.f32 1.0, %v5790_v63  ;;  %5811 = vpow2.f32 %v3750_v27 }
 0xb7e   :  { %v5794_v18 = vpop.eup %5793  ;;  %v3938_v6 = vadd.f32 1.0, %v5792_v8  ;;  %5813 = vpow2.f32 %v3776_v31  ;;  %v3606_v31 = vadd.f32 %v7751_v57, %v7675_v40  ;;  %v3671_v8 = vsub.f32 0.0, %v3591_v54 }
 0xb7f   :  { %v5796_v44 = vpop.eup %5795  ;;  %5815 = vrcp.f32 %v3936_v21  ;;  %v3937_v50 = vadd.f32 1.0, %v5794_v18 }
 0xb80   :  { %v5798_v17 = vpop.eup %5797  ;;  %5817 = vrcp.f32 %v3938_v6  ;;  %v3939_v49 = vadd.f32 1.0, %v5796_v44  ;;  %v3684_v6 = vsub.f32 0.0, %v3604_v12  ;;  %v3778_v12 = vmul.f32 1.442695, %v3669_v34 }
 0xb81   :  { %v5800_v53 = vpop.eup %5799  ;;  %5819 = vrcp.f32 %v3937_v50  ;;  %v3952_v4 = vadd.f32 1.0, %v5798_v17  ;;  %v3780_v50 = vmul.f32 1.442695, %v3670_v20  ;;  %v3607_v17 = vadd.f32 %v7763_v3, %v7681_v1 }
 0xb82   :  { %v5802_v62 = vpop.eup %5801  ;;  %5821 = vrcp.f32 %v3939_v49  ;;  %v3954_v29 = vadd.f32 1.0, %v5800_v53  ;;  %v3686_v53 = vsub.f32 0.0, %v3606_v31  ;;  %v3685_v20 = vsub.f32 0.0, %v3605_v11 }
 0xb83   :  { %v5804_v10 = vpop.eup %5803  ;;  %5823 = vrcp.f32 %v3952_v4  ;;  %v3953_v27 = vadd.f32 1.0, %v5802_v62  ;;  %v3621_v1 = vadd.f32 %v7756_v35, %v7695_v5  ;;  %v3687_v28 = vsub.f32 0.0, %v3607_v17 }
 0xb84   :  { %v5806_v41 = vpop.eup %5805  ;;  %5825 = vrcp.f32 %v3954_v29  ;;  %v3955_v63 = vadd.f32 1.0, %v5804_v10  ;;  %v3623_v31 = vadd.f32 %v7763_v3, %v7701_v32  ;;  %v3808_v24 = vmul.f32 1.442695, %v3684_v6 }
 0xb85   :  { %v5808_v21 = vpop.eup %5807  ;;  %5827 = vrcp.f32 %v3953_v27  ;;  %v3892_v18 = vadd.f32 1.0, %v5806_v41  ;;  %v3782_v27 = vmul.f32 1.442695, %v3671_v8  ;;  %v3636_v34 = vadd.f32 %v7746_v56, %v7728_v51 }
 0xb86   :  { %v5810_v44 = vpop.eup %5809  ;;  %5829 = vrcp.f32 %v3955_v63  ;;  %v3894_v13 = vadd.f32 1.0, %v5808_v21  ;;  %v3700_v63 = vsub.f32 0.0, %v3620_v42  ;;  %v3812_v5 = vmul.f32 1.442695, %v3686_v53 }
 0xb87   :  { %v5812_v40 = vpop.eup %5811  ;;  %5831 = vrcp.f32 %v3892_v18  ;;  %v3893_v49 = vadd.f32 1.0, %v5810_v44  ;;  %v3702_v18 = vsub.f32 0.0, %v3622_v39  ;;  %v3638_v8 = vadd.f32 %v7751_v57, %v7731_v52 }
 0xb88   :  { %v5814_v54 = vpop.eup %5813  ;;  %5833 = vrcp.f32 %v3894_v13  ;;  %v3895_v4 = vadd.f32 1.0, %v5812_v40  ;;  %v3810_v32 = vmul.f32 1.442695, %v3685_v20  ;;  %v3701_v44 = vsub.f32 0.0, %v3621_v1 }
 0xb89   :  { %v7827_v62 = vpop.eup %5815  ;;  %5835 = vrcp.f32 %v3893_v49  ;;  %v3908_v29 = vadd.f32 1.0, %v5814_v54  ;;  %v3814_v6 = vmul.f32 1.442695, %v3687_v28  ;;  %v3703_v17 = vsub.f32 0.0, %v3623_v31 }
 0xb8a   :  { %v7831_v10 = vpop.eup %5817  ;;  %5837 = vrcp.f32 %v3895_v4  ;;  %v3840_v51 = vmul.f32 1.442695, %v3700_v63  ;;  %v3716_v56 = vsub.f32 0.0, %v3636_v34  ;;  %v3844_v49 = vmul.f32 1.442695, %v3702_v18 }
 0xb8b   :  { %v7835_v41 = vpop.eup %5819  ;;  %5839 = vrcp.f32 %v3908_v29  ;;  %v3718_v52 = vsub.f32 0.0, %v3638_v8  ;;  %v3842_v53 = vmul.f32 1.442695, %v3701_v44  ;;  %v3846_v54 = vmul.f32 1.442695, %v3703_v17 }
 0xb8c   :  { %v7839_v21 = vpop.eup %5821  ;;  %5841 = vpow2.f32 %v3780_v50  ;;  %v3637_v8 = vadd.f32 %v7756_v35, %v7734_v25 }
 0xb8d   :  { %v7843_v11 = vpop.eup %5823  ;;  %5843 = vpow2.f32 %v3778_v12  ;;  %v3872_v12 = vmul.f32 1.442695, %v3716_v56  ;;  %v3876_v29 = vmul.f32 1.442695, %v3718_v52 }
 0xb8e   :  { %v7845_v13 = vpop.eup %5825  ;;  %5845 = vpow2.f32 %v3782_v27 }
 0xb8f   :  { %v7847_v40 = vpop.eup %5827  ;;  %5847 = vpow2.f32 %v3808_v24 }
 0xb90   :  { %v7849_v50 = vpop.eup %5829  ;;  %5849 = vpow2.f32 %v3812_v5 }
 0xb91   :  { %v7851_v57 = vpop.eup %5831  ;;  %5851 = vpow2.f32 %v3810_v32 }
 0xb92   :  { %v7853_v42 = vpop.eup %5833  ;;  %5853 = vpow2.f32 %v3814_v6  ;;  %v3639_v6 = vadd.f32 %v7763_v3, %v7737_v7 }
 0xb93   :  { %v7855_v4 = vpop.eup %5835  ;;  %5855 = vpow2.f32 %v3840_v51 }
 0xb94   :  { %v7857_v39 = vpop.eup %5837  ;;  %5857 = vpow2.f32 %v3844_v49  ;;  %v3719_v25 = vsub.f32 0.0, %v3639_v6 }
 0xb95   :  { %v7859_v20 = vpop.eup %5839  ;;  %5859 = vpow2.f32 %v3842_v53 }
 0xb96   :  { %v5842_v1 = vpop.eup %5841  ;;  %5861 = vpow2.f32 %v3846_v54  ;;  %v3717_v54 = vsub.f32 0.0, %v3637_v8 }
 0xb97   :  { %v5844_v27 = vpop.eup %5843  ;;  %v3910_v28 = vadd.f32 1.0, %v5842_v1  ;;  %5863 = vpow2.f32 %v3872_v12 }
 0xb98   :  { %v5846_v31 = vpop.eup %5845  ;;  %v3909_v24 = vadd.f32 1.0, %v5844_v27  ;;  %5865 = vpow2.f32 %v3876_v29 }
 0xb99   :  { %v5848_v63 = vpop.eup %5847  ;;  %5867 = vrcp.f32 %v3910_v28  ;;  %v3911_v34 = vadd.f32 1.0, %v5846_v31  ;;  %v3874_v31 = vmul.f32 1.442695, %v3717_v54 }
 0xb9a   :  { %v5850_v5 = vpop.eup %5849  ;;  %5869 = vrcp.f32 %v3909_v24  ;;  %v3924_v18 = vadd.f32 1.0, %v5848_v63 }
 0xb9b   :  { %v5852_v32 = vpop.eup %5851  ;;  %5871 = vrcp.f32 %v3911_v34  ;;  %v3926_v44 = vadd.f32 1.0, %v5850_v5  ;;  %v3878_v34 = vmul.f32 1.442695, %v3719_v25 }
 0xb9c   :  { %v5854_v17 = vpop.eup %5853  ;;  %5873 = vrcp.f32 %v3924_v18  ;;  %v3925_v51 = vadd.f32 1.0, %v5852_v32 }
 0xb9d   :  { %v5856_v56 = vpop.eup %5855  ;;  %5875 = vrcp.f32 %v3926_v44  ;;  %v3927_v49 = vadd.f32 1.0, %v5854_v17 }
 0xb9e   :  { %v5858_v52 = vpop.eup %5857  ;;  %5877 = vrcp.f32 %v3925_v51  ;;  %v3940_v53 = vadd.f32 1.0, %v5856_v56 }
 0xb9f   :  { %v5860_v12 = vpop.eup %5859  ;;  %5879 = vrcp.f32 %v3927_v49  ;;  %v3942_v29 = vadd.f32 1.0, %v5858_v52 }
 0xba0   :  { %v5862_v35 = vpop.eup %5861  ;;  %5881 = vrcp.f32 %v3940_v53  ;;  %v3941_v1 = vadd.f32 1.0, %v5860_v12 }
 0xba1   :  { %v5864_v27 = vpop.eup %5863  ;;  %5883 = vrcp.f32 %v3942_v29  ;;  %v3943_v7 = vadd.f32 1.0, %v5862_v35 }
 0xba2   :  { %v5866_v3 = vpop.eup %5865  ;;  %5885 = vrcp.f32 %v3941_v1  ;;  %v3956_v28 = vadd.f32 1.0, %v5864_v27 }
 0xba3   :  { %v7865_v24 = vpop.eup %5867  ;;  %5887 = vrcp.f32 %v3943_v7  ;;  %v3958_v63 = vadd.f32 1.0, %v5866_v3 }
 0xba4   :  { %v7867_v5 = vpop.eup %5869  ;;  %5889 = vrcp.f32 %v3956_v28 }
 0xba5   :  { %v7869_v18 = vpop.eup %5871  ;;  %5891 = vrcp.f32 %v3958_v63 }
 0xba6   :  { %v7871_v8 = vpop.eup %5873  ;;  %5893 = vpow2.f32 %v3874_v31 }
 0xba7   :  { %v7873_v32 = vpop.eup %5875  ;;  %5895 = vpow2.f32 %v3878_v34 }
 0xba8   :  { %v7875_v44 = vpop.eup %5877 }
 0xba9   :  { %v7877_v6 = vpop.eup %5879 }
 0xbaa   :  { %v7879_v17 = vpop.eup %5881 }
 0xbab   :  { %v7881_v51 = vpop.eup %5883 }
 0xbac   :  { %v7883_v56 = vpop.eup %5885 }
 0xbad   :  { %v7885_v49 = vpop.eup %5887 }
 0xbae   :  { %v7887_v52 = vpop.eup %5889 }
 0xbaf   :  { %8289 = vst [vmem:[#allocation19_spill] sm:$0xff] %v7887_v52  ;;  %v7889_v53 = vpop.eup %5891 }
 0xbb0   :  { %8290 = vst [vmem:[#allocation30_spill] sm:$0xff] %v7889_v53  ;;  %v5894_v54 = vpop.eup %5893 }
 0xbb1   :  { %v5896_v12 = vpop.eup %5895  ;;  %v3957_v29 = vadd.f32 1.0, %v5894_v54 }
 0xbb2   :  { %v3959_v25 = vadd.f32 1.0, %v5896_v12 }
 0xbb3   :  { %5897 = vrcp.f32 %v3957_v29 }
 0xbb4   :  { %5899 = vrcp.f32 %v3959_v25 }
 0xbbd   :  { %v7891_v35 = vpop.eup %5897 }
 0xbbe   :  { %v7893_v1 = vpop.eup %5899 }
 0xbbf   :  { %8291 = vst [vmem:[#allocation20_spill] sm:$0xff] %v7893_v1 }
 0xbc0   :  { %5969 = dma.done.wait [#allocation4 + $0x1], 16384 }
 0xbc1   :  { %5970 = vsyncadd [#allocation4 + $0x1], 4294950912  ;;  %v4046_v27 = vpack.c.bf16 %v7497_v26, %v7471_v37  ;;  %v4048_v7 = vpack.c.bf16 %v7499_v23, %v7478_v30  ;;  %v4101_v3 = vld [vmem:[#allocation3 + $0x40] sm:$0xff]  ;;  %v4102_v34 = vld [vmem:[#allocation3 + $0x48] sm:$0xff]  ;;  %vm4720_vm15 = vcmask 293888   ;;  %vm4803_vm1 = vcmask 46080  }
 0xbc2   :  { %v4117_v28 = vld [vmem:[#allocation3 + $0xc0] sm:$0xff]  ;;  %5085 = vmatprep.subr.bf16.mxu1 %v4101_v3  ;;  %v4118_v54 = vld [vmem:[#allocation3 + $0xc8] sm:$0xff]  ;;  %v4103_v37 = vld [vmem:[#allocation3 + $0x50] sm:$0xff] }
 0xbc3   :  { %4257 = vmatprep.mubr.bf16.mxu1 %v4046_v27  ;;  %4313 = vmatprep.mubr.bf16.mxu0 %v4048_v7  ;;  %v4093_v31 = vld [vmem:[#allocation3] sm:$0xff]  ;;  %v4094_v12 = vld [vmem:[#allocation3 + $0x8] sm:$0xff]  ;;  %v4119_v26 = vld [vmem:[#allocation3 + $0xd0] sm:$0xff] }
 0xbc4   :  { %5119 = vmatprep.subr.bf16.mxu0 %v4117_v28  ;;  %v4109_v63 = vld [vmem:[#allocation3 + $0x80] sm:$0xff]  ;;  %5086 = vmatpush3.bf16.msra.mxu1 %v4093_v31  ;;  %v4110_v29 = vld [vmem:[#allocation3 + $0x88] sm:$0xff]  ;;  %v4095_v30 = vld [vmem:[#allocation3 + $0x10] sm:$0xff] }
 0xbc5   :  { %5120 = vmatpush3.bf16.msra.mxu0 %v4109_v63  ;;  %5087 = vmatprep.subr.bf16.mxu1 %v4102_v34  ;;  %v4111_v23 = vld [vmem:[#allocation3 + $0x90] sm:$0xff]  ;;  %v4104_v25 = vld [vmem:[#allocation3 + $0x58] sm:$0xff]  ;;  %v4105_v28 = vld [vmem:[#allocation3 + $0x60] sm:$0xff] }
 0xbc6   :  { %5121 = vmatprep.subr.bf16.mxu0 %v4118_v54  ;;  %v4120_v27 = vld [vmem:[#allocation3 + $0xd8] sm:$0xff]  ;;  %v4121_v31 = vld [vmem:[#allocation3 + $0xe0] sm:$0xff]  ;;  %v4106_v54 = vld [vmem:[#allocation3 + $0x68] sm:$0xff] }
 0xbc7   :  { %v4096_v7 = vld [vmem:[#allocation3 + $0x18] sm:$0xff]  ;;  %v4097_v63 = vld [vmem:[#allocation3 + $0x20] sm:$0xff] }
 0xbc8   :  { %5088 = vmatpush3.bf16.msra.mxu1 %v4094_v12  ;;  %v4112_v3 = vld [vmem:[#allocation3 + $0x98] sm:$0xff]  ;;  %v4113_v34 = vld [vmem:[#allocation3 + $0xa0] sm:$0xff]  ;;  %v4122_v12 = vld [vmem:[#allocation3 + $0xe8] sm:$0xff] }
 0xbc9   :  { %5122 = vmatpush3.bf16.msra.mxu0 %v4110_v29  ;;  %5089 = vmatprep.subr.bf16.mxu1 %v4103_v37  ;;  %v4098_v29 = vld [vmem:[#allocation3 + $0x28] sm:$0xff]  ;;  %v8297_v53 = vld [vmem:[#allocation36_spill] sm:$0xff] }
 0xbca   :  { %5123 = vmatprep.subr.bf16.mxu0 %v4119_v26  ;;  %v4114_v37 = vld [vmem:[#allocation3 + $0xa8] sm:$0xff]  ;;  %v4107_v26 = vld [vmem:[#allocation3 + $0x70] sm:$0xff]  ;;  %v8298_v52 = vld [vmem:[#allocation56_spill] sm:$0xff] }
 0xbcb   :  { %v4064_v1 = vpack.c.bf16 %v8298_v52, %v8297_v53  ;;  %v4127_v52 = vld [vmem:[#allocation3 + $0x110] sm:$0xff] }
 0xbcc   :  { %5090 = vmatpush3.bf16.msra.mxu1 %v4095_v30  ;;  %v4123_v30 = vld [vmem:[#allocation3 + $0xf0] sm:$0xff] }
 0xbcd   :  { %5124 = vmatpush3.bf16.msra.mxu0 %v4111_v23  ;;  %5091 = vmatprep.subr.bf16.mxu1 %v4104_v25  ;;  %v4099_v23 = vld [vmem:[#allocation3 + $0x30] sm:$0xff] }
 0xbce   :  { %5125 = vmatprep.subr.bf16.mxu0 %v4120_v27  ;;  %v4115_v25 = vld [vmem:[#allocation3 + $0xb0] sm:$0xff]  ;;  %v4108_v27 = vld [vmem:[#allocation3 + $0x78] sm:$0xff] }
 0xbcf   :  { %v4143_v53 = vld [vmem:[#allocation3 + $0x190] sm:$0xff] }
 0xbd0   :  { %5092 = vmatpush3.bf16.msra.mxu1 %v4096_v7  ;;  %v4124_v7 = vld [vmem:[#allocation3 + $0xf8] sm:$0xff] }
 0xbd1   :  { %5126 = vmatpush3.bf16.msra.mxu0 %v4112_v3  ;;  %5093 = vmatprep.subr.bf16.mxu1 %v4105_v28  ;;  %v4100_v3 = vld [vmem:[#allocation3 + $0x38] sm:$0xff] }
 0xbd2   :  { %5127 = vmatprep.subr.bf16.mxu0 %v4121_v31  ;;  %v4116_v28 = vld [vmem:[#allocation3 + $0xb8] sm:$0xff]  ;;  %v4133_v31 = vld [vmem:[#allocation3 + $0x140] sm:$0xff] }
 0xbd4   :  { %5094 = vmatpush3.bf16.msra.mxu1 %v4097_v63  ;;  %v4149_v63 = vld [vmem:[#allocation3 + $0x1c0] sm:$0xff] }
 0xbd5   :  { %5128 = vmatpush3.bf16.msra.mxu0 %v4113_v34  ;;  %5095 = vmatprep.subr.bf16.mxu1 %v4106_v54  ;;  %v8292_v34 = vld [vmem:[#allocation26_spill] sm:$0xff] }
 0xbd6   :  { %5129 = vmatprep.subr.bf16.mxu0 %v4122_v12  ;;  %v4045_v54 = vpack.c.bf16 %v8292_v34, %v7465_v45  ;;  %v8293_v12 = vld [vmem:[#allocation15_spill] sm:$0xff]  ;;  %v4126_v45 = vld [vmem:[#allocation3 + $0x108] sm:$0xff]  ;;  %v8300_v34 = vld [vmem:[#allocation65_spill] sm:$0xff] }
 0xbd8   :  { %5096 = vmatpush3.bf16.msra.mxu1 %v4098_v29  ;;  %v8294_v29 = vld [vmem:[#allocation16_spill] sm:$0xff] }
 0xbd9   :  { %5130 = vmatpush3.bf16.msra.mxu0 %v4114_v37  ;;  %5097 = vmatprep.subr.bf16.mxu1 %v4107_v26  ;;  %v4047_v37 = vpack.c.bf16 %v8294_v29, %v8293_v12  ;;  %v4125_v26 = vld [vmem:[#allocation3 + $0x100] sm:$0xff]  ;;  %v8301_v29 = vld [vmem:[#allocation35_spill] sm:$0xff] }
 0xbda   :  { %5131 = vmatprep.subr.bf16.mxu0 %v4123_v30  ;;  %v4141_v30 = vld [vmem:[#allocation3 + $0x180] sm:$0xff] }
 0xbdc   :  { %5098 = vmatpush3.bf16.msra.mxu1 %v4099_v23  ;;  %v4134_v23 = vld [vmem:[#allocation3 + $0x148] sm:$0xff] }
 0xbdd   :  { %5132 = vmatpush3.bf16.msra.mxu0 %v4115_v25  ;;  %5099 = vmatprep.subr.bf16.mxu1 %v4108_v27  ;;  %v4150_v25 = vld [vmem:[#allocation3 + $0x1c8] sm:$0xff] }
 0xbde   :  { %5133 = vmatprep.subr.bf16.mxu0 %v4124_v7  ;;  %v8295_v27 = vld [vmem:[#allocation46_spill] sm:$0xff] }
 0xbdf   :  { %v8296_v7 = vld [vmem:[#allocation66_spill] sm:$0xff] }
 0xbe0   :  { %5100 = vmatpush3.bf16.msra.mxu1 %v4100_v3  ;;  %v4062_v2 = vpack.c.bf16 %v8296_v7, %v8295_v27  ;;  %v4142_v3 = vld [vmem:[#allocation3 + $0x188] sm:$0xff]  ;;  %v8302_v27 = vld [vmem:[#allocation55_spill] sm:$0xff] }
 0xbe1   :  { %5134 = vmatpush3.bf16.msra.mxu0 %v4116_v28  ;;  %5153 = vmatprep.subr.bf16.mxu1 %v4133_v31  ;;  %v4135_v28 = vld [vmem:[#allocation3 + $0x150] sm:$0xff]  ;;  %v4063_v7 = vpack.c.bf16 %v8302_v27, %v8301_v29  ;;  %v4145_v29 = vld [vmem:[#allocation3 + $0x1a0] sm:$0xff]  ;;  %v4138_v27 = vld [vmem:[#allocation3 + $0x168] sm:$0xff] }
 0xbe2   :  { %5187 = vmatprep.subr.bf16.mxu0 %v4149_v63  ;;  %v4151_v31 = vld [vmem:[#allocation3 + $0x1d0] sm:$0xff]  ;;  %v8299_v63 = vld [vmem:[#allocation45_spill] sm:$0xff] }
 0xbe3   :  { %4258 = vmatmul.mubr.bf16.vlgmr.msra.gmra.mrb[112].mxu1 %v4045_v54  ;;  %v4061_v12 = vpack.c.bf16 %v8300_v34, %v8299_v63  ;;  %v4136_v54 = vld [vmem:[#allocation3 + $0x158] sm:$0xff] }
 0xbe4   :  { %4314 = vmatmul.mubr.bf16.vlgmr.msra.gmra.mrb[116].mxu0 %v4047_v37  ;;  %5154 = vmatpush3.bf16.msra.mxu1 %v4125_v26  ;;  %v4152_v37 = vld [vmem:[#allocation3 + $0x1d8] sm:$0xff]  ;;  %v8303_v26 = vld [vmem:[#allocation27_spill] sm:$0xff] }
 0xbe5   :  { %5188 = vmatpush3.bf16.msra.mxu0 %v4141_v30  ;;  %5155 = vmatprep.subr.bf16.mxu1 %v4134_v23  ;;  %v4078_v30 = vpack.c.bf16 %v8303_v26, %v8303_v26  ;;  %v8304_v23 = vld [vmem:[#allocation17_spill] sm:$0xff]  ;;  %v8306_v63 = vld [vmem:[#allocation76_spill] sm:$0xff] }
 0xbe6   :  { %5189 = vmatprep.subr.bf16.mxu0 %v4150_v25  ;;  %4265 = vmatprep.mubr.bf16.mxu1 %v4062_v2  ;;  %v4080_v2 = vpack.c.bf16 %v8304_v23, %v8304_v23  ;;  %v4144_v25 = vld [vmem:[#allocation3 + $0x198] sm:$0xff]  ;;  %v4079_v34 = vpack.c.bf16 %v8306_v63, %v8306_v63  ;;  %v8310_v26 = vld [vmem:[#allocation57_spill] sm:$0xff]  ;;  %v4130_v23 = vld [vmem:[#allocation3 + $0x128] sm:$0xff] }
 0xbe7   :  { %4321 = vmatprep.mubr.bf16.mxu0 %v4064_v1  ;;  %v4128_v1 = vld [vmem:[#allocation3 + $0x118] sm:$0xff] }
 0xbe8   :  { %5156 = vmatpush3.bf16.msra.mxu1 %v4126_v45  ;;  %v4137_v45 = vld [vmem:[#allocation3 + $0x160] sm:$0xff]  ;;  %v4156_v63 = vld [vmem:[#allocation3 + $0x1f8] sm:$0xff] }
 0xbe9   :  { %5190 = vmatpush3.bf16.msra.mxu0 %v4142_v3  ;;  %5157 = vmatprep.subr.bf16.mxu1 %v4135_v28  ;;  %v4153_v3 = vld [vmem:[#allocation3 + $0x1e0] sm:$0xff]  ;;  %v8305_v28 = vld [vmem:[#allocation75_spill] sm:$0xff] }
 0xbea   :  { %5191 = vmatprep.subr.bf16.mxu0 %v4151_v31  ;;  %v4077_v31 = vpack.c.bf16 %v8305_v28, %v8305_v28  ;;  %v4140_v28 = vld [vmem:[#allocation3 + $0x178] sm:$0xff] }
 0xbeb   :  { %4266 = vmatmul.mubr.bf16.gmra.mrb[116].mxu1 %v4061_v12  ;;  %v4129_v12 = vld [vmem:[#allocation3 + $0x120] sm:$0xff] }
 0xbec   :  { %4322 = vmatmul.mubr.bf16.gmra.mrb[120].mxu0 %v4063_v7  ;;  %5158 = vmatpush3.bf16.msra.mxu1 %v4127_v52  ;;  %v4154_v7 = vld [vmem:[#allocation3 + $0x1e8] sm:$0xff]  ;;  %v8307_v52 = vld [vmem:[#allocation47_spill] sm:$0xff] }
 0xbed   :  { %5192 = vmatpush3.bf16.msra.mxu0 %v4143_v53  ;;  %5159 = vmatprep.subr.bf16.mxu1 %v4136_v54  ;;  %v8308_v53 = vld [vmem:[#allocation67_spill] sm:$0xff] }
 0xbee   :  { %5193 = vmatprep.subr.bf16.mxu0 %v4152_v37  ;;  %4273 = vmatprep.mubr.bf16.mxu1 %v4078_v30  ;;  %v4050_v54 = vpack.c.bf16 %v8308_v53, %v8307_v52  ;;  %v8309_v37 = vld [vmem:[#allocation37_spill] sm:$0xff]  ;;  %v8313_v53 = vld [vmem:[#allocation18_spill] sm:$0xff] }
 0xbef   :  { %4329 = vmatprep.mubr.bf16.mxu0 %v4080_v2  ;;  %v4052_v30 = vpack.c.bf16 %v8310_v26, %v8309_v37  ;;  %v4146_v2 = vld [vmem:[#allocation3 + $0x1a8] sm:$0xff]  ;;  %v4157_v26 = vld [vmem:[#allocation3 + $0x200] sm:$0xff] }
 0xbf0   :  { %5160 = vmatpush3.bf16.msra.mxu1 %v4128_v1  ;;  %v4139_v1 = vld [vmem:[#allocation3 + $0x170] sm:$0xff] }
 0xbf1   :  { %5194 = vmatpush3.bf16.msra.mxu0 %v4144_v25  ;;  %5161 = vmatprep.subr.bf16.mxu1 %v4137_v45  ;;  %v4155_v25 = vld [vmem:[#allocation3 + $0x1f0] sm:$0xff] }
 0xbf2   :  { %5195 = vmatprep.subr.bf16.mxu0 %v4153_v3  ;;  %v4131_v45 = vld [vmem:[#allocation3 + $0x130] sm:$0xff] }
 0xbf3   :  { %4274 = vmatmul.mubr.bf16.gmra.mrb[120].mxu1 %v4077_v31  ;;  %v4147_v3 = vld [vmem:[#allocation3 + $0x1b0] sm:$0xff]  ;;  %v4132_v31 = vld [vmem:[#allocation3 + $0x138] sm:$0xff] }
 0xbf4   :  { %4330 = vmatmul.mubr.bf16.gmra.mrb[124].mxu0 %v4079_v34  ;;  %5162 = vmatpush3.bf16.msra.mxu1 %v4129_v12  ;;  %v4148_v34 = vld [vmem:[#allocation3 + $0x1b8] sm:$0xff]  ;;  %v4165_v12 = vld [vmem:[#allocation3 + $0x240] sm:$0xff] }
 0xbf5   :  { %5196 = vmatpush3.bf16.msra.mxu0 %v4145_v29  ;;  %5163 = vmatprep.subr.bf16.mxu1 %v4138_v27  ;;  %v4181_v29 = vld [vmem:[#allocation3 + $0x2c0] sm:$0xff]  ;;  %v8311_v27 = vld [vmem:[#allocation28_spill] sm:$0xff] }
 0xbf6   :  { %5197 = vmatprep.subr.bf16.mxu0 %v4154_v7  ;;  %4369 = vmatprep.mubr.bf16.mxu1 %v4050_v54  ;;  %v8312_v7 = vld [vmem:[#allocation48_spill] sm:$0xff]  ;;  %v8314_v54 = vld [vmem:[#allocation38_spill] sm:$0xff] }
 0xbf7   :  { %4425 = vmatprep.mubr.bf16.mxu0 %v4052_v30  ;;  %v4049_v52 = vpack.c.bf16 %v8312_v7, %v8311_v27  ;;  %v4051_v37 = vpack.c.bf16 %v8314_v54, %v8313_v53  ;;  %v4173_v30 = vld [vmem:[#allocation3 + $0x280] sm:$0xff]  ;;  %v8318_v27 = vld [vmem:[#allocation58_spill] sm:$0xff]  ;;  %v4184_v53 = vld [vmem:[#allocation3 + $0x2d8] sm:$0xff]  ;;  %v4082_v54 = vpack.c.bf16 %v7723_v22, %v7723_v22  ;;  %v4083_v22 = vpack.c.bf16 %v7721_v60, %v7721_v60 }
 0xbf8   :  { %5164 = vmatpush3.bf16.msra.mxu1 %v4130_v23  ;;  %v4166_v23 = vld [vmem:[#allocation3 + $0x248] sm:$0xff] }
 0xbf9   :  { %5198 = vmatpush3.bf16.msra.mxu0 %v4146_v2  ;;  %5165 = vmatprep.subr.bf16.mxu1 %v4139_v1  ;;  %v4182_v2 = vld [vmem:[#allocation3 + $0x2c8] sm:$0xff]  ;;  %v8315_v1 = vld [vmem:[#allocation77_spill] sm:$0xff] }
 0xbfa   :  { %5199 = vmatprep.subr.bf16.mxu0 %v4155_v25  ;;  %v4066_v25 = vpack.c.bf16 %v7715_v0, %v8315_v1  ;;  %v8319_v0 = vld [vmem:[#allocation29_spill] sm:$0xff]  ;;  %v4081_v1 = vpack.c.bf16 %v7719_v48, %v7719_v48  ;;  %v4162_v60 = vld [vmem:[#allocation3 + $0x228] sm:$0xff] }
 0xbfb   :  { %v4067_v7 = vpack.c.bf16 %v8319_v0, %v8318_v27  ;;  %v4178_v48 = vld [vmem:[#allocation3 + $0x2a8] sm:$0xff]  ;;  %v4197_v27 = vld [vmem:[#allocation3 + $0x340] sm:$0xff] }
 0xbfc   :  { %5166 = vmatpush3.bf16.msra.mxu1 %v4131_v45  ;;  %v4068_v45 = vpack.c.bf16 %v7717_v38, %v7709_v14  ;;  %v4159_v14 = vld [vmem:[#allocation3 + $0x210] sm:$0xff]  ;;  %v4213_v0 = vld [vmem:[#allocation3 + $0x3c0] sm:$0xff] }
 0xbfd   :  { %5200 = vmatpush3.bf16.msra.mxu0 %v4147_v3  ;;  %5167 = vmatprep.subr.bf16.mxu1 %v4140_v28  ;;  %v4158_v3 = vld [vmem:[#allocation3 + $0x208] sm:$0xff]  ;;  %v4175_v38 = vld [vmem:[#allocation3 + $0x290] sm:$0xff] }
 0xbfe   :  { %5201 = vmatprep.subr.bf16.mxu0 %v4156_v63  ;;  %v4174_v28 = vld [vmem:[#allocation3 + $0x288] sm:$0xff]  ;;  %v4167_v63 = vld [vmem:[#allocation3 + $0x250] sm:$0xff] }
 0xc00   :  { %5168 = vmatpush3.bf16.msra.mxu1 %v4132_v31  ;;  %v4183_v31 = vld [vmem:[#allocation3 + $0x2d0] sm:$0xff] }
 0xc01   :  { %5202 = vmatpush3.bf16.msra.mxu0 %v4148_v34  ;;  %5221 = vmatprep.subr.bf16.mxu1 %v4165_v12  ;;  %v8316_v34 = vld [vmem:[#allocation68_spill] sm:$0xff]  ;;  %v8317_v12 = vld [vmem:[#allocation78_spill] sm:$0xff] }
 0xc02   :  { %5255 = vmatprep.subr.bf16.mxu0 %v4181_v29  ;;  %v4065_v29 = vpack.c.bf16 %v8317_v12, %v8316_v34  ;;  %v4187_v34 = vld [vmem:[#allocation3 + $0x2f0] sm:$0xff]  ;;  %v4172_v12 = vld [vmem:[#allocation3 + $0x278] sm:$0xff] }
 0xc03   :  { %4370 = vmatmul.mubr.bf16.vlgmr.msra.gmra.mrb[124].mxu1 %v4049_v52  ;;  %v4168_v52 = vld [vmem:[#allocation3 + $0x258] sm:$0xff] }
 0xc04   :  { %4426 = vmatmul.mubr.bf16.vlgmr.msra.gmra.mrb[128].mxu0 %v4051_v37  ;;  %5222 = vmatpush3.bf16.msra.mxu1 %v4157_v26  ;;  %v4084_v37 = vpack.c.bf16 %v7775_v16, %v7775_v16  ;;  %v4160_v26 = vld [vmem:[#allocation3 + $0x218] sm:$0xff]  ;;  %v4161_v16 = vld [vmem:[#allocation3 + $0x220] sm:$0xff] }
 0xc05   :  { %5256 = vmatpush3.bf16.msra.mxu0 %v4173_v30  ;;  %5223 = vmatprep.subr.bf16.mxu1 %v4166_v23  ;;  %v4176_v30 = vld [vmem:[#allocation3 + $0x298] sm:$0xff]  ;;  %v4169_v23 = vld [vmem:[#allocation3 + $0x260] sm:$0xff] }
 0xc06   :  { %5257 = vmatprep.subr.bf16.mxu0 %v4182_v2  ;;  %4377 = vmatprep.mubr.bf16.mxu1 %v4066_v25  ;;  %v4185_v2 = vld [vmem:[#allocation3 + $0x2e0] sm:$0xff] }
 0xc07   :  { %4433 = vmatprep.mubr.bf16.mxu0 %v4068_v45  ;;  %v4177_v25 = vld [vmem:[#allocation3 + $0x2a0] sm:$0xff]  ;;  %v4170_v45 = vld [vmem:[#allocation3 + $0x268] sm:$0xff] }
 0xc08   :  { %5224 = vmatpush3.bf16.msra.mxu1 %v4158_v3  ;;  %v4186_v3 = vld [vmem:[#allocation3 + $0x2e8] sm:$0xff] }
 0xc09   :  { %5258 = vmatpush3.bf16.msra.mxu0 %v4174_v28  ;;  %5225 = vmatprep.subr.bf16.mxu1 %v4167_v63  ;;  %v4054_v28 = vpack.c.bf16 %v7797_v59, %v7787_v19  ;;  %v4056_v63 = vpack.c.bf16 %v7799_v33, %v7791_v55  ;;  %v4163_v19 = vld [vmem:[#allocation3 + $0x230] sm:$0xff]  ;;  %v4188_v55 = vld [vmem:[#allocation3 + $0x2f8] sm:$0xff] }
 0xc0a   :  { %5259 = vmatprep.subr.bf16.mxu0 %v4183_v31  ;;  %v4171_v31 = vld [vmem:[#allocation3 + $0x270] sm:$0xff]  ;;  %v4164_v33 = vld [vmem:[#allocation3 + $0x238] sm:$0xff] }
 0xc0b   :  { %4378 = vmatmul.mubr.bf16.gmra.mrb[128].mxu1 %v4065_v29  ;;  %v4179_v59 = vld [vmem:[#allocation3 + $0x2b0] sm:$0xff]  ;;  %v4180_v29 = vld [vmem:[#allocation3 + $0x2b8] sm:$0xff] }
 0xc0c   :  { %4434 = vmatmul.mubr.bf16.gmra.mrb[132].mxu0 %v4067_v7  ;;  %5226 = vmatpush3.bf16.msra.mxu1 %v4159_v14  ;;  %v4053_v7 = vpack.c.bf16 %v7793_v43, %v7779_v47  ;;  %v4055_v14 = vpack.c.bf16 %v7795_v9, %v7783_v58  ;;  %v4190_v47 = vld [vmem:[#allocation3 + $0x308] sm:$0xff]  ;;  %v4199_v43 = vld [vmem:[#allocation3 + $0x350] sm:$0xff] }
 0xc0d   :  { %5260 = vmatpush3.bf16.msra.mxu0 %v4175_v38  ;;  %5227 = vmatprep.subr.bf16.mxu1 %v4168_v52  ;;  %v4189_v38 = vld [vmem:[#allocation3 + $0x300] sm:$0xff]  ;;  %v4206_v58 = vld [vmem:[#allocation3 + $0x388] sm:$0xff]  ;;  %v4215_v9 = vld [vmem:[#allocation3 + $0x3d0] sm:$0xff] }
 0xc0e   :  { %5261 = vmatprep.subr.bf16.mxu0 %v4184_v53  ;;  %4385 = vmatprep.mubr.bf16.mxu1 %v4082_v54  ;;  %v4205_v52 = vld [vmem:[#allocation3 + $0x380] sm:$0xff]  ;;  %v4198_v53 = vld [vmem:[#allocation3 + $0x348] sm:$0xff] }
 0xc0f   :  { %4441 = vmatprep.mubr.bf16.mxu0 %v4084_v37  ;;  %v4214_v54 = vld [vmem:[#allocation3 + $0x3c8] sm:$0xff]  ;;  %v4070_v37 = vpack.c.bf16 %v7835_v41, %v7805_v61  ;;  %v4071_v61 = vpack.c.bf16 %v7831_v10, %v7803_v36  ;;  %v4207_v41 = vld [vmem:[#allocation3 + $0x390] sm:$0xff]  ;;  %v4208_v36 = vld [vmem:[#allocation3 + $0x398] sm:$0xff] }
 0xc10   :  { %5228 = vmatpush3.bf16.msra.mxu1 %v4160_v26  ;;  %v4072_v26 = vpack.c.bf16 %v7839_v21, %v7807_v15  ;;  %v4191_v15 = vld [vmem:[#allocation3 + $0x310] sm:$0xff]  ;;  %v4200_v21 = vld [vmem:[#allocation3 + $0x358] sm:$0xff]  ;;  %v4217_v10 = vld [vmem:[#allocation3 + $0x3e0] sm:$0xff] }
 0xc11   :  { %5262 = vmatpush3.bf16.msra.mxu0 %v4176_v30  ;;  %5229 = vmatprep.subr.bf16.mxu1 %v4169_v23  ;;  %v4069_v30 = vpack.c.bf16 %v7827_v62, %v7801_v46  ;;  %v4216_v23 = vld [vmem:[#allocation3 + $0x3d8] sm:$0xff]  ;;  %v4201_v62 = vld [vmem:[#allocation3 + $0x360] sm:$0xff] }
 0xc12   :  { %5263 = vmatprep.subr.bf16.mxu0 %v4185_v2  ;;  %v4086_v2 = vpack.c.bf16 %v7847_v40, %v7847_v40  ;;  %v4192_v46 = vld [vmem:[#allocation3 + $0x318] sm:$0xff]  ;;  %v4087_v40 = vpack.c.bf16 %v7845_v13, %v7845_v13  ;;  %v4210_v13 = vld [vmem:[#allocation3 + $0x3a8] sm:$0xff] }
 0xc13   :  { %4386 = vmatmul.mubr.bf16.gmra.mrb[132].mxu1 %v4081_v1  ;;  %v4088_v1 = vpack.c.bf16 %v7849_v50, %v7849_v50  ;;  %v4193_v50 = vld [vmem:[#allocation3 + $0x320] sm:$0xff] }
 0xc14   :  { %4442 = vmatmul.mubr.bf16.gmra.mrb[136].mxu0 %v4083_v22  ;;  %5230 = vmatpush3.bf16.msra.mxu1 %v4161_v16  ;;  %v4085_v22 = vpack.c.bf16 %v7843_v11, %v7843_v11  ;;  %v4209_v16 = vld [vmem:[#allocation3 + $0x3a0] sm:$0xff]  ;;  %v4194_v11 = vld [vmem:[#allocation3 + $0x328] sm:$0xff] }
 0xc15   :  { %5264 = vmatpush3.bf16.msra.mxu0 %v4177_v25  ;;  %5231 = vmatprep.subr.bf16.mxu1 %v4170_v45  ;;  %v4202_v25 = vld [vmem:[#allocation3 + $0x368] sm:$0xff] }
 0xc16   :  { %5265 = vmatprep.subr.bf16.mxu0 %v4186_v3  ;;  %4481 = vmatprep.mubr.bf16.mxu1 %v4054_v28  ;;  %v4218_v45 = vld [vmem:[#allocation3 + $0x3e8] sm:$0xff]  ;;  %v4058_v3 = vpack.c.bf16 %v7867_v5, %v7855_v4  ;;  %v4060_v28 = vpack.c.bf16 %v7869_v18, %v7857_v39  ;;  %v4195_v4 = vld [vmem:[#allocation3 + $0x330] sm:$0xff]  ;;  %v4220_v39 = vld [vmem:[#allocation3 + $0x3f8] sm:$0xff] }
 0xc17   :  { %4537 = vmatprep.mubr.bf16.mxu0 %v4056_v63  ;;  %v4203_v63 = vld [vmem:[#allocation3 + $0x370] sm:$0xff]  ;;  %v4196_v18 = vld [vmem:[#allocation3 + $0x338] sm:$0xff] }
 0xc18   :  { %5232 = vmatpush3.bf16.msra.mxu1 %v4162_v60  ;;  %v4219_v60 = vld [vmem:[#allocation3 + $0x3f0] sm:$0xff] }
 0xc19   :  { %5266 = vmatpush3.bf16.msra.mxu0 %v4178_v48  ;;  %5233 = vmatprep.subr.bf16.mxu1 %v4171_v31  ;;  %v4211_v5 = vld [vmem:[#allocation3 + $0x3b0] sm:$0xff]  ;;  %v4204_v48 = vld [vmem:[#allocation3 + $0x378] sm:$0xff] }
 0xc1a   :  { %5267 = vmatprep.subr.bf16.mxu0 %v4187_v34  ;;  %v4212_v31 = vld [vmem:[#allocation3 + $0x3b8] sm:$0xff]  ;;  %v4057_v34 = vpack.c.bf16 %v7859_v20, %v7851_v57  ;;  %v4075_v57 = vpack.c.bf16 %v7881_v51, %v7873_v32  ;;  %v5054_v51 = vld [vmem:[%s8023_s1 + $0x76] ss:$0 sm:$0xff] }
 0xc1b   :  { %v8320_v20 = vld [vmem:[#allocation20_spill] sm:$0xff] }
 0xc1c   :  { %5234 = vmatpush3.bf16.msra.mxu1 %v4163_v19  ;;  %v4059_v19 = vpack.c.bf16 %v7865_v24, %v7853_v42  ;;  %v4090_v42 = vpack.c.bf16 %v7891_v35, %v7891_v35  ;;  %v4092_v24 = vpack.c.bf16 %v8320_v20, %v8320_v20 }
 0xc1d   :  { %5268 = vmatpush3.bf16.msra.mxu0 %v4179_v59  ;;  %5235 = vmatprep.subr.bf16.mxu1 %v4172_v12  ;;  %v4074_v59 = vpack.c.bf16 %v7883_v56, %v7875_v44  ;;  %v4076_v12 = vpack.c.bf16 %v7885_v49, %v7877_v6  ;;  %v8321_v44 = vld [vmem:[#allocation19_spill] sm:$0xff]  ;;  %v8322_v56 = vld [vmem:[#allocation30_spill] sm:$0xff] }
 0xc1e   :  { %5269 = vmatprep.subr.bf16.mxu0 %v4188_v55  ;;  %v4073_v55 = vpack.c.bf16 %v7879_v17, %v7871_v8  ;;  %v4089_v6 = vpack.c.bf16 %v8321_v44, %v8321_v44  ;;  %v4091_v49 = vpack.c.bf16 %v8322_v56, %v8322_v56  ;;  %v8323_v8 = vmov 0.0  }
 0xc20   :  { %5236 = vmatpush3.bf16.msra.mxu1 %v4164_v33 }
 0xc21   :  { %5270 = vmatpush3.bf16.msra.mxu0 %v4180_v29  ;;  %5289 = vmatprep.subr.bf16.mxu1 %v4197_v27 }
 0xc22   :  { %5323 = vmatprep.subr.bf16.mxu0 %v4213_v0 }
 0xc23   :  { %4482 = vmatmul.mubr.bf16.vlgmr.msra.gmra.mrb[136].mxu1 %v4053_v7 }
 0xc24   :  { %4538 = vmatmul.mubr.bf16.vlgmr.msra.gmra.mrb[140].mxu0 %v4055_v14  ;;  %5290 = vmatpush3.bf16.msra.mxu1 %v4189_v38 }
 0xc25   :  { %5324 = vmatpush3.bf16.msra.mxu0 %v4205_v52  ;;  %5291 = vmatprep.subr.bf16.mxu1 %v4198_v53 }
 0xc26   :  { %5325 = vmatprep.subr.bf16.mxu0 %v4214_v54  ;;  %4489 = vmatprep.mubr.bf16.mxu1 %v4070_v37 }
 0xc27   :  { %4545 = vmatprep.mubr.bf16.mxu0 %v4072_v26 }
 0xc28   :  { %5292 = vmatpush3.bf16.msra.mxu1 %v4190_v47 }
 0xc29   :  { %5326 = vmatpush3.bf16.msra.mxu0 %v4206_v58  ;;  %5293 = vmatprep.subr.bf16.mxu1 %v4199_v43 }
 0xc2a   :  { %5327 = vmatprep.subr.bf16.mxu0 %v4215_v9 }
 0xc2b   :  { %4490 = vmatmul.mubr.bf16.gmra.mrb[140].mxu1 %v4069_v30 }
 0xc2c   :  { %4546 = vmatmul.mubr.bf16.gmra.mrb[144].mxu0 %v4071_v61  ;;  %5294 = vmatpush3.bf16.msra.mxu1 %v4191_v15 }
 0xc2d   :  { %5328 = vmatpush3.bf16.msra.mxu0 %v4207_v41  ;;  %5295 = vmatprep.subr.bf16.mxu1 %v4200_v21 }
 0xc2e   :  { %5329 = vmatprep.subr.bf16.mxu0 %v4216_v23  ;;  %4497 = vmatprep.mubr.bf16.mxu1 %v4086_v2 }
 0xc2f   :  { %4553 = vmatprep.mubr.bf16.mxu0 %v4088_v1 }
 0xc30   :  { %5296 = vmatpush3.bf16.msra.mxu1 %v4192_v46 }
 0xc31   :  { %5330 = vmatpush3.bf16.msra.mxu0 %v4208_v36  ;;  %5297 = vmatprep.subr.bf16.mxu1 %v4201_v62 }
 0xc32   :  { %5331 = vmatprep.subr.bf16.mxu0 %v4217_v10 }
 0xc33   :  { %4498 = vmatmul.mubr.bf16.gmra.mrb[144].mxu1 %v4085_v22 }
 0xc34   :  { %4554 = vmatmul.mubr.bf16.gmra.mrb[148].mxu0 %v4087_v40  ;;  %5298 = vmatpush3.bf16.msra.mxu1 %v4193_v50 }
 0xc35   :  { %5332 = vmatpush3.bf16.msra.mxu0 %v4209_v16  ;;  %5299 = vmatprep.subr.bf16.mxu1 %v4202_v25 }
 0xc36   :  { %5333 = vmatprep.subr.bf16.mxu0 %v4218_v45  ;;  %4593 = vmatprep.mubr.bf16.mxu1 %v4058_v3 }
 0xc37   :  { %4649 = vmatprep.mubr.bf16.mxu0 %v4060_v28 }
 0xc38   :  { %5300 = vmatpush3.bf16.msra.mxu1 %v4194_v11 }
 0xc39   :  { %5334 = vmatpush3.bf16.msra.mxu0 %v4210_v13  ;;  %5301 = vmatprep.subr.bf16.mxu1 %v4203_v63 }
 0xc3a   :  { %5335 = vmatprep.subr.bf16.mxu0 %v4219_v60 }
 0xc3c   :  { %5302 = vmatpush3.bf16.msra.mxu1 %v4195_v4 }
 0xc3d   :  { %5336 = vmatpush3.bf16.msra.mxu0 %v4211_v5  ;;  %5303 = vmatprep.subr.bf16.mxu1 %v4204_v48 }
 0xc3e   :  { %5337 = vmatprep.subr.bf16.mxu0 %v4220_v39 }
 0xc40   :  { %5304 = vmatpush3.bf16.msra.mxu1 %v4196_v18 }
 0xc41   :  { %5338 = vmatpush3.bf16.msra.mxu0 %v4212_v31 }
 0xc43   :  { %4594 = vmatmul.mubr.bf16.vlgmr.msra.gmra.mrb[148].mxu1 %v4057_v34 }
 0xc44   :  { %4650 = vmatmul.mubr.bf16.vlgmr.msra.gmra.mrb[152].mxu0 %v4059_v19  ;;  %4601 = vmatprep.mubr.bf16.mxu1 %v4074_v59 }
 0xc45   :  { %4657 = vmatprep.mubr.bf16.mxu0 %v4076_v12 }
 0xc4b   :  { %4602 = vmatmul.mubr.bf16.gmra.mrb[152].mxu1 %v4073_v55 }
 0xc4c   :  { %4658 = vmatmul.mubr.bf16.gmra.mrb[156].mxu0 %v4075_v57  ;;  %4609 = vmatprep.mubr.bf16.mxu1 %v4090_v42 }
 0xc4d   :  { %4665 = vmatprep.mubr.bf16.mxu0 %v4092_v24 }
 0xc53   :  { %4610 = vmatmul.mubr.bf16.gmra.mrb[156].mxu1 %v4089_v6 }
 0xc54   :  { %4666 = vmatmul.mubr.bf16.gmra.mrb[160].mxu0 %v4091_v49  ;;  %5443 = vmatprep.mubr.msk.f32.mxu1 %vm5973_vm0, %v8323_v8 }
 0xcb6   :  { %v5101_v32 = vpop.f32.mrb[112].mxu1 }
 0xcb7   :  { %v5135_v17 = vpop.f32.mrb[116].mxu0  ;;  %v5102_v35 = vpop.f32.mrb[113].mxu1 }
 0xcb8   :  { %v5136_v33 = vpop.f32.mrb[117].mxu0  ;;  %v5103_v29 = vadd.f32 %v5102_v35, %v5101_v32  ;;  %v5104_v0 = vpop.f32.mrb[114].mxu1 }
 0xcb9   :  { %v5137_v27 = vadd.f32 %v5136_v33, %v5135_v17  ;;  %v5138_v7 = vpop.f32.mrb[118].mxu0  ;;  %v5105_v14 = vpop.f32.mrb[115].mxu1 }
 0xcba   :  { %v5139_v38 = vpop.f32.mrb[119].mxu0  ;;  %v4260_v52 = vadd.f32 %v5103_v29, %v5054_v51  ;;  %v5106_v53 = vadd.f32 %v5105_v14, %v5104_v0 }
 0xcbb   :  { %v5140_v54 = vadd.f32 %v5139_v38, %v5138_v7 }
 0xcbc   :  { %v4316_v37 = vadd.f32 %v5137_v27, %v4260_v52  ;;  %v4263_v26 = vadd.f32 %v5106_v53, %v5054_v51 }
 0xcbe   :  { %v4319_v47 = vadd.f32 %v5140_v54, %v4263_v26  ;;  %v5107_v58 = vpop.f32.mrb[116].mxu1 }
 0xcbf   :  { %v5141_v43 = vpop.f32.mrb[120].mxu0  ;;  %v5108_v9 = vpop.f32.mrb[117].mxu1 }
 0xcc0   :  { %v5142_v30 = vpop.f32.mrb[121].mxu0  ;;  %v5109_v61 = vadd.f32 %v5108_v9, %v5107_v58  ;;  %v5110_v15 = vpop.f32.mrb[118].mxu1 }
 0xcc1   :  { %v5143_v41 = vadd.f32 %v5142_v30, %v5141_v43  ;;  %v5144_v21 = vpop.f32.mrb[122].mxu0  ;;  %v5111_v23 = vpop.f32.mrb[119].mxu1 }
 0xcc2   :  { %v5145_v2 = vpop.f32.mrb[123].mxu0  ;;  %v4268_v1 = vadd.f32 %v5109_v61, %v5054_v51  ;;  %v5112_v46 = vadd.f32 %v5111_v23, %v5110_v15 }
 0xcc3   :  { %v5146_v36 = vadd.f32 %v5145_v2, %v5144_v21 }
 0xcc4   :  { %v4271_v62 = vadd.f32 %v5112_v46, %v5054_v51  ;;  %v4324_v10 = vadd.f32 %v5143_v41, %v4268_v1 }
 0xcc6   :  { %v4327_v22 = vadd.f32 %v5146_v36, %v4271_v62  ;;  %v5113_v40 = vpop.f32.mrb[120].mxu1 }
 0xcc7   :  { %v5147_v50 = vpop.f32.mrb[124].mxu0  ;;  %v5114_v16 = vpop.f32.mrb[121].mxu1 }
 0xcc8   :  { %v5148_v25 = vpop.f32.mrb[125].mxu0  ;;  %v5115_v45 = vadd.f32 %v5114_v16, %v5113_v40  ;;  %v5116_v3 = vpop.f32.mrb[122].mxu1 }
 0xcc9   :  { %v5149_v28 = vadd.f32 %v5148_v25, %v5147_v50  ;;  %v5150_v11 = vpop.f32.mrb[126].mxu0  ;;  %v5117_v13 = vpop.f32.mrb[123].mxu1 }
 0xcca   :  { %v5151_v63 = vpop.f32.mrb[127].mxu0  ;;  %v4276_v60 = vadd.f32 %v5115_v45, %v5054_v51 }
 0xccc   :  { %v4332_v4 = vadd.f32 %v5149_v28, %v4276_v60 }
 0xcd6   :  { %v5169_v5 = vpop.f32.mrb[124].mxu1 }
 0xcd7   :  { %v5203_v48 = vpop.f32.mrb[128].mxu0  ;;  %v5170_v39 = vpop.f32.mrb[125].mxu1 }
 0xcd8   :  { %v5204_v18 = vpop.f32.mrb[129].mxu0  ;;  %v5171_v31 = vadd.f32 %v5170_v39, %v5169_v5  ;;  %v5172_v19 = vpop.f32.mrb[126].mxu1 }
 0xcd9   :  { %v5205_v34 = vadd.f32 %v5204_v18, %v5203_v48  ;;  %v5206_v59 = vpop.f32.mrb[130].mxu0  ;;  %v5173_v12 = vpop.f32.mrb[127].mxu1 }
 0xcda   :  { %v5207_v55 = vpop.f32.mrb[131].mxu0  ;;  %v4372_v57 = vadd.f32 %v5171_v31, %v4316_v37  ;;  %v5174_v42 = vadd.f32 %v5173_v12, %v5172_v19 }
 0xcdb   :  { %v5208_v20 = vadd.f32 %v5207_v55, %v5206_v59 }
 0xcdc   :  { %v4428_v24 = vadd.f32 %v5205_v34, %v4372_v57  ;;  %v4375_v44 = vadd.f32 %v5174_v42, %v4319_v47 }
 0xcde   :  { %v4431_v6 = vadd.f32 %v5208_v20, %v4375_v44  ;;  %v5175_v56 = vpop.f32.mrb[128].mxu1 }
 0xcdf   :  { %v5209_v49 = vpop.f32.mrb[132].mxu0  ;;  %v5176_v32 = vpop.f32.mrb[129].mxu1 }
 0xce0   :  { %v5210_v17 = vpop.f32.mrb[133].mxu0  ;;  %v5177_v51 = vadd.f32 %v5176_v32, %v5175_v56  ;;  %v5178_v35 = vpop.f32.mrb[130].mxu1 }
 0xce1   :  { %v5211_v33 = vadd.f32 %v5210_v17, %v5209_v49  ;;  %v5212_v29 = vpop.f32.mrb[134].mxu0  ;;  %v5179_v27 = vpop.f32.mrb[131].mxu1 }
 0xce2   :  { %v5213_v0 = vpop.f32.mrb[135].mxu0  ;;  %v4380_v7 = vadd.f32 %v5177_v51, %v4324_v10  ;;  %v5180_v14 = vadd.f32 %v5179_v27, %v5178_v35 }
 0xce3   :  { %v5214_v38 = vadd.f32 %v5213_v0, %v5212_v29 }
 0xce4   :  { %v4383_v52 = vadd.f32 %v5180_v14, %v4327_v22  ;;  %v4436_v53 = vadd.f32 %v5211_v33, %v4380_v7 }
 0xce6   :  { %v4439_v54 = vadd.f32 %v5214_v38, %v4383_v52  ;;  %v5181_v37 = vpop.f32.mrb[132].mxu1 }
 0xce7   :  { %v5215_v26 = vpop.f32.mrb[136].mxu0  ;;  %v5182_v47 = vpop.f32.mrb[133].mxu1 }
 0xce8   :  { %v5216_v58 = vpop.f32.mrb[137].mxu0  ;;  %v5183_v43 = vadd.f32 %v5182_v47, %v5181_v37  ;;  %v5184_v30 = vpop.f32.mrb[134].mxu1 }
 0xce9   :  { %v5217_v9 = vadd.f32 %v5216_v58, %v5215_v26  ;;  %v5218_v61 = vpop.f32.mrb[138].mxu0  ;;  %v5185_v15 = vpop.f32.mrb[135].mxu1 }
 0xcea   :  { %v5219_v41 = vpop.f32.mrb[139].mxu0  ;;  %v4388_v21 = vadd.f32 %v5183_v43, %v4332_v4 }
 0xcec   :  { %v4444_v23 = vadd.f32 %v5217_v9, %v4388_v21 }
 0xcf6   :  { %v5237_v2 = vpop.f32.mrb[136].mxu1 }
 0xcf7   :  { %v5271_v1 = vpop.f32.mrb[140].mxu0  ;;  %v5238_v46 = vpop.f32.mrb[137].mxu1 }
 0xcf8   :  { %v5272_v36 = vpop.f32.mrb[141].mxu0  ;;  %v5239_v62 = vadd.f32 %v5238_v46, %v5237_v2  ;;  %v5240_v22 = vpop.f32.mrb[138].mxu1 }
 0xcf9   :  { %v5273_v10 = vadd.f32 %v5272_v36, %v5271_v1  ;;  %v5274_v40 = vpop.f32.mrb[142].mxu0  ;;  %v5241_v50 = vpop.f32.mrb[139].mxu1 }
 0xcfa   :  { %v5275_v16 = vpop.f32.mrb[143].mxu0  ;;  %v4484_v25 = vadd.f32 %v5239_v62, %v4428_v24  ;;  %v5242_v45 = vadd.f32 %v5241_v50, %v5240_v22 }
 0xcfb   :  { %v5276_v3 = vadd.f32 %v5275_v16, %v5274_v40 }
 0xcfc   :  { %v4540_v28 = vadd.f32 %v5273_v10, %v4484_v25  ;;  %v4487_v11 = vadd.f32 %v5242_v45, %v4431_v6 }
 0xcfe   :  { %v4543_v13 = vadd.f32 %v5276_v3, %v4487_v11  ;;  %v5243_v63 = vpop.f32.mrb[140].mxu1 }
 0xcff   :  { %v5277_v60 = vpop.f32.mrb[144].mxu0  ;;  %v5244_v4 = vpop.f32.mrb[141].mxu1 }
 0xd00   :  { %v5278_v5 = vpop.f32.mrb[145].mxu0  ;;  %v5245_v48 = vadd.f32 %v5244_v4, %v5243_v63  ;;  %v5246_v39 = vpop.f32.mrb[142].mxu1 }
 0xd01   :  { %v5279_v18 = vadd.f32 %v5278_v5, %v5277_v60  ;;  %v5280_v31 = vpop.f32.mrb[146].mxu0  ;;  %v5247_v34 = vpop.f32.mrb[143].mxu1 }
 0xd02   :  { %v5281_v19 = vpop.f32.mrb[147].mxu0  ;;  %v4492_v59 = vadd.f32 %v5245_v48, %v4436_v53  ;;  %v5248_v12 = vadd.f32 %v5247_v34, %v5246_v39 }
 0xd03   :  { %v5282_v55 = vadd.f32 %v5281_v19, %v5280_v31 }
 0xd04   :  { %v4495_v57 = vadd.f32 %v5248_v12, %v4439_v54  ;;  %v4548_v42 = vadd.f32 %v5279_v18, %v4492_v59  ;;  %v5981_v59 = vmov 0.0|0.0  }
 0xd05   :  { %5446 = vmatprep.subr.bf16.mxu1 %v5981_v59 }
 0xd06   :  { %v4551_v20 = vadd.f32 %v5282_v55, %v4495_v57  ;;  %v5249_v24 = vpop.f32.mrb[144].mxu1 }
 0xd07   :  { %v5283_v44 = vpop.f32.mrb[148].mxu0  ;;  %v5250_v6 = vpop.f32.mrb[145].mxu1 }
 0xd08   :  { %v5284_v56 = vpop.f32.mrb[149].mxu0  ;;  %v5251_v49 = vadd.f32 %v5250_v6, %v5249_v24  ;;  %v5252_v17 = vpop.f32.mrb[146].mxu1 }
 0xd09   :  { %v5285_v32 = vadd.f32 %v5284_v56, %v5283_v44  ;;  %v5286_v51 = vpop.f32.mrb[150].mxu0  ;;  %v5253_v35 = vpop.f32.mrb[147].mxu1 }
 0xd0a   :  { %v5287_v33 = vpop.f32.mrb[151].mxu0  ;;  %v4500_v29 = vadd.f32 %v5251_v49, %v4444_v23 }
 0xd0c   :  { %v4556_v27 = vadd.f32 %v5285_v32, %v4500_v29 }
 0xd16   :  { %v5305_v0 = vpop.f32.mrb[148].mxu1 }
 0xd17   :  { %v5339_v7 = vpop.f32.mrb[152].mxu0  ;;  %v5306_v14 = vpop.f32.mrb[149].mxu1 }
 0xd18   :  { %v5340_v38 = vpop.f32.mrb[153].mxu0  ;;  %v5307_v52 = vadd.f32 %v5306_v14, %v5305_v0  ;;  %v5308_v54 = vpop.f32.mrb[150].mxu1 }
 0xd19   :  { %v5341_v53 = vadd.f32 %v5340_v38, %v5339_v7  ;;  %v5342_v37 = vpop.f32.mrb[154].mxu0  ;;  %v5309_v26 = vpop.f32.mrb[151].mxu1 }
 0xd1a   :  { %v5343_v47 = vpop.f32.mrb[155].mxu0  ;;  %v5310_v58 = vadd.f32 %v5309_v26, %v5308_v54  ;;  %v4596_v9 = vadd.f32 %v5307_v52, %v4540_v28  ;;  %v4710_v26 = vld [vmem:[%s8023_s1 + $0x20] sm:$0xff] }
 0xd1b   :  { %v5344_v43 = vadd.f32 %v5343_v47, %v5342_v37  ;;  %v4709_v37 = vld [vmem:[%s8023_s1 + $0x18] sm:$0xff] }
 0xd1c   :  { %v4599_v30 = vadd.f32 %v5310_v58, %v4543_v13  ;;  %v4652_v61 = vadd.f32 %v5341_v53, %v4596_v9 }
 0xd1e   :  { %v5311_v15 = vpop.f32.mrb[152].mxu1  ;;  %4673 = vmax.xlane.f32.xlu0 %v4652_v61  ;;  %v4655_v21 = vadd.f32 %v5344_v43, %v4599_v30 }
 0xd1f   :  { %v5345_v41 = vpop.f32.mrb[156].mxu0  ;;  %v5312_v23 = vpop.f32.mrb[153].mxu1 }
 0xd20   :  { %v5346_v2 = vpop.f32.mrb[157].mxu0  ;;  %v5313_v1 = vadd.f32 %v5312_v23, %v5311_v15  ;;  %v5314_v36 = vpop.f32.mrb[154].mxu1 }
 0xd21   :  { %v5347_v46 = vadd.f32 %v5346_v2, %v5345_v41  ;;  %v5348_v62 = vpop.f32.mrb[158].mxu0  ;;  %v5315_v10 = vpop.f32.mrb[155].mxu1  ;;  %v4711_v41 = vld [vmem:[%s8023_s1 + $0x28] sm:$0xff] }
 0xd22   :  { %v5349_v22 = vpop.f32.mrb[159].mxu0  ;;  %v5316_v40 = vadd.f32 %v5315_v10, %v5314_v36  ;;  %4675 = vmax.xlane.f32.xlu0 %v4655_v21  ;;  %v4604_v16 = vadd.f32 %v5313_v1, %v4548_v42  ;;  %v4712_v21 = vld [vmem:[%s8023_s1 + $0x30] sm:$0xff]  ;;  %v4713_v36 = vld [vmem:[%s8023_s1 + $0x38] sm:$0xf] }
 0xd23   :  { %v5350_v50 = vadd.f32 %v5349_v22, %v5348_v62  ;;  %v4714_v22 = vld [vmem:[%s8023_s1 + $0x68] sm:$0x3f] }
 0xd24   :  { %v4607_v25 = vadd.f32 %v5316_v40, %v4551_v20  ;;  %v4660_v45 = vadd.f32 %v5347_v46, %v4604_v16  ;;  %v8324_v40 = vlaneseq  ;;  %v8325_v16 = vld [vmem:[#allocation25_spill] sm:$0xff] }
 0xd26   :  { %v5317_v3 = vpop.f32.mrb[156].mxu1  ;;  %4677 = vmax.xlane.f32.xlu1 %v4660_v45  ;;  %v4663_v11 = vadd.f32 %v5350_v50, %v4607_v25  ;;  %v4800_v50 = vand.u32 127, %v8324_v40 }
 0xd27   :  { %v5351_v28 = vpop.f32.mrb[160].mxu0  ;;  %v5318_v13 = vpop.f32.mrb[157].mxu1 }
 0xd28   :  { %v5352_v63 = vpop.f32.mrb[161].mxu0  ;;  %v5319_v60 = vadd.f32 %v5318_v13, %v5317_v3  ;;  %v5320_v5 = vpop.f32.mrb[158].mxu1  ;;  %vm4801_vm0 = vcmp.eq.s32.totalorder %v8325_v16, %v4800_v50 }
 0xd29   :  { %v5353_v4 = vadd.f32 %v5352_v63, %v5351_v28  ;;  %v5354_v48 = vpop.f32.mrb[162].mxu0  ;;  %v5321_v39 = vpop.f32.mrb[159].mxu1 }
 0xd2a   :  { %v5355_v18 = vpop.f32.mrb[163].mxu0  ;;  %v4612_v31 = vadd.f32 %v5319_v60, %v4556_v27  ;;  %4679 = vmax.xlane.f32.xlu1 %v4663_v11 }
 0xd2c   :  { %v4668_v34 = vadd.f32 %v5353_v4, %v4612_v31 }
 0xd2e   :  { %v4681_v19 = vsel %vm1582_vm13, %v4668_v34, -inf }
 0xd2f   :  { %4682 = vmax.xlane.f32.xlu0 %v4681_v19 }
 0xdab   :  { %v4674_v12 = vpop.xlane.xlu0 %4673 }
 0xdac   :  { %v4684_v55 = vsub.f32 0.0, %v4674_v12 }
 0xdae   :  { %v4689_v57 = vmul.f32 1.442695, %v4684_v55 }
 0xdaf   :  { %v4676_v42 = vpop.xlane.xlu0 %4675 }
 0xdb0   :  { %5901 = vpow2.f32 %v4689_v57  ;;  %v4685_v20 = vsub.f32 0.0, %v4676_v42 }
 0xdb2   :  { %v4691_v24 = vmul.f32 1.442695, %v4685_v20 }
 0xdb3   :  { %v4678_v44 = vpop.xlane.xlu1 %4677 }
 0xdb4   :  { %5903 = vpow2.f32 %v4691_v24  ;;  %v4686_v6 = vsub.f32 0.0, %v4678_v44 }
 0xdb6   :  { %v4693_v56 = vmul.f32 1.442695, %v4686_v6 }
 0xdb7   :  { %v4680_v49 = vpop.xlane.xlu1 %4679 }
 0xdb8   :  { %5905 = vpow2.f32 %v4693_v56  ;;  %v4687_v32 = vsub.f32 0.0, %v4680_v49 }
 0xdba   :  { %v5902_v17 = vpop.eup %5901  ;;  %v4695_v51 = vmul.f32 1.442695, %v4687_v32 }
 0xdbb   :  { %v4699_v35 = vadd.f32 1.0, %v5902_v17 }
 0xdbc   :  { %5907 = vpow2.f32 %v4695_v51  ;;  %v4683_v33 = vpop.xlane.xlu0 %4682 }
 0xdbd   :  { %v4688_v29 = vsub.f32 0.0, %v4683_v33  ;;  %5909 = vrcp.f32 %v4699_v35 }
 0xdbe   :  { %v5904_v27 = vpop.eup %5903 }
 0xdbf   :  { %v4700_v0 = vadd.f32 1.0, %v5904_v27  ;;  %v4697_v7 = vmul.f32 1.442695, %v4688_v29 }
 0xdc1   :  { %5911 = vrcp.f32 %v4700_v0 }
 0xdc2   :  { %v5906_v14 = vpop.eup %5905  ;;  %5913 = vpow2.f32 %v4697_v7 }
 0xdc3   :  { %v4701_v38 = vadd.f32 1.0, %v5906_v14 }
 0xdc5   :  { %5915 = vrcp.f32 %v4701_v38 }
 0xdc6   :  { %v5908_v52 = vpop.eup %5907 }
 0xdc7   :  { %v4702_v53 = vadd.f32 1.0, %v5908_v52  ;;  %v5910_v54 = vpop.eup %5909 }
 0xdc8   :  { %v4715_v43 = vmul.f32 %v5910_v54, %v4709_v37 }
 0xdc9   :  { %5917 = vrcp.f32 %v4702_v53 }
 0xdcb   :  { %v5912_v47 = vpop.eup %5911 }
 0xdcc   :  { %v5914_v58 = vpop.eup %5913  ;;  %v4716_v9 = vmul.f32 %v5912_v47, %v4710_v26 }
 0xdcd   :  { %v4703_v30 = vadd.f32 1.0, %v5914_v58 }
 0xdce   :  { %v5447_v61 = vpack.c.bf16 %v4716_v9, %v4715_v43 }
 0xdcf   :  { %5919 = vrcp.f32 %v4703_v30  ;;  %v5916_v15 = vpop.eup %5915 }
 0xdd0   :  { %5448 = vmatpush3.bf16.msra.mxu1 %v5447_v61  ;;  %v4717_v2 = vmul.f32 %v5916_v15, %v4711_v41 }
 0xdd1   :  { %5449 = vmatprep.subr.bf16.mxu1 %v5981_v59 }
 0xdd3   :  { %v5918_v23 = vpop.eup %5917 }
 0xdd4   :  { %v4718_v1 = vmul.f32 %v5918_v23, %v4712_v21 }
 0xdd6   :  { %v5450_v46 = vpack.c.bf16 %v4718_v1, %v4717_v2 }
 0xdd8   :  { %5451 = vmatpush3.bf16.msra.mxu1 %v5450_v46 }
 0xdd9   :  { %v5920_v62 = vpop.eup %5919  ;;  %5441 = vmatprep.subr.mxu1 %v8323_v8 }
 0xdda   :  { %v4719_v10 = vmul.f32 %v5920_v62, %v4713_v36 }
 0xddc   :  { %5442 = vmatpush3.msk.msra.mxu1 %vm1582_vm13, %v4719_v10 }
 0xddd   :  { %5444 = vmatmul.mubr.msk.f32.vlgmr.msra.gmra.mrb[160].mxu1 %vm4720_vm15, %v4714_v22 }
 0xeb0   :  { %v4793_v25 = vpop.f32.mrb[160].mxu1 }
 0xeb1   :  { %v4802_v45 = vsel %vm4801_vm0, 0.0, %v4793_v25  ;;  %v5445_v3 = vpop.f32.mrb[161].mxu1 }
 0xeb2   :  { %4804 = vst.msk [vmem:[%s8027_s5] sm:$0x3f] %vm4803_vm1, %v4802_v45 }
 0xeb3   :  { %4809 = vsyncpa [#allocation6], 1 }
 0xeb4   :  { %4810 = vsyncmov [#allocation4] }
 0xeb7   :  { %s4811_s24 = vpop.sfrf %4810 }
 0xeb8   :  { %p5057_p2 = scmp.ne.s32.totalorder %s4811_s24, 0 }
 0xeba   :  { %4815 = shalt.err (%p5057_p2)  }
 0xebb   :  { %4817 = vsyncmov [#allocation4 + $0x1] }
 0xebe   :  { %s4818_s1 = vpop.sfrf %4817 }
 0xebf   :  { %p5058_p3 = scmp.ne.s32.totalorder %s4818_s1, 0 }
 0xec1   :  { %4822 = shalt.err (%p5058_p3)  }

</bundles_post_ra>
